<compile_context>
chip_gen: v7x
topology: tpu7x:2x2x1
jax: 0.10.0
libtpu: 0.0.40
codegen_flags: <defaults>
</compile_context>

<pallas_src>
import functools

import jax
import jax.numpy as jnp
from jax.experimental import pallas as pl
from jax.experimental.pallas import tpu as pltpu

# ---- module constants (from ensemble.py) ------------------------------------
DIM_CAPSULE = 5
NUM_CAPSULE = 5
ROUTINGS = 4
T_EPSILON = 1e-07
GRU_LEN = 60
INPUT_DIM_CAPSULE = GRU_LEN * 2  # 120


def _round_up(a, m):
    return ((a + m - 1) // m) * m


# ---- Pallas kernel -----------------------------------------------------------
def _caps_kernel(w_ref, x_ref, o_ref, *, num_capsule, dim_capsule, n_in,
                 routings, eps):
    # w_ref: (num_cap*dim_cap*n_in, n_in*d_in)  block-diagonal, row-permuted weight
    # x_ref: (n_in*d_in, BT)                    batch tile on the lane axis
    # o_ref: (num_cap, dim_cap, BT)             lane-dense output store
    bt = x_ref.shape[-1]

    # One MXU matmul; result rows are ordered (c, k, n) so the reshape below is a
    # pure leading-dim split on an 8-aligned sublane boundary (no data movement).
    u_flat = jnp.dot(w_ref[...], x_ref[...].astype(jnp.float32),
                     preferred_element_type=jnp.float32)        # (200, BT)
    u = u_flat.reshape(num_capsule, dim_capsule, n_in, bt)      # minor dims (8, BT)

    def squash(s):
        # s: (num_cap, dim_cap, 1, BT); squash over dim_capsule via rsqrt (EUP).
        sq = jnp.sum(s * s, axis=1, keepdims=True)
        return s * jax.lax.rsqrt(sq + eps)

    # Routing round 0: b == 0  =>  coupling is uniform (1/num_capsule); skip softmax.
    s = jnp.sum(u, axis=2, keepdims=True) * jnp.float32(1.0 / num_capsule)
    outputs = squash(s)                                          # (num_cap, dim_cap, 1, BT)

    for _ in range(1, routings):
        # b[c, n, :] = sum_k outputs[c, k, :] * u[c, k, n, :]   (VPU mult + cross-vreg adds)
        b_log = jnp.sum(outputs * u, axis=1, keepdims=True)      # (num_cap, 1, n_in, BT)
        # softmax over num_capsule: cross-vreg VPU max/sum on full (8, BT) vregs.
        m = jnp.max(b_log, axis=0, keepdims=True)
        e = jnp.exp(b_log - m)
        c = e / jnp.sum(e, axis=0, keepdims=True)                # (num_cap, 1, n_in, BT)
        # s[c, k, :] = sum_n c[c, n, :] * u[c, k, n, :]          (sublane reduce over n_in)
        s = jnp.sum(c * u, axis=2, keepdims=True)                # (num_cap, dim_cap, 1, BT)
        outputs = squash(s)

    o_ref[...] = outputs[:, :, 0, :].astype(o_ref.dtype)


# ---- wrapper -----------------------------------------------------------------
def caps_layer(x, W, *, num_capsule=NUM_CAPSULE, dim_capsule=DIM_CAPSULE,
               routings=ROUTINGS, batch_tile=512):
    """x: (B, N_in, D_in); W: (1, D_in, num_capsule*dim_capsule) (shared weights)."""
    batch, n_in, d_in = x.shape
    ncd = num_capsule * dim_capsule

    # ---- tile / padding selection (always lane-dense; >=2 grid steps when possible)
    padded128 = _round_up(batch, 128)
    if padded128 <= 128:
        bt = 128
    else:
        bt = max(128, (min(batch_tile, padded128 // 2) // 128) * 128)
    padded = _round_up(batch, bt)
    grid = (padded // bt,)

    # ---- wrapper-side layout plumbing (not compute hoisting) --------------------
    # Block-diagonal weight with rows permuted to (c, k, n):
    #   w_big[(c*dim+k)*n_in + n, m*d_in + d] = W[0, d, c*dim+k] * (n == m)
    wt = W.reshape(d_in, ncd).astype(jnp.float32).T               # (ncd, d_in)
    eye = jnp.eye(n_in, dtype=jnp.float32)
    w_big = jnp.einsum('rd,nm->rnmd', wt, eye).reshape(ncd * n_in, n_in * d_in)

    # x -> (N_in*D_in, B_padded): batch on lanes for the matmul RHS and routing.
    if padded != batch:
        x = jnp.pad(x, ((0, padded - batch), (0, 0), (0, 0)))     # zero rows: routing-safe
    x_t = jnp.transpose(x, (1, 2, 0)).reshape(n_in * d_in, padded)

    kernel = functools.partial(
        _caps_kernel, num_capsule=num_capsule, dim_capsule=dim_capsule,
        n_in=n_in, routings=routings, eps=T_EPSILON)

    itemsize = x.dtype.itemsize
    cost = pl.CostEstimate(
        flops=2 * padded * (ncd * n_in) * (n_in * d_in)
              + routings * 8 * padded * n_in * ncd,
        transcendentals=(routings - 1) * padded * n_in * num_capsule,
        bytes_accessed=padded * n_in * d_in * itemsize
                       + (ncd * n_in) * (n_in * d_in) * 4
                       + padded * ncd * itemsize,
    )

    out_t = pl.pallas_call(
        kernel,
        out_shape=jax.ShapeDtypeStruct((num_capsule, dim_capsule, padded), x.dtype),
        grid_spec=pltpu.PrefetchScalarGridSpec(
            num_scalar_prefetch=0,
            grid=grid,
            in_specs=[
                pl.BlockSpec((ncd * n_in, n_in * d_in), lambda t: (0, 0)),  # W_big (resident)
                pl.BlockSpec((n_in * d_in, bt), lambda t: (0, t)),          # x tile
            ],
            out_specs=pl.BlockSpec((num_capsule, dim_capsule, bt),
                                   lambda t: (0, 0, t)),
        ),
        compiler_params=pltpu.CompilerParams(
            dimension_semantics=("parallel",),          # batch tiles shard across TCs (v7x)
            vmem_limit_bytes=32 * 1024 * 1024),         # headroom on v5e's 16 MiB default
        cost_estimate=cost,
    )(w_big, x_t)

    # (num_cap, dim_cap, B_padded) -> (B, num_cap, dim_cap); drop batch padding.
    return jnp.transpose(out_t, (2, 0, 1))[:batch]


# ---- pure-JAX reference (mirrors the PyTorch forward exactly) ----------------
def caps_layer_ref(x, W):
    u_hat = jnp.matmul(x, W)                              # (B, N, num*dim)
    B, N, _ = u_hat.shape
    u = u_hat.reshape(B, N, NUM_CAPSULE, DIM_CAPSULE).transpose(0, 2, 1, 3)
    b = jnp.zeros(u.shape[:3], dtype=jnp.float32)         # (B, num_cap, N)
    outputs = None
    for i in range(ROUTINGS):
        c = jax.nn.softmax(b, axis=1)                     # softmax over num_capsule
        s = jnp.einsum('bij,bijk->bik', c, u)
        outputs = s / jnp.sqrt(jnp.sum(s * s, axis=-1, keepdims=True) + T_EPSILON)
        if i < ROUTINGS - 1:
            b = jnp.einsum('bik,bijk->bij', outputs, u)   # replaced, not accumulated
    return outputs


# ---- main --------------------------------------------------------------------
if __name__ == "__main__":
    key = jax.random.PRNGKey(0)
    kx, kw = jax.random.split(key)

    B, N_IN = 256, 8          # -> two grid steps of a 128-wide batch tile
    x = jax.random.normal(kx, (B, N_IN, INPUT_DIM_CAPSULE), dtype=jnp.float32)

    # Deterministic xavier_normal_-style init for W of torch-shape (1, D_in, num*dim):
    fan_in = INPUT_DIM_CAPSULE * NUM_CAPSULE * DIM_CAPSULE
    fan_out = 1 * NUM_CAPSULE * DIM_CAPSULE
    std = (2.0 / (fan_in + fan_out)) ** 0.5
    W = std * jax.random.normal(
        kw, (1, INPUT_DIM_CAPSULE, NUM_CAPSULE * DIM_CAPSULE), dtype=jnp.float32)

    out = jax.block_until_ready(caps_layer(x, W))
    ref = caps_layer_ref(x, W)
    assert out.shape == (B, NUM_CAPSULE, DIM_CAPSULE), out.shape
    assert jnp.allclose(out, ref, atol=1e-4, rtol=1e-4), (
        float(jnp.max(jnp.abs(out - ref))))

    # Non-multiple-of-128 batch: exercises the zero-padding path.
    B2 = 70
    x2 = jax.random.normal(kx, (B2, N_IN, INPUT_DIM_CAPSULE), dtype=jnp.float32)
    out2 = jax.block_until_ready(caps_layer(x2, W))
    ref2 = caps_layer_ref(x2, W)
    assert out2.shape == (B2, NUM_CAPSULE, DIM_CAPSULE), out2.shape
    assert jnp.allclose(out2, ref2, atol=1e-4, rtol=1e-4), (
        float(jnp.max(jnp.abs(out2 - ref2))))

    print("KERNEL_OK")
</pallas_src>

<mosaic_0001>
module attributes {stable_mosaic.version = 11 : i64} {
  func.func @_caps_kernel(%arg0: i32, %arg1: memref<200x960xf32, #tpu.memory_space<vmem>>, %arg2: memref<960x128xf32, #tpu.memory_space<vmem>>, %arg3: memref<5x5x128xf32, #tpu.memory_space<vmem>>) attributes {dimension_semantics = [#tpu.dimension_semantics<parallel>], iteration_bounds = array<i64: 2>, scalar_prefetch = 0 : i64, scratch_operands = 0 : i64, tpu.core_type = #tpu.core_type<tc>, window_params = [{pipeline_mode = #tpu.pipeline_mode<synchronous>, transform_indices = @transform_0, window_bounds = array<i64: 200, 960>}, {transform_indices = @transform_1, window_bounds = array<i64: 960, 128>}, {transform_indices = @transform_2, window_bounds = array<i64: 5, 5, 128>}]} {
    %c0 = arith.constant 0 : index
    %c0_0 = arith.constant 0 : index
    %0 = vector.load %arg1[%c0, %c0_0] : memref<200x960xf32, #tpu.memory_space<vmem>>, vector<200x960xf32>
    %c0_1 = arith.constant 0 : index
    %c0_2 = arith.constant 0 : index
    %1 = vector.load %arg2[%c0_1, %c0_2] : memref<960x128xf32, #tpu.memory_space<vmem>>, vector<960x128xf32>
    %cst = arith.constant dense<0.000000e+00> : vector<200x128xf32>
    %2 = tpu.matmul %0, %1, %cst {dimension_numbers = #tpu.dot_dimension_numbers<[1], [0], [0], [1], [0, 0, 1, 1], [], []>} : vector<200x960xf32>, vector<960x128xf32>, vector<200x128xf32> -> vector<200x128xf32>
    %3 = vector.shape_cast %2 : vector<200x128xf32> to vector<5x5x8x128xf32>
    %cst_3 = arith.constant dense<0.000000e+00> : vector<5x5x128xf32>
    %4 = vector.multi_reduction <add>, %3, %cst_3 [2] : vector<5x5x8x128xf32> to vector<5x5x128xf32>
    %5 = vector.shape_cast %4 : vector<5x5x128xf32> to vector<5x5x1x128xf32>
    %cst_4 = arith.constant 2.000000e-01 : f32
    %6 = vector.broadcast %cst_4 : f32 to vector<5x5x1x128xf32>
    %7 = arith.mulf %5, %6 : vector<5x5x1x128xf32>
    %8 = arith.mulf %7, %7 : vector<5x5x1x128xf32>
    %cst_5 = arith.constant dense<0.000000e+00> : vector<5x1x128xf32>
    %9 = vector.multi_reduction <add>, %8, %cst_5 [1] : vector<5x5x1x128xf32> to vector<5x1x128xf32>
    %10 = vector.shape_cast %9 : vector<5x1x128xf32> to vector<5x1x1x128xf32>
    %cst_6 = arith.constant 1.000000e-07 : f32
    %11 = vector.broadcast %cst_6 : f32 to vector<5x1x1x128xf32>
    %12 = arith.addf %10, %11 : vector<5x1x1x128xf32>
    %13 = math.rsqrt %12 : vector<5x1x1x128xf32>
    %14 = vector.broadcast %13 : vector<5x1x1x128xf32> to vector<5x5x1x128xf32>
    %15 = arith.mulf %7, %14 : vector<5x5x1x128xf32>
    %16 = vector.broadcast %15 : vector<5x5x1x128xf32> to vector<5x5x8x128xf32>
    %17 = arith.mulf %16, %3 : vector<5x5x8x128xf32>
    %cst_7 = arith.constant dense<0.000000e+00> : vector<5x8x128xf32>
    %18 = vector.multi_reduction <add>, %17, %cst_7 [1] : vector<5x5x8x128xf32> to vector<5x8x128xf32>
    %19 = vector.shape_cast %18 : vector<5x8x128xf32> to vector<5x1x8x128xf32>
    %cst_8 = arith.constant dense<0xFF800000> : vector<1x8x128xf32>
    %20 = vector.multi_reduction <maximumf>, %19, %cst_8 [0] : vector<5x1x8x128xf32> to vector<1x8x128xf32>
    %21 = vector.shape_cast %20 : vector<1x8x128xf32> to vector<1x1x8x128xf32>
    %22 = vector.broadcast %21 : vector<1x1x8x128xf32> to vector<5x1x8x128xf32>
    %23 = arith.subf %19, %22 : vector<5x1x8x128xf32>
    %24 = math.exp %23 : vector<5x1x8x128xf32>
    %cst_9 = arith.constant dense<0.000000e+00> : vector<1x8x128xf32>
    %25 = vector.multi_reduction <add>, %24, %cst_9 [0] : vector<5x1x8x128xf32> to vector<1x8x128xf32>
    %26 = vector.shape_cast %25 : vector<1x8x128xf32> to vector<1x1x8x128xf32>
    %27 = vector.broadcast %26 : vector<1x1x8x128xf32> to vector<5x1x8x128xf32>
    %28 = arith.divf %24, %27 : vector<5x1x8x128xf32>
    %29 = vector.broadcast %28 : vector<5x1x8x128xf32> to vector<5x5x8x128xf32>
    %30 = arith.mulf %29, %3 : vector<5x5x8x128xf32>
    %cst_10 = arith.constant dense<0.000000e+00> : vector<5x5x128xf32>
    %31 = vector.multi_reduction <add>, %30, %cst_10 [2] : vector<5x5x8x128xf32> to vector<5x5x128xf32>
    %32 = vector.shape_cast %31 : vector<5x5x128xf32> to vector<5x5x1x128xf32>
    %33 = arith.mulf %32, %32 : vector<5x5x1x128xf32>
    %cst_11 = arith.constant dense<0.000000e+00> : vector<5x1x128xf32>
    %34 = vector.multi_reduction <add>, %33, %cst_11 [1] : vector<5x5x1x128xf32> to vector<5x1x128xf32>
    %35 = vector.shape_cast %34 : vector<5x1x128xf32> to vector<5x1x1x128xf32>
    %cst_12 = arith.constant 1.000000e-07 : f32
    %36 = vector.broadcast %cst_12 : f32 to vector<5x1x1x128xf32>
    %37 = arith.addf %35, %36 : vector<5x1x1x128xf32>
    %38 = math.rsqrt %37 : vector<5x1x1x128xf32>
    %39 = vector.broadcast %38 : vector<5x1x1x128xf32> to vector<5x5x1x128xf32>
    %40 = arith.mulf %32, %39 : vector<5x5x1x128xf32>
    %41 = vector.broadcast %40 : vector<5x5x1x128xf32> to vector<5x5x8x128xf32>
    %42 = arith.mulf %41, %3 : vector<5x5x8x128xf32>
    %cst_13 = arith.constant dense<0.000000e+00> : vector<5x8x128xf32>
    %43 = vector.multi_reduction <add>, %42, %cst_13 [1] : vector<5x5x8x128xf32> to vector<5x8x128xf32>
    %44 = vector.shape_cast %43 : vector<5x8x128xf32> to vector<5x1x8x128xf32>
    %cst_14 = arith.constant dense<0xFF800000> : vector<1x8x128xf32>
    %45 = vector.multi_reduction <maximumf>, %44, %cst_14 [0] : vector<5x1x8x128xf32> to vector<1x8x128xf32>
    %46 = vector.shape_cast %45 : vector<1x8x128xf32> to vector<1x1x8x128xf32>
    %47 = vector.broadcast %46 : vector<1x1x8x128xf32> to vector<5x1x8x128xf32>
    %48 = arith.subf %44, %47 : vector<5x1x8x128xf32>
    %49 = math.exp %48 : vector<5x1x8x128xf32>
    %cst_15 = arith.constant dense<0.000000e+00> : vector<1x8x128xf32>
    %50 = vector.multi_reduction <add>, %49, %cst_15 [0] : vector<5x1x8x128xf32> to vector<1x8x128xf32>
    %51 = vector.shape_cast %50 : vector<1x8x128xf32> to vector<1x1x8x128xf32>
    %52 = vector.broadcast %51 : vector<1x1x8x128xf32> to vector<5x1x8x128xf32>
    %53 = arith.divf %49, %52 : vector<5x1x8x128xf32>
    %54 = vector.broadcast %53 : vector<5x1x8x128xf32> to vector<5x5x8x128xf32>
    %55 = arith.mulf %54, %3 : vector<5x5x8x128xf32>
    %cst_16 = arith.constant dense<0.000000e+00> : vector<5x5x128xf32>
    %56 = vector.multi_reduction <add>, %55, %cst_16 [2] : vector<5x5x8x128xf32> to vector<5x5x128xf32>
    %57 = vector.shape_cast %56 : vector<5x5x128xf32> to vector<5x5x1x128xf32>
    %58 = arith.mulf %57, %57 : vector<5x5x1x128xf32>
    %cst_17 = arith.constant dense<0.000000e+00> : vector<5x1x128xf32>
    %59 = vector.multi_reduction <add>, %58, %cst_17 [1] : vector<5x5x1x128xf32> to vector<5x1x128xf32>
    %60 = vector.shape_cast %59 : vector<5x1x128xf32> to vector<5x1x1x128xf32>
    %cst_18 = arith.constant 1.000000e-07 : f32
    %61 = vector.broadcast %cst_18 : f32 to vector<5x1x1x128xf32>
    %62 = arith.addf %60, %61 : vector<5x1x1x128xf32>
    %63 = math.rsqrt %62 : vector<5x1x1x128xf32>
    %64 = vector.broadcast %63 : vector<5x1x1x128xf32> to vector<5x5x1x128xf32>
    %65 = arith.mulf %57, %64 : vector<5x5x1x128xf32>
    %66 = vector.broadcast %65 : vector<5x5x1x128xf32> to vector<5x5x8x128xf32>
    %67 = arith.mulf %66, %3 : vector<5x5x8x128xf32>
    %cst_19 = arith.constant dense<0.000000e+00> : vector<5x8x128xf32>
    %68 = vector.multi_reduction <add>, %67, %cst_19 [1] : vector<5x5x8x128xf32> to vector<5x8x128xf32>
    %69 = vector.shape_cast %68 : vector<5x8x128xf32> to vector<5x1x8x128xf32>
    %cst_20 = arith.constant dense<0xFF800000> : vector<1x8x128xf32>
    %70 = vector.multi_reduction <maximumf>, %69, %cst_20 [0] : vector<5x1x8x128xf32> to vector<1x8x128xf32>
    %71 = vector.shape_cast %70 : vector<1x8x128xf32> to vector<1x1x8x128xf32>
    %72 = vector.broadcast %71 : vector<1x1x8x128xf32> to vector<5x1x8x128xf32>
    %73 = arith.subf %69, %72 : vector<5x1x8x128xf32>
    %74 = math.exp %73 : vector<5x1x8x128xf32>
    %cst_21 = arith.constant dense<0.000000e+00> : vector<1x8x128xf32>
    %75 = vector.multi_reduction <add>, %74, %cst_21 [0] : vector<5x1x8x128xf32> to vector<1x8x128xf32>
    %76 = vector.shape_cast %75 : vector<1x8x128xf32> to vector<1x1x8x128xf32>
    %77 = vector.broadcast %76 : vector<1x1x8x128xf32> to vector<5x1x8x128xf32>
    %78 = arith.divf %74, %77 : vector<5x1x8x128xf32>
    %79 = vector.broadcast %78 : vector<5x1x8x128xf32> to vector<5x5x8x128xf32>
    %80 = arith.mulf %79, %3 : vector<5x5x8x128xf32>
    %cst_22 = arith.constant dense<0.000000e+00> : vector<5x5x128xf32>
    %81 = vector.multi_reduction <add>, %80, %cst_22 [2] : vector<5x5x8x128xf32> to vector<5x5x128xf32>
    %82 = vector.shape_cast %81 : vector<5x5x128xf32> to vector<5x5x1x128xf32>
    %83 = arith.mulf %82, %82 : vector<5x5x1x128xf32>
    %cst_23 = arith.constant dense<0.000000e+00> : vector<5x1x128xf32>
    %84 = vector.multi_reduction <add>, %83, %cst_23 [1] : vector<5x5x1x128xf32> to vector<5x1x128xf32>
    %85 = vector.shape_cast %84 : vector<5x1x128xf32> to vector<5x1x1x128xf32>
    %cst_24 = arith.constant 1.000000e-07 : f32
    %86 = vector.broadcast %cst_24 : f32 to vector<5x1x1x128xf32>
    %87 = arith.addf %85, %86 : vector<5x1x1x128xf32>
    %88 = math.rsqrt %87 : vector<5x1x1x128xf32>
    %89 = vector.broadcast %88 : vector<5x1x1x128xf32> to vector<5x5x1x128xf32>
    %90 = arith.mulf %82, %89 : vector<5x5x1x128xf32>
    %91 = vector.shape_cast %90 : vector<5x5x1x128xf32> to vector<5x5x128xf32>
    %c0_25 = arith.constant 0 : index
    %c0_26 = arith.constant 0 : index
    %c0_27 = arith.constant 0 : index
    %92 = vector.load %arg3[%c0_25, %c0_26, %c0_27] : memref<5x5x128xf32, #tpu.memory_space<vmem>>, vector<5x5x128xf32>
    tpu.vector_store %arg3[%c0_25, %c0_26, %c0_27], %91 {strides = array<i32>} : memref<5x5x128xf32, #tpu.memory_space<vmem>>, vector<5x5x128xf32>,
    return
  }
  func.func @transform_0(%arg0: i32) -> (i32, i32) {
    %c0_i32 = arith.constant 0 : i32
    %c0_i32_0 = arith.constant 0 : i32
    %c0_i32_1 = arith.constant 0 : i32
    return %c0_i32, %c0_i32_0 : i32, i32
  }
  func.func @transform_1(%arg0: i32) -> (i32, i32) {
    %c0_i32 = arith.constant 0 : i32
    %c0_i32_0 = arith.constant 0 : i32
    return %c0_i32, %arg0 : i32, i32
  }
  func.func @transform_2(%arg0: i32) -> (i32, i32, i32) {
    %c0_i32 = arith.constant 0 : i32
    %c0_i32_0 = arith.constant 0 : i32
    %c0_i32_1 = arith.constant 0 : i32
    return %c0_i32, %c0_i32_0, %arg0 : i32, i32, i32
  }
}

</mosaic_0001>

<bundles_post_ra>
// kernel: tpu_custom_call.1
= control target key start
LH: loop header
LB: loop body
LE: loop exit
PB: predicated region body
PF: predicated region fallthrough
CT: control target
= control target key end

     0   :  { %7 = vsyncpa [#allocation3], 0  ;;  %s4758_s0 = inlined_call_operand.hbm [shape: f32[200,960], index: 0, kind: input, shape index: {}]   ;;  %s4759_s1 = inlined_call_operand.hbm [shape: f32[960,256], index: 1, kind: input, shape index: {}]   ;;  %s4760_s2 = inlined_call_operand.hbm [shape: f32[5,5,256], index: 2, kind: output, shape index: {}]  }
   0x1   :  { %8 = vsyncpa [#allocation6], 0 }
   0x2   :  { %10 = vsyncpa [#allocation6 + $0x1], 0 }
   0x3   :  { %11 = vsyncpa [#allocation4], 0 }
   0x4   :  { %13 = vsyncpa [#allocation4 + $0x1], 0  ;;  %s3373_s9 = smov 0   ;;  %s3375_s10 = smov 0  }
   0x5   :  { %s3377_s11 = smov 0   ;;  %s3379_s12 = smov 0  }
   0x6 LB: > { %s3394_s13 = sadd.s32 4294967295, %s3344_s12   ;;  %s2731_s14 = sadd.s32 4294967294, %s3344_s12   ;;  %s3344_s12 = sphi %s3379_s12, %s4925_s12   ;;  %s3340_s11 = sphi %s3377_s11, %s4924_s11   ;;  %s3336_s10 = sphi %s3375_s10, %s4923_s10   ;;  %s3332_s9 = sphi %s3373_s9, %s4922_s9  }
   0x7   : > { %s3398_s15 = sadd.s32 1, %s3344_s12   ;;  %s47_s16 = sadd.s32 1, %s3340_s11 }
   0x8   : > { %s44_s17 = ssub.s32 %s3344_s12, %s3398_s15  ;;  %p54_p0 = scmp.ne.s32.totalorder %s3340_s11, %s3336_s10 }
   0x9   : > { %p45_p1 = scmp.eq.s32.totalorder %s44_s17, 0  ;;  %p55_p2 = scmp.eq.s32.totalorder %s3344_s12, 0 }
   0xa   : > { %p60_p3 = scmp.ne.s32.totalorder %s3336_s10, %s3332_s9  ;;  %p4761_p4 = scmp.eq.s32.totalorder %s3394_s13, 0 }
   0xb   : > { %s3410_s18 = scalar_select %p45_p1, %s3340_s11, %s47_s16  }
   0xc   : > { %p3412_p5 = por %p55_p2, %p54_p0  ;;  %p3418_p6 = por %p4761_p4, %p60_p3 }
   0xd   : > { %p84_p7 = scmp.eq.s32.totalorder %s3394_s13, 1  ;;  %p90_p8 = scmp.eq.s32.totalorder %s2731_s14, 1 }
   0xe   : > { %s4834_s19 = scalar_select %p3412_p5, 1, 0 }
   0xf   : > { %s4835_s20 = scalar_select %p3418_p6, 1, 0 }
  0x10   : > { %p2732_p9 = scmp.ge.s32.totalorder %s3344_s12, 1  ;;  %p97_p10 = scmp.lt.s32.totalorder %s3344_s12, 3 }
  0x11   : > { %p3425_p11 = por %p84_p7, %p54_p0  ;;  %p3429_p12 = por %p90_p8, %p60_p3 }
  0x12   : > { %p3433_p13 = pnand %p2732_p9, %p97_p10  ;;  %s3346_s24 = smov [#allocation2]  }
  0x13   : > { %s4836_s21 = scalar_select %p3425_p11, 1, 0 }
  0x14   : > { %s4837_s22 = scalar_select %p3429_p12, 1, 0 }
  0x15   : > { %s4838_s23 = scalar_select %p3433_p13, 1, 0 }
  0x16   : > { %p3082_p1 = pneg %p3433_p13  ;;  %s109_s25 = sshll.u32 %s3346_s24, 4  ;;  %s110_s25 = int_to_ptr.vmem [resolvable:$true] %s109_s25 }
  0x17   : > { %s123_s27 = sand.u32 1, %s3340_s11   ;;  %s3216_s30 = scalar_lea.hbm %s4758_s0, 25600 }
  0x18   : > { %p3441_p2 = pnand %p3082_p1, %p4761_p4  ;;  %p3217_p7 = scmp.ne.s32.totalorder %s4758_s0, %s3216_s30 }
  0x19   : > { %p3223_p1 = scmp.lt.u32.totalorder %s3216_s30, %s4758_s0 }
  0x1a   : > { %p3218_p8 = pneg %p3441_p2 }
  0x1c   : > { %p3219_p9 = pnand %p3218_p8, %p3217_p7 }
  0x1e   : > { %p3220_p10 = pneg %p3219_p9 }
  0x20   : > { %p3225_p4 = pnand %p3223_p1, %p3220_p10 }
  0x22   : > { %3228 = shalt.err (!%p3225_p4)
}
  0x23   : > { %s3229_s7 = scalar_lea.vmem %s110_s25, 25600  ;;  %p3237_p11 = scmp.lt.s32.totalorder %s110_s25, %s110_s25 }
  0x24   : > { %p3230_p0 = scmp.ne.s32.totalorder %s110_s25, %s3229_s7  ;;  %p3238_p6 = scmp.lt.s32.totalorder %s3229_s7, %s3229_s7 }
  0x26   : > { %p3232_p3 = pnand %p3230_p0, %p3218_p8  ;;  %p3239_p13 = por %p3238_p6, %p3237_p11 }
  0x28   : > { %p3233_p12 = pneg %p3232_p3 }
  0x2a   : > { %p3240_p5 = pnand %p3239_p13, %p3233_p12 }
  0x2c   : > { %3243 = shalt.err (!%p3240_p5)
}
  0x2d   : > { %s3347_s8 = smov 1024   ;;  %s3348_s14 = smov 64  }
  0x2e   : > { %3085 = dma.hbm_to_vmem [thread:$0]  (!%p3441_p2), %s4758_s0, 25600, %s110_s25, [#allocation3], %s3347_s8, %s3347_s8, %s3348_s14  }
  0x2f   : > { %p4840_p4 = scmp.ne.s32.totalorder %s4834_s19, 0  ;;  %p4841_p7 = scmp.lt.s32.totalorder %s3344_s12, 2 }
  0x30   : > { %s3071_s28 = smul.u32 960, %s123_s27  ;;  %s2735_s29 = sshll.u32 %s3344_s12, 7 }
  0x31   : > { %p3468_p0 = pnand %p4841_p7, %p4840_p4  ;;  %s3476_s4 = scalar_lea.hbm %s4759_s1, %s2735_s29 }
  0x32   : > { %s127_s25 = scalar_lea.vmem [#allocation5], %s3071_s28  ;;  %s3480_s26 = scalar_lea.sflag [#allocation6], %s123_s27 }
  0x33   : > { %s133_s19 = sshll.u32 %s127_s25, 4  ;;  %s3244_s5 = scalar_lea.hbm %s3476_s4, 15360  ;;  %s3478_s19 = int_to_ptr.vmem [resolvable:$true] %s133_s19 }
  0x34   : > { %p3245_p5 = scmp.ne.s32.totalorder %s3476_s4, %s3244_s5  ;;  %p3246_p6 = pneg %p3468_p0 }
  0x35   : > { %s3249_s8 = scalar_lea.hbm %s4759_s1, 30720  ;;  %p3250_p13 = scmp.lt.u32.totalorder %s3476_s4, %s4759_s1 }
  0x36   : > { %p3247_p11 = pnand %p3246_p6, %p3245_p5  ;;  %p3251_p2 = scmp.lt.u32.totalorder %s3249_s8, %s3244_s5 }
  0x37   : > { %p3253_p8 = scmp.lt.u32.totalorder %s3244_s5, %s3476_s4 }
  0x38   : > { %p3248_p12 = pneg %p3247_p11  ;;  %p3252_p3 = por %p3251_p2, %p3250_p13 }
  0x3a   : > { %p3254_p9 = por %p3253_p8, %p3252_p3 }
  0x3c   : > { %p3255_p10 = pnand %p3254_p9, %p3248_p12 }
  0x3e   : > { %3258 = shalt.err (!%p3255_p10)
}
  0x3f   : > { %s3259_s27 = scalar_lea.vmem %s3478_s19, 15360  ;;  %s3349_s17 = smov [#allocation5]  }
  0x40   : > { %p3260_p1 = scmp.ne.s32.totalorder %s3478_s19, %s3259_s27  ;;  %s3264_s28 = sshll.u32 %s3349_s17, 4  ;;  %s3265_s28 = int_to_ptr.vmem [resolvable:$false] %s3264_s28 }
  0x41   : > { %s3266_s29 = scalar_lea.vmem %s3265_s28, 30720  ;;  %p3267_p5 = scmp.lt.s32.totalorder %s3478_s19, %s3265_s28 }
  0x42   : > { %p3262_p4 = pnand %p3260_p1, %p3246_p6  ;;  %p3268_p11 = scmp.lt.s32.totalorder %s3266_s29, %s3259_s27 }
  0x44   : > { %p3263_p7 = pneg %p3262_p4  ;;  %p3269_p13 = por %p3268_p11, %p3267_p5 }
  0x46   : > { %p3270_p2 = pnand %p3269_p13, %p3263_p7 }
  0x48   : > { %3273 = shalt.err (!%p3270_p2)
}
  0x49   : > { %s3350_s30 = smov 256   ;;  %s3351_s3 = smov 128  }
  0x4a   : > { %s3352_s25 = smov 8   ;;  %p4843_p6 = scmp.ne.s32.totalorder %s4838_s23, 0 }
  0x4b   : > { %3089 = dma.hbm_to_vmem [thread:$0]  (!%p3468_p0), %s3476_s4, 15360, %s3478_s19, %s3480_s26, %s3350_s30, %s3351_s3, %s3352_s25  }
  0x4c   : > { %145 = sbr.rel (%p4843_p6) target bundleno = 1013 (0x3f5), region = 28 }
  0x53   : > { %p4844_p12 = scmp.eq.s32.totalorder %s3394_s13, 0 }
  0x55   : > { %3319 = dma.done.wait (%p4844_p12), [#allocation3], 25600   ;;  %p4845_p3 = pmov %p4844_p12 }
  0x56   : > { %s3515_s5 = sand.u32 1, %s3336_s10   ;;  %p4846_p0 = scmp.ne.s32.totalorder %s4835_s20, 0 }
  0x57   : > { %3321 = vsyncadd (%p4845_p3), [#allocation3], 4294941696  ;;  %s3072_s6 = smul.u32 960, %s3515_s5  ;;  %s152_s7 = scalar_lea.sflag [#allocation6], %s3515_s5 }
  0x59   : > { %s3519_s8 = scalar_lea.vmem [#allocation5], %s3072_s6 }
  0x5a   : > { %3323 = dma.done.wait (%p4846_p0), %s152_s7, 15360  }
  0x5b   : > { %3325 = vsyncadd (%p4846_p0), %s152_s7, 4294951936  ;;  %v3353_v0 = vmov 0.0|0.0   ;;  %v376_v1 = vld [vmem:[%s3519_s8] sm:$0xff]  ;;  %v377_v2 = vld [vmem:[%s3519_s8 + $0x8] sm:$0xff]  ;;  %vm496_vm0 = vcmask 523264   ;;  %vm2599_vm1 = vcmask 1041409  }
  0x5c   : > { %2766 = vmatprep.subr.bf16.mxu1 %v3353_v0  ;;  %2862 = vmatprep.subr.bf16.mxu0 %v3353_v0  ;;  %v440_v3 = vld [vmem:[%s3519_s8 + $0x200] sm:$0xff]  ;;  %v2767_v4 = vpack.c.bf16 %v377_v2, %v376_v1  ;;  %v441_v5 = vld [vmem:[%s3519_s8 + $0x208] sm:$0xff]  ;;  %v378_v6 = vld [vmem:[%s3519_s8 + $0x10] sm:$0xff]  ;;  %vm2601_vm2 = vcmask 1042434   ;;  %vm2603_vm3 = vcmask 1043459   ;;  %vm2605_vm4 = vcmask 1044484  }
  0x5d   : > { %v379_v7 = vld [vmem:[%s3519_s8 + $0x18] sm:$0xff]  ;;  %v2863_v8 = vpack.c.bf16 %v441_v5, %v440_v3  ;;  %v442_v9 = vld [vmem:[%s3519_s8 + $0x210] sm:$0xff]  ;;  %v380_v13 = vld [vmem:[%s3519_s8 + $0x20] sm:$0xff]  ;;  %s3073_s20 = smul.u32 40, %s3515_s5  ;;  %s2763_s24 = sshll.u32 %s3394_s13, 7 }
  0x5e   : > { %v443_v10 = vld [vmem:[%s3519_s8 + $0x218] sm:$0xff]  ;;  %2768 = vmatpush1.bf16.msra.mxu1 %v2767_v4  ;;  %v2770_v11 = vpack.c.bf16 %v379_v7, %v378_v6  ;;  %v381_v14 = vld [vmem:[%s3519_s8 + $0x28] sm:$0xff]  ;;  %v444_v15 = vld [vmem:[%s3519_s8 + $0x220] sm:$0xff]  ;;  %s4699_s26 = scalar_lea.hbm %s4760_s2, %s2763_s24  ;;  %s2634_s14 = scalar_lea.sflag [#allocation4], %s3515_s5 }
  0x5f   : > { %2864 = vmatpush1.bf16.msra.mxu0 %v2863_v8  ;;  %2769 = vmatprep.subr.bf16.mxu1 %v3353_v0  ;;  %v2866_v12 = vpack.c.bf16 %v443_v10, %v442_v9  ;;  %v445_v16 = vld [vmem:[%s3519_s8 + $0x228] sm:$0xff]  ;;  %v2773_v17 = vpack.c.bf16 %v381_v14, %v380_v13  ;;  %v382_v19 = vld [vmem:[%s3519_s8 + $0x30] sm:$0xff]  ;;  %v383_v20 = vld [vmem:[%s3519_s8 + $0x38] sm:$0xff]  ;;  %s4665_s23 = scalar_lea.vmem [#allocation7], %s3073_s20  ;;  %p4919_p9 = scmp.ne.s32.totalorder %s4836_s21, 0 }
  0x60   : > { %2865 = vmatprep.subr.bf16.mxu0 %v3353_v0  ;;  %v2869_v18 = vpack.c.bf16 %v445_v16, %v444_v15  ;;  %v446_v21 = vld [vmem:[%s3519_s8 + $0x230] sm:$0xff]  ;;  %v447_v22 = vld [vmem:[%s3519_s8 + $0x238] sm:$0xff]  ;;  %v2776_v23 = vpack.c.bf16 %v383_v20, %v382_v19  ;;  %v384_v25 = vld [vmem:[%s3519_s8 + $0x40] sm:$0xff]  ;;  %s2646_s4 = sshll.u32 %s4665_s23, 4  ;;  %s3354_s27 = smov [#allocation7]   ;;  %s4705_s4 = int_to_ptr.vmem [resolvable:$true] %s2646_s4 }
  0x61   : > { %v2872_v24 = vpack.c.bf16 %v447_v22, %v446_v21  ;;  %v385_v26 = vld [vmem:[%s3519_s8 + $0x48] sm:$0xff]  ;;  %v448_v27 = vld [vmem:[%s3519_s8 + $0x240] sm:$0xff]  ;;  %v386_v31 = vld [vmem:[%s3519_s8 + $0x50] sm:$0xff]  ;;  %s3274_s16 = scalar_lea.vmem %s4705_s4, 640  ;;  %s3278_s17 = sshll.u32 %s3354_s27, 4  ;;  %s3279_s17 = int_to_ptr.vmem [resolvable:$false] %s3278_s17 }
  0x62   : > { %2771 = vmatpush1.bf16.msra.mxu1 %v2770_v11  ;;  %v449_v28 = vld [vmem:[%s3519_s8 + $0x248] sm:$0xff]  ;;  %v2779_v29 = vpack.c.bf16 %v385_v26, %v384_v25  ;;  %v387_v32 = vld [vmem:[%s3519_s8 + $0x58] sm:$0xff]  ;;  %v450_v33 = vld [vmem:[%s3519_s8 + $0x250] sm:$0xff]  ;;  %p3275_p8 = scmp.ne.s32.totalorder %s4705_s4, %s3274_s16  ;;  %s3280_s28 = scalar_lea.vmem %s3279_s17, 1280 }
  0x63   : > { %2867 = vmatpush1.bf16.msra.mxu0 %v2866_v12  ;;  %2772 = vmatprep.subr.bf16.mxu1 %v3353_v0  ;;  %v2875_v30 = vpack.c.bf16 %v449_v28, %v448_v27  ;;  %v451_v34 = vld [vmem:[%s3519_s8 + $0x258] sm:$0xff]  ;;  %v2782_v35 = vpack.c.bf16 %v387_v32, %v386_v31  ;;  %v388_v37 = vld [vmem:[%s3519_s8 + $0x60] sm:$0xff]  ;;  %v389_v38 = vld [vmem:[%s3519_s8 + $0x68] sm:$0xff]  ;;  %p3281_p4 = scmp.lt.s32.totalorder %s4705_s4, %s3279_s17  ;;  %p3282_p7 = scmp.lt.s32.totalorder %s3280_s28, %s3274_s16 }
  0x64   : > { %2868 = vmatprep.subr.bf16.mxu0 %v3353_v0  ;;  %v2878_v36 = vpack.c.bf16 %v451_v34, %v450_v33  ;;  %v452_v39 = vld [vmem:[%s3519_s8 + $0x260] sm:$0xff]  ;;  %v453_v40 = vld [vmem:[%s3519_s8 + $0x268] sm:$0xff]  ;;  %v2785_v43 = vpack.c.bf16 %v389_v38, %v388_v37  ;;  %v390_v45 = vld [vmem:[%s3519_s8 + $0x70] sm:$0xff]  ;;  %p3276_p10 = pnand %p3275_p8, %p4919_p9 }
  0x65   : > { %v177_v41 = vld [vmem:[#allocation2 + $0x8] sm:$0xff]  ;;  %v2881_v44 = vpack.c.bf16 %v453_v40, %v452_v39  ;;  %v391_v46 = vld [vmem:[%s3519_s8 + $0x78] sm:$0xff]  ;;  %v454_v47 = vld [vmem:[%s3519_s8 + $0x270] sm:$0xff]  ;;  %p3283_p5 = por %p3282_p7, %p3281_p4 }
  0x66   : > { %2774 = vmatpush1.bf16.msra.mxu1 %v2773_v17  ;;  %v181_v42 = vld [vmem:[#allocation2 + $0x28] sm:$0xff]  ;;  %636 = vmatprep.mubr.f32.mxu1 %v177_v41  ;;  %v455_v48 = vld [vmem:[%s3519_s8 + $0x278] sm:$0xff]  ;;  %v2788_v49 = vpack.c.bf16 %v391_v46, %v390_v45  ;;  %v392_v51 = vld [vmem:[%s3519_s8 + $0x80] sm:$0xff]  ;;  %p3277_p1 = pneg %p3276_p10 }
  0x67   : > { %2870 = vmatpush1.bf16.msra.mxu0 %v2869_v18  ;;  %2775 = vmatprep.subr.bf16.mxu1 %v3353_v0  ;;  %v2884_v50 = vpack.c.bf16 %v455_v48, %v454_v47  ;;  %v393_v52 = vld [vmem:[%s3519_s8 + $0x88] sm:$0xff]  ;;  %v456_v53 = vld [vmem:[%s3519_s8 + $0x280] sm:$0xff]  ;;  %v394_v57 = vld [vmem:[%s3519_s8 + $0x90] sm:$0xff] }
  0x68   : > { %2871 = vmatprep.subr.bf16.mxu0 %v3353_v0  ;;  %1016 = vmatprep.mubr.f32.mxu0 %v181_v42  ;;  %v457_v54 = vld [vmem:[%s3519_s8 + $0x288] sm:$0xff]  ;;  %v2791_v55 = vpack.c.bf16 %v393_v52, %v392_v51  ;;  %v395_v58 = vld [vmem:[%s3519_s8 + $0x98] sm:$0xff]  ;;  %v458_v59 = vld [vmem:[%s3519_s8 + $0x290] sm:$0xff]  ;;  %p3284_p11 = pnand %p3283_p5, %p3277_p1 }
  0x69   : > { %v2887_v56 = vpack.c.bf16 %v457_v54, %v456_v53  ;;  %v459_v60 = vld [vmem:[%s3519_s8 + $0x298] sm:$0xff]  ;;  %v2794_v61 = vpack.c.bf16 %v395_v58, %v394_v57  ;;  %v396_v63 = vld [vmem:[%s3519_s8 + $0xa0] sm:$0xff]  ;;  %v397_v1 = vld [vmem:[%s3519_s8 + $0xa8] sm:$0xff] }
  0x6a   : > { %2777 = vmatpush1.bf16.msra.mxu1 %v2776_v23  ;;  %v2890_v62 = vpack.c.bf16 %v459_v60, %v458_v59  ;;  %v460_v2 = vld [vmem:[%s3519_s8 + $0x2a0] sm:$0xff]  ;;  %v461_v3 = vld [vmem:[%s3519_s8 + $0x2a8] sm:$0xff]  ;;  %v2797_v4 = vpack.c.bf16 %v397_v1, %v396_v63  ;;  %v398_v6 = vld [vmem:[%s3519_s8 + $0xb0] sm:$0xff] }
  0x6b   : > { %2873 = vmatpush1.bf16.msra.mxu0 %v2872_v24  ;;  %2778 = vmatprep.subr.bf16.mxu1 %v3353_v0  ;;  %v2893_v5 = vpack.c.bf16 %v461_v3, %v460_v2  ;;  %v399_v7 = vld [vmem:[%s3519_s8 + $0xb8] sm:$0xff]  ;;  %v462_v8 = vld [vmem:[%s3519_s8 + $0x2b0] sm:$0xff]  ;;  %v400_v12 = vld [vmem:[%s3519_s8 + $0xc0] sm:$0xff] }
  0x6c   : > { %2874 = vmatprep.subr.bf16.mxu0 %v3353_v0  ;;  %v463_v9 = vld [vmem:[%s3519_s8 + $0x2b8] sm:$0xff]  ;;  %v2800_v10 = vpack.c.bf16 %v399_v7, %v398_v6  ;;  %v401_v13 = vld [vmem:[%s3519_s8 + $0xc8] sm:$0xff]  ;;  %v464_v14 = vld [vmem:[%s3519_s8 + $0x2c0] sm:$0xff] }
  0x6d   : > { %v2896_v11 = vpack.c.bf16 %v463_v9, %v462_v8  ;;  %v465_v15 = vld [vmem:[%s3519_s8 + $0x2c8] sm:$0xff]  ;;  %v2803_v16 = vpack.c.bf16 %v401_v13, %v400_v12  ;;  %v402_v18 = vld [vmem:[%s3519_s8 + $0xd0] sm:$0xff]  ;;  %v403_v19 = vld [vmem:[%s3519_s8 + $0xd8] sm:$0xff] }
  0x6e   : > { %2780 = vmatpush1.bf16.msra.mxu1 %v2779_v29  ;;  %v2899_v17 = vpack.c.bf16 %v465_v15, %v464_v14  ;;  %v466_v20 = vld [vmem:[%s3519_s8 + $0x2d0] sm:$0xff]  ;;  %v467_v21 = vld [vmem:[%s3519_s8 + $0x2d8] sm:$0xff]  ;;  %v2806_v22 = vpack.c.bf16 %v403_v19, %v402_v18  ;;  %v404_v24 = vld [vmem:[%s3519_s8 + $0xe0] sm:$0xff] }
  0x6f   : > { %2876 = vmatpush1.bf16.msra.mxu0 %v2875_v30  ;;  %2781 = vmatprep.subr.bf16.mxu1 %v3353_v0  ;;  %v2902_v23 = vpack.c.bf16 %v467_v21, %v466_v20  ;;  %v405_v25 = vld [vmem:[%s3519_s8 + $0xe8] sm:$0xff]  ;;  %v468_v26 = vld [vmem:[%s3519_s8 + $0x2e0] sm:$0xff]  ;;  %v406_v30 = vld [vmem:[%s3519_s8 + $0xf0] sm:$0xff] }
  0x70   : > { %2877 = vmatprep.subr.bf16.mxu0 %v3353_v0  ;;  %v469_v27 = vld [vmem:[%s3519_s8 + $0x2e8] sm:$0xff]  ;;  %v2809_v28 = vpack.c.bf16 %v405_v25, %v404_v24  ;;  %v407_v31 = vld [vmem:[%s3519_s8 + $0xf8] sm:$0xff]  ;;  %v470_v32 = vld [vmem:[%s3519_s8 + $0x2f0] sm:$0xff] }
  0x71   : > { %v2905_v29 = vpack.c.bf16 %v469_v27, %v468_v26  ;;  %v471_v33 = vld [vmem:[%s3519_s8 + $0x2f8] sm:$0xff]  ;;  %v2812_v34 = vpack.c.bf16 %v407_v31, %v406_v30  ;;  %v409_v37 = vld [vmem:[%s3519_s8 + $0x108] sm:$0xff]  ;;  %v472_v38 = vld [vmem:[%s3519_s8 + $0x300] sm:$0xff] }
  0x72   : > { %2783 = vmatpush1.bf16.msra.mxu1 %v2782_v35  ;;  %v2908_v35 = vpack.c.bf16 %v471_v33, %v470_v32  ;;  %v473_v39 = vld [vmem:[%s3519_s8 + $0x308] sm:$0xff]  ;;  %v176_v40 = vld [vmem:[#allocation2] sm:$0xff]  ;;  %v410_v45 = vld [vmem:[%s3519_s8 + $0x110] sm:$0xff] }
  0x73   : > { %2879 = vmatpush1.bf16.msra.mxu0 %v2878_v36  ;;  %2784 = vmatprep.subr.bf16.mxu1 %v3353_v0  ;;  %v408_v36 = vld [vmem:[%s3519_s8 + $0x100] sm:$0xff]  ;;  %v411_v46 = vld [vmem:[%s3519_s8 + $0x118] sm:$0xff]  ;;  %v189_v47 = vld [vmem:[#allocation2 + $0x68] sm:$0xff] }
  0x74   : > { %2880 = vmatprep.subr.bf16.mxu0 %v3353_v0  ;;  %v2815_v41 = vpack.c.bf16 %v409_v37, %v408_v36  ;;  %v180_v42 = vld [vmem:[#allocation2 + $0x20] sm:$0xff]  ;;  %v474_v48 = vld [vmem:[%s3519_s8 + $0x310] sm:$0xff]  ;;  %v193_v52 = vld [vmem:[#allocation2 + $0x88] sm:$0xff]  ;;  %v2818_v53 = vpack.c.bf16 %v411_v46, %v410_v45 }
  0x75   : > { %v188_v51 = vld [vmem:[#allocation2 + $0x60] sm:$0xff]  ;;  %v197_v54 = vld [vmem:[#allocation2 + $0xa8] sm:$0xff]  ;;  %v414_v3 = vld [vmem:[%s3519_s8 + $0x130] sm:$0xff] }
  0x76   : > { %2786 = vmatpush1.bf16.msra.mxu1 %v2785_v43  ;;  %v2911_v43 = vpack.c.bf16 %v473_v39, %v472_v38  ;;  %v413_v57 = vld [vmem:[%s3519_s8 + $0x128] sm:$0xff]  ;;  %v476_v58 = vld [vmem:[%s3519_s8 + $0x320] sm:$0xff]  ;;  %v479_v6 = vld [vmem:[%s3519_s8 + $0x338] sm:$0xff] }
  0x77   : > { %2882 = vmatpush1.bf16.msra.mxu0 %v2881_v44  ;;  %2787 = vmatprep.subr.bf16.mxu1 %v3353_v0  ;;  %v185_v44 = vld [vmem:[#allocation2 + $0x48] sm:$0xff]  ;;  %v192_v60 = vld [vmem:[#allocation2 + $0x80] sm:$0xff]  ;;  %v482_v25 = vld [vmem:[%s3519_s8 + $0x350] sm:$0xff] }
  0x78   : > { %2883 = vmatprep.subr.bf16.mxu0 %v3353_v0  ;;  %v477_v59 = vld [vmem:[%s3519_s8 + $0x328] sm:$0xff]  ;;  %v200_v7 = vld [vmem:[#allocation2 + $0xc0] sm:$0xff]  ;;  %v483_v26 = vld [vmem:[%s3519_s8 + $0x358] sm:$0xff] }
  0x79   : > { %v205_v1 = vld [vmem:[#allocation2 + $0xe8] sm:$0xff]  ;;  %v2917_v2 = vpack.c.bf16 %v477_v59, %v476_v58  ;;  %v204_v8 = vld [vmem:[#allocation2 + $0xe0] sm:$0xff]  ;;  %v486_v45 = vld [vmem:[%s3519_s8 + $0x370] sm:$0xff] }
  0x7a   : > { %2789 = vmatpush1.bf16.msra.mxu1 %v2788_v49  ;;  %v475_v49 = vld [vmem:[%s3519_s8 + $0x318] sm:$0xff]  ;;  %v209_v9 = vld [vmem:[#allocation2 + $0x108] sm:$0xff]  ;;  %v416_v12 = vld [vmem:[%s3519_s8 + $0x140] sm:$0xff] }
  0x7b   : > { %2885 = vmatpush1.bf16.msra.mxu0 %v2884_v50  ;;  %2790 = vmatprep.subr.bf16.mxu1 %v3353_v0  ;;  %v184_v50 = vld [vmem:[#allocation2 + $0x40] sm:$0xff]  ;;  %v417_v13 = vld [vmem:[%s3519_s8 + $0x148] sm:$0xff]  ;;  %v487_v46 = vld [vmem:[%s3519_s8 + $0x378] sm:$0xff] }
  0x7c   : > { %2886 = vmatprep.subr.bf16.mxu0 %v3353_v0  ;;  %v480_v15 = vld [vmem:[%s3519_s8 + $0x340] sm:$0xff]  ;;  %v217_v19 = vld [vmem:[#allocation2 + $0x148] sm:$0xff]  ;;  %v2827_v20 = vpack.c.bf16 %v417_v13, %v416_v12 }
  0x7d   : > { %v212_v18 = vld [vmem:[#allocation2 + $0x120] sm:$0xff]  ;;  %v221_v21 = vld [vmem:[#allocation2 + $0x168] sm:$0xff] }
  0x7e   : > { %2792 = vmatpush1.bf16.msra.mxu1 %v2791_v55  ;;  %v2914_v55 = vpack.c.bf16 %v475_v49, %v474_v48  ;;  %v216_v27 = vld [vmem:[#allocation2 + $0x140] sm:$0xff]  ;;  %v229_v31 = vld [vmem:[#allocation2 + $0x1a8] sm:$0xff] }
  0x7f   : > { %2888 = vmatpush1.bf16.msra.mxu0 %v2887_v56  ;;  %2793 = vmatprep.subr.bf16.mxu1 %v3353_v0  ;;  %v412_v56 = vld [vmem:[%s3519_s8 + $0x120] sm:$0xff]  ;;  %v421_v33 = vld [vmem:[%s3519_s8 + $0x168] sm:$0xff] }
  0x80   : > { %2889 = vmatprep.subr.bf16.mxu0 %v3353_v0  ;;  %v2821_v63 = vpack.c.bf16 %v413_v57, %v412_v56  ;;  %v420_v32 = vld [vmem:[%s3519_s8 + $0x160] sm:$0xff]  ;;  %v485_v36 = vld [vmem:[%s3519_s8 + $0x368] sm:$0xff] }
  0x81   : > { %v224_v37 = vld [vmem:[#allocation2 + $0x180] sm:$0xff]  ;;  %v233_v39 = vld [vmem:[#allocation2 + $0x1c8] sm:$0xff] }
  0x82   : > { %2795 = vmatpush1.bf16.msra.mxu1 %v2794_v61  ;;  %v196_v61 = vld [vmem:[#allocation2 + $0xa0] sm:$0xff]  ;;  %v241_v49 = vld [vmem:[#allocation2 + $0x208] sm:$0xff] }
  0x83   : > { %2891 = vmatpush1.bf16.msra.mxu0 %v2890_v62  ;;  %2796 = vmatprep.subr.bf16.mxu1 %v3353_v0  ;;  %v201_v62 = vld [vmem:[#allocation2 + $0xc8] sm:$0xff]  ;;  %v228_v38 = vld [vmem:[#allocation2 + $0x1a0] sm:$0xff] }
  0x84   : > { %2892 = vmatprep.subr.bf16.mxu0 %v3353_v0  ;;  %v236_v48 = vld [vmem:[#allocation2 + $0x1e0] sm:$0xff]  ;;  %v489_v56 = vld [vmem:[%s3519_s8 + $0x388] sm:$0xff] }
  0x85   : > { %v240_v57 = vld [vmem:[#allocation2 + $0x200] sm:$0xff]  ;;  %v249_v59 = vld [vmem:[#allocation2 + $0x248] sm:$0xff] }
  0x86   : > { %2798 = vmatpush1.bf16.msra.mxu1 %v2797_v4  ;;  %v415_v4 = vld [vmem:[%s3519_s8 + $0x138] sm:$0xff]  ;;  %v244_v58 = vld [vmem:[#allocation2 + $0x220] sm:$0xff]  ;;  %v493_v13 = vld [vmem:[%s3519_s8 + $0x3a8] sm:$0xff] }
  0x87   : > { %2894 = vmatpush1.bf16.msra.mxu0 %v2893_v5  ;;  %2799 = vmatprep.subr.bf16.mxu1 %v3353_v0  ;;  %v478_v5 = vld [vmem:[%s3519_s8 + $0x330] sm:$0xff]  ;;  %v492_v12 = vld [vmem:[%s3519_s8 + $0x3a0] sm:$0xff] }
  0x88   : > { %2895 = vmatprep.subr.bf16.mxu0 %v3353_v0  ;;  %v2920_v14 = vpack.c.bf16 %v479_v6, %v478_v5  ;;  %v252_v5 = vld [vmem:[#allocation2 + $0x260] sm:$0xff]  ;;  %v257_v6 = vld [vmem:[#allocation2 + $0x288] sm:$0xff] }
  0x8a   : > { %2801 = vmatpush1.bf16.msra.mxu1 %v2800_v10  ;;  %v2824_v10 = vpack.c.bf16 %v415_v4, %v414_v3  ;;  %v491_v3 = vld [vmem:[%s3519_s8 + $0x398] sm:$0xff]  ;;  %v248_v4 = vld [vmem:[#allocation2 + $0x240] sm:$0xff] }
  0x8b   : > { %2897 = vmatpush1.bf16.msra.mxu0 %v2896_v11  ;;  %2802 = vmatprep.subr.bf16.mxu1 %v3353_v0  ;;  %v213_v11 = vld [vmem:[#allocation2 + $0x128] sm:$0xff] }
  0x8c   : > { %2898 = vmatprep.subr.bf16.mxu0 %v3353_v0 }
  0x8e   : > { %2804 = vmatpush1.bf16.msra.mxu1 %v2803_v16  ;;  %v481_v16 = vld [vmem:[%s3519_s8 + $0x348] sm:$0xff] }
  0x8f   : > { %2900 = vmatpush1.bf16.msra.mxu0 %v2899_v17  ;;  %2805 = vmatprep.subr.bf16.mxu1 %v3353_v0  ;;  %v208_v17 = vld [vmem:[#allocation2 + $0x100] sm:$0xff]  ;;  %v2923_v24 = vpack.c.bf16 %v481_v16, %v480_v15  ;;  %v265_v16 = vld [vmem:[#allocation2 + $0x2c8] sm:$0xff] }
  0x90   : > { %2901 = vmatprep.subr.bf16.mxu0 %v3353_v0  ;;  %v260_v15 = vld [vmem:[#allocation2 + $0x2a0] sm:$0xff] }
  0x92   : > { %2807 = vmatpush1.bf16.msra.mxu1 %v2806_v22  ;;  %v418_v22 = vld [vmem:[%s3519_s8 + $0x150] sm:$0xff] }
  0x93   : > { %2903 = vmatpush1.bf16.msra.mxu0 %v2902_v23  ;;  %2808 = vmatprep.subr.bf16.mxu1 %v3353_v0  ;;  %v419_v23 = vld [vmem:[%s3519_s8 + $0x158] sm:$0xff] }
  0x94   : > { %2904 = vmatprep.subr.bf16.mxu0 %v3353_v0  ;;  %v2830_v30 = vpack.c.bf16 %v419_v23, %v418_v22  ;;  %v494_v22 = vld [vmem:[%s3519_s8 + $0x3b0] sm:$0xff]  ;;  %v495_v23 = vld [vmem:[%s3519_s8 + $0x3b8] sm:$0xff] }
  0x96   : > { %2810 = vmatpush1.bf16.msra.mxu1 %v2809_v28  ;;  %v220_v28 = vld [vmem:[#allocation2 + $0x160] sm:$0xff] }
  0x97   : > { %2906 = vmatpush1.bf16.msra.mxu0 %v2905_v29  ;;  %2811 = vmatprep.subr.bf16.mxu1 %v3353_v0  ;;  %v225_v29 = vld [vmem:[#allocation2 + $0x188] sm:$0xff] }
  0x98   : > { %2907 = vmatprep.subr.bf16.mxu0 %v3353_v0 }
  0x9a   : > { %2813 = vmatpush1.bf16.msra.mxu1 %v2812_v34  ;;  %v2926_v34 = vpack.c.bf16 %v483_v26, %v482_v25  ;;  %v268_v25 = vld [vmem:[#allocation2 + $0x2e0] sm:$0xff]  ;;  %v273_v26 = vld [vmem:[#allocation2 + $0x308] sm:$0xff] }
  0x9b   : > { %2909 = vmatpush1.bf16.msra.mxu0 %v2908_v35  ;;  %2814 = vmatprep.subr.bf16.mxu1 %v3353_v0  ;;  %v484_v35 = vld [vmem:[%s3519_s8 + $0x360] sm:$0xff] }
  0x9c   : > { %2910 = vmatprep.subr.bf16.mxu0 %v3353_v0 }
  0x9d   : > { %637 = vmatmul.mubr.f32.vlgmr.msra.gmra.mrb[0].mxu1 %v176_v40  ;;  %v2833_v40 = vpack.c.bf16 %v421_v33, %v420_v32  ;;  %v272_v32 = vld [vmem:[#allocation2 + $0x300] sm:$0xff] }
  0x9e   : > { %1017 = vmatmul.mubr.f32.vlgmr.msra.gmra.mrb[0].mxu0 %v180_v42  ;;  %2816 = vmatpush1.bf16.msra.mxu1 %v2815_v41  ;;  %v237_v41 = vld [vmem:[#allocation2 + $0x1e8] sm:$0xff]  ;;  %v422_v42 = vld [vmem:[%s3519_s8 + $0x170] sm:$0xff]  ;;  %v276_v33 = vld [vmem:[#allocation2 + $0x320] sm:$0xff] }
  0x9f   : > { %2912 = vmatpush1.bf16.msra.mxu0 %v2911_v43  ;;  %641 = vmatprep.mubr.f32.mxu1 %v185_v44  ;;  %v423_v43 = vld [vmem:[%s3519_s8 + $0x178] sm:$0xff]  ;;  %v2929_v44 = vpack.c.bf16 %v485_v36, %v484_v35  ;;  %v285_v36 = vld [vmem:[#allocation2 + $0x368] sm:$0xff] }
  0xa0   : > { %1021 = vmatprep.mubr.f32.mxu0 %v189_v47  ;;  %2817 = vmatprep.subr.bf16.mxu1 %v3353_v0  ;;  %v232_v47 = vld [vmem:[#allocation2 + $0x1c0] sm:$0xff] }
  0xa1   : > { %642 = vmatmul.mubr.f32.gmra.mrb[2].mxu1 %v184_v50  ;;  %2913 = vmatprep.subr.bf16.mxu0 %v3353_v0  ;;  %v2836_v50 = vpack.c.bf16 %v423_v43, %v422_v42  ;;  %v293_v43 = vld [vmem:[#allocation2 + $0x3a8] sm:$0xff] }
  0xa2   : > { %1022 = vmatmul.mubr.f32.gmra.mrb[2].mxu0 %v188_v51  ;;  %646 = vmatprep.mubr.f32.mxu1 %v193_v52  ;;  %v245_v51 = vld [vmem:[#allocation2 + $0x228] sm:$0xff]  ;;  %v424_v52 = vld [vmem:[%s3519_s8 + $0x180] sm:$0xff] }
  0xa3   : > { %1026 = vmatprep.mubr.f32.mxu0 %v197_v54  ;;  %2819 = vmatpush1.bf16.msra.mxu1 %v2818_v53  ;;  %v425_v53 = vld [vmem:[%s3519_s8 + $0x188] sm:$0xff]  ;;  %v2932_v54 = vpack.c.bf16 %v487_v46, %v486_v45  ;;  %v288_v46 = vld [vmem:[#allocation2 + $0x380] sm:$0xff] }
  0xa4   : > { %2915 = vmatpush1.bf16.msra.mxu0 %v2914_v55  ;;  %2820 = vmatprep.subr.bf16.mxu1 %v3353_v0  ;;  %v488_v55 = vld [vmem:[%s3519_s8 + $0x380] sm:$0xff]  ;;  %v437_v45 = vld [vmem:[%s3519_s8 + $0x1e8] sm:$0xff] }
  0xa5   : > { %647 = vmatmul.mubr.f32.gmra.mrb[4].mxu1 %v192_v60  ;;  %2916 = vmatprep.subr.bf16.mxu0 %v3353_v0  ;;  %v2839_v60 = vpack.c.bf16 %v425_v53, %v424_v52  ;;  %v439_v52 = vld [vmem:[%s3519_s8 + $0x1f8] sm:$0xff]  ;;  %v296_v53 = vld [vmem:[#allocation2 + $0x3c0] sm:$0xff] }
  0xa6   : > { %1027 = vmatmul.mubr.f32.gmra.mrb[4].mxu0 %v196_v61  ;;  %651 = vmatprep.mubr.f32.mxu1 %v201_v62  ;;  %v253_v61 = vld [vmem:[#allocation2 + $0x268] sm:$0xff]  ;;  %v426_v62 = vld [vmem:[%s3519_s8 + $0x190] sm:$0xff] }
  0xa7   : > { %1031 = vmatprep.mubr.f32.mxu0 %v205_v1  ;;  %2822 = vmatpush1.bf16.msra.mxu1 %v2821_v63  ;;  %v427_v63 = vld [vmem:[%s3519_s8 + $0x198] sm:$0xff]  ;;  %v2935_v1 = vpack.c.bf16 %v489_v56, %v488_v55  ;;  %v305_v55 = vld [vmem:[#allocation2 + $0x408] sm:$0xff] }
  0xa8   : > { %2918 = vmatpush1.bf16.msra.mxu0 %v2917_v2  ;;  %2823 = vmatprep.subr.bf16.mxu1 %v3353_v0  ;;  %v490_v2 = vld [vmem:[%s3519_s8 + $0x390] sm:$0xff] }
  0xa9   : > { %652 = vmatmul.mubr.f32.gmra.mrb[6].mxu1 %v200_v7  ;;  %2919 = vmatprep.subr.bf16.mxu0 %v3353_v0  ;;  %v2842_v7 = vpack.c.bf16 %v427_v63, %v426_v62  ;;  %v312_v62 = vld [vmem:[#allocation2 + $0x440] sm:$0xff] }
  0xaa   : > { %1032 = vmatmul.mubr.f32.gmra.mrb[6].mxu0 %v204_v8  ;;  %656 = vmatprep.mubr.f32.mxu1 %v209_v9  ;;  %v261_v8 = vld [vmem:[#allocation2 + $0x2a8] sm:$0xff]  ;;  %v428_v9 = vld [vmem:[%s3519_s8 + $0x1a0] sm:$0xff] }
  0xab   : > { %1036 = vmatprep.mubr.f32.mxu0 %v213_v11  ;;  %2825 = vmatpush1.bf16.msra.mxu1 %v2824_v10  ;;  %v429_v10 = vld [vmem:[%s3519_s8 + $0x1a8] sm:$0xff]  ;;  %v2938_v11 = vpack.c.bf16 %v491_v3, %v490_v2  ;;  %v316_v63 = vld [vmem:[#allocation2 + $0x460] sm:$0xff] }
  0xac   : > { %2826 = vmatprep.subr.bf16.mxu1 %v3353_v0  ;;  %2921 = vmatpush1.bf16.msra.mxu0 %v2920_v14  ;;  %v256_v14 = vld [vmem:[#allocation2 + $0x280] sm:$0xff]  ;;  %v325_v2 = vld [vmem:[#allocation2 + $0x4a8] sm:$0xff] }
  0xad   : > { %657 = vmatmul.mubr.f32.gmra.mrb[8].mxu1 %v208_v17  ;;  %2922 = vmatprep.subr.bf16.mxu0 %v3353_v0  ;;  %v2845_v17 = vpack.c.bf16 %v429_v10, %v428_v9  ;;  %v324_v3 = vld [vmem:[#allocation2 + $0x4a0] sm:$0xff]  ;;  %v341_v9 = vld [vmem:[#allocation2 + $0x528] sm:$0xff] }
  0xae   : > { %1037 = vmatmul.mubr.f32.gmra.mrb[8].mxu0 %v212_v18  ;;  %661 = vmatprep.mubr.f32.mxu1 %v217_v19  ;;  %v269_v18 = vld [vmem:[#allocation2 + $0x2e8] sm:$0xff]  ;;  %v430_v19 = vld [vmem:[%s3519_s8 + $0x1b0] sm:$0xff]  ;;  %v336_v10 = vld [vmem:[#allocation2 + $0x500] sm:$0xff] }
  0xaf   : > { %1041 = vmatprep.mubr.f32.mxu0 %v221_v21  ;;  %2828 = vmatpush1.bf16.msra.mxu1 %v2827_v20  ;;  %v431_v20 = vld [vmem:[%s3519_s8 + $0x1b8] sm:$0xff]  ;;  %v2941_v21 = vpack.c.bf16 %v493_v13, %v492_v12  ;;  %v345_v12 = vld [vmem:[#allocation2 + $0x548] sm:$0xff] }
  0xb0   : > { %2829 = vmatprep.subr.bf16.mxu1 %v3353_v0  ;;  %2924 = vmatpush1.bf16.msra.mxu0 %v2923_v24  ;;  %v264_v24 = vld [vmem:[#allocation2 + $0x2c0] sm:$0xff]  ;;  %v349_v13 = vld [vmem:[#allocation2 + $0x568] sm:$0xff] }
  0xb1   : > { %662 = vmatmul.mubr.f32.gmra.mrb[10].mxu1 %v216_v27  ;;  %2925 = vmatprep.subr.bf16.mxu0 %v3353_v0  ;;  %v2848_v27 = vpack.c.bf16 %v431_v20, %v430_v19  ;;  %v356_v19 = vld [vmem:[#allocation2 + $0x5a0] sm:$0xff]  ;;  %v361_v20 = vld [vmem:[#allocation2 + $0x5c8] sm:$0xff] }
  0xb2   : > { %1042 = vmatmul.mubr.f32.gmra.mrb[10].mxu0 %v220_v28  ;;  %666 = vmatprep.mubr.f32.mxu1 %v225_v29  ;;  %v277_v28 = vld [vmem:[#allocation2 + $0x328] sm:$0xff]  ;;  %v432_v29 = vld [vmem:[%s3519_s8 + $0x1c0] sm:$0xff] }
  0xb3   : > { %1046 = vmatprep.mubr.f32.mxu0 %v229_v31  ;;  %2831 = vmatpush1.bf16.msra.mxu1 %v2830_v30  ;;  %v433_v30 = vld [vmem:[%s3519_s8 + $0x1c8] sm:$0xff]  ;;  %v2944_v31 = vpack.c.bf16 %v495_v23, %v494_v22  ;;  %v360_v22 = vld [vmem:[#allocation2 + $0x5c0] sm:$0xff] }
  0xb4   : > { %2832 = vmatprep.subr.bf16.mxu1 %v3353_v0  ;;  %2927 = vmatpush1.bf16.msra.mxu0 %v2926_v34  ;;  %v281_v34 = vld [vmem:[#allocation2 + $0x348] sm:$0xff]  ;;  %v2851_v35 = vpack.c.bf16 %v433_v30, %v432_v29  ;;  %v364_v23 = vld [vmem:[#allocation2 + $0x5e0] sm:$0xff]  ;;  %v183_v29 = vld [vmem:[#allocation2 + $0x38] sm:$0xff] }
  0xb5   : > { %667 = vmatmul.mubr.f32.gmra.mrb[12].mxu1 %v224_v37  ;;  %2928 = vmatprep.subr.bf16.mxu0 %v3353_v0  ;;  %v434_v37 = vld [vmem:[%s3519_s8 + $0x1d0] sm:$0xff] }
  0xb6   : > { %1047 = vmatmul.mubr.f32.gmra.mrb[12].mxu0 %v228_v38  ;;  %671 = vmatprep.mubr.f32.mxu1 %v233_v39  ;;  %v435_v38 = vld [vmem:[%s3519_s8 + $0x1d8] sm:$0xff]  ;;  %v280_v39 = vld [vmem:[#allocation2 + $0x340] sm:$0xff]  ;;  %v178_v30 = vld [vmem:[#allocation2 + $0x10] sm:$0xff] }
  0xb7   : > { %1051 = vmatprep.mubr.f32.mxu0 %v237_v41  ;;  %2834 = vmatpush1.bf16.msra.mxu1 %v2833_v40  ;;  %v284_v40 = vld [vmem:[#allocation2 + $0x360] sm:$0xff]  ;;  %v289_v41 = vld [vmem:[#allocation2 + $0x388] sm:$0xff]  ;;  %v2854_v42 = vpack.c.bf16 %v435_v38, %v434_v37  ;;  %v199_v37 = vld [vmem:[#allocation2 + $0xb8] sm:$0xff] }
  0xb8   : > { %2835 = vmatprep.subr.bf16.mxu1 %v3353_v0  ;;  %2930 = vmatpush1.bf16.msra.mxu0 %v2929_v44  ;;  %v436_v44 = vld [vmem:[%s3519_s8 + $0x1e0] sm:$0xff]  ;;  %v194_v38 = vld [vmem:[#allocation2 + $0x90] sm:$0xff] }
  0xb9   : > { %672 = vmatmul.mubr.f32.gmra.mrb[14].mxu1 %v232_v47  ;;  %2931 = vmatprep.subr.bf16.mxu0 %v3353_v0  ;;  %v292_v47 = vld [vmem:[#allocation2 + $0x3a0] sm:$0xff] }
  0xba   : > { %1052 = vmatmul.mubr.f32.gmra.mrb[14].mxu0 %v236_v48  ;;  %676 = vmatprep.mubr.f32.mxu1 %v241_v49  ;;  %v297_v48 = vld [vmem:[#allocation2 + $0x3c8] sm:$0xff]  ;;  %v2857_v49 = vpack.c.bf16 %v437_v45, %v436_v44  ;;  %v211_v44 = vld [vmem:[#allocation2 + $0x118] sm:$0xff] }
  0xbb   : > { %1056 = vmatprep.mubr.f32.mxu0 %v245_v51  ;;  %2837 = vmatpush1.bf16.msra.mxu1 %v2836_v50  ;;  %v301_v50 = vld [vmem:[#allocation2 + $0x3e8] sm:$0xff]  ;;  %v438_v51 = vld [vmem:[%s3519_s8 + $0x1f0] sm:$0xff]  ;;  %v215_v45 = vld [vmem:[#allocation2 + $0x138] sm:$0xff] }
  0xbc   : > { %2838 = vmatprep.subr.bf16.mxu1 %v3353_v0  ;;  %2933 = vmatpush1.bf16.msra.mxu0 %v2932_v54  ;;  %v300_v54 = vld [vmem:[#allocation2 + $0x3e0] sm:$0xff]  ;;  %v2860_v56 = vpack.c.bf16 %v439_v52, %v438_v51  ;;  %v222_v51 = vld [vmem:[#allocation2 + $0x170] sm:$0xff]  ;;  %v227_v52 = vld [vmem:[#allocation2 + $0x198] sm:$0xff] }
  0xbd   : > { %677 = vmatmul.mubr.f32.gmra.mrb[16].mxu1 %v240_v57  ;;  %2934 = vmatprep.subr.bf16.mxu0 %v3353_v0  ;;  %v309_v57 = vld [vmem:[#allocation2 + $0x428] sm:$0xff] }
  0xbe   : > { %1057 = vmatmul.mubr.f32.gmra.mrb[16].mxu0 %v244_v58  ;;  %681 = vmatprep.mubr.f32.mxu1 %v249_v59  ;;  %v304_v58 = vld [vmem:[#allocation2 + $0x400] sm:$0xff] }
  0xbf   : > { %1061 = vmatprep.mubr.f32.mxu0 %v253_v61  ;;  %2840 = vmatpush1.bf16.msra.mxu1 %v2839_v60  ;;  %v308_v59 = vld [vmem:[#allocation2 + $0x420] sm:$0xff]  ;;  %v313_v60 = vld [vmem:[#allocation2 + $0x448] sm:$0xff] }
  0xc0   : > { %2841 = vmatprep.subr.bf16.mxu1 %v3353_v0  ;;  %2936 = vmatpush1.bf16.msra.mxu0 %v2935_v1  ;;  %v317_v61 = vld [vmem:[#allocation2 + $0x468] sm:$0xff] }
  0xc1   : > { %682 = vmatmul.mubr.f32.gmra.mrb[18].mxu1 %v248_v4  ;;  %2937 = vmatprep.subr.bf16.mxu0 %v3353_v0  ;;  %v321_v1 = vld [vmem:[#allocation2 + $0x488] sm:$0xff] }
  0xc2   : > { %1062 = vmatmul.mubr.f32.gmra.mrb[18].mxu0 %v252_v5  ;;  %686 = vmatprep.mubr.f32.mxu1 %v257_v6  ;;  %v329_v4 = vld [vmem:[#allocation2 + $0x4c8] sm:$0xff]  ;;  %v328_v6 = vld [vmem:[#allocation2 + $0x4c0] sm:$0xff] }
  0xc3   : > { %1066 = vmatprep.mubr.f32.mxu0 %v261_v8  ;;  %2843 = vmatpush1.bf16.msra.mxu1 %v2842_v7  ;;  %v333_v5 = vld [vmem:[#allocation2 + $0x4e8] sm:$0xff]  ;;  %v332_v7 = vld [vmem:[#allocation2 + $0x4e0] sm:$0xff] }
  0xc4   : > { %2844 = vmatprep.subr.bf16.mxu1 %v3353_v0  ;;  %2939 = vmatpush1.bf16.msra.mxu0 %v2938_v11  ;;  %v337_v8 = vld [vmem:[#allocation2 + $0x508] sm:$0xff]  ;;  %v340_v11 = vld [vmem:[#allocation2 + $0x520] sm:$0xff] }
  0xc5   : > { %687 = vmatmul.mubr.f32.gmra.mrb[20].mxu1 %v256_v14  ;;  %2940 = vmatprep.subr.bf16.mxu0 %v3353_v0  ;;  %v344_v14 = vld [vmem:[#allocation2 + $0x540] sm:$0xff] }
  0xc6   : > { %1067 = vmatmul.mubr.f32.gmra.mrb[20].mxu0 %v260_v15  ;;  %691 = vmatprep.mubr.f32.mxu1 %v265_v16  ;;  %v348_v15 = vld [vmem:[#allocation2 + $0x560] sm:$0xff]  ;;  %v353_v16 = vld [vmem:[#allocation2 + $0x588] sm:$0xff] }
  0xc7   : > { %1071 = vmatprep.mubr.f32.mxu0 %v269_v18  ;;  %2846 = vmatpush1.bf16.msra.mxu1 %v2845_v17  ;;  %v357_v17 = vld [vmem:[#allocation2 + $0x5a8] sm:$0xff]  ;;  %v352_v18 = vld [vmem:[#allocation2 + $0x580] sm:$0xff] }
  0xc8   : > { %2847 = vmatprep.subr.bf16.mxu1 %v3353_v0  ;;  %2942 = vmatpush1.bf16.msra.mxu0 %v2941_v21  ;;  %v365_v21 = vld [vmem:[#allocation2 + $0x5e8] sm:$0xff] }
  0xc9   : > { %692 = vmatmul.mubr.f32.gmra.mrb[22].mxu1 %v264_v24  ;;  %2943 = vmatprep.subr.bf16.mxu0 %v3353_v0  ;;  %v369_v24 = vld [vmem:[#allocation2 + $0x608] sm:$0xff] }
  0xca   : > { %1072 = vmatmul.mubr.f32.gmra.mrb[22].mxu0 %v268_v25  ;;  %696 = vmatprep.mubr.f32.mxu1 %v273_v26  ;;  %v373_v25 = vld [vmem:[#allocation2 + $0x628] sm:$0xff]  ;;  %v368_v26 = vld [vmem:[#allocation2 + $0x600] sm:$0xff] }
  0xcb   : > { %1076 = vmatprep.mubr.f32.mxu0 %v277_v28  ;;  %2849 = vmatpush1.bf16.msra.mxu1 %v2848_v27  ;;  %v372_v27 = vld [vmem:[#allocation2 + $0x620] sm:$0xff]  ;;  %v179_v28 = vld [vmem:[#allocation2 + $0x18] sm:$0xff] }
  0xcc   : > { %2850 = vmatprep.subr.bf16.mxu1 %v3353_v0  ;;  %2945 = vmatpush1.bf16.msra.mxu0 %v2944_v31  ;;  %v182_v31 = vld [vmem:[#allocation2 + $0x30] sm:$0xff] }
  0xcd   : > { %697 = vmatmul.mubr.f32.gmra.mrb[24].mxu1 %v272_v32  ;;  %v187_v32 = vld [vmem:[#allocation2 + $0x58] sm:$0xff] }
  0xce   : > { %1077 = vmatmul.mubr.f32.gmra.mrb[24].mxu0 %v276_v33  ;;  %701 = vmatprep.mubr.f32.mxu1 %v281_v34  ;;  %v191_v33 = vld [vmem:[#allocation2 + $0x78] sm:$0xff]  ;;  %v186_v34 = vld [vmem:[#allocation2 + $0x50] sm:$0xff] }
  0xcf   : > { %1081 = vmatprep.mubr.f32.mxu0 %v285_v36  ;;  %2852 = vmatpush1.bf16.msra.mxu1 %v2851_v35  ;;  %v190_v35 = vld [vmem:[#allocation2 + $0x70] sm:$0xff]  ;;  %v195_v36 = vld [vmem:[#allocation2 + $0x98] sm:$0xff] }
  0xd0   : > { %2853 = vmatprep.subr.bf16.mxu1 %v3353_v0 }
  0xd1   : > { %702 = vmatmul.mubr.f32.gmra.mrb[26].mxu1 %v280_v39  ;;  %v198_v39 = vld [vmem:[#allocation2 + $0xb0] sm:$0xff] }
  0xd2   : > { %1082 = vmatmul.mubr.f32.gmra.mrb[26].mxu0 %v284_v40  ;;  %706 = vmatprep.mubr.f32.mxu1 %v289_v41  ;;  %v203_v40 = vld [vmem:[#allocation2 + $0xd8] sm:$0xff] }
  0xd3   : > { %1086 = vmatprep.mubr.f32.mxu0 %v293_v43  ;;  %2855 = vmatpush1.bf16.msra.mxu1 %v2854_v42  ;;  %v207_v41 = vld [vmem:[#allocation2 + $0xf8] sm:$0xff]  ;;  %v202_v42 = vld [vmem:[#allocation2 + $0xd0] sm:$0xff] }
  0xd4   : > { %2856 = vmatprep.subr.bf16.mxu1 %v3353_v0  ;;  %v206_v43 = vld [vmem:[#allocation2 + $0xf0] sm:$0xff] }
  0xd5   : > { %707 = vmatmul.mubr.f32.gmra.mrb[28].mxu1 %v288_v46  ;;  %v210_v46 = vld [vmem:[#allocation2 + $0x110] sm:$0xff] }
  0xd6   : > { %1087 = vmatmul.mubr.f32.gmra.mrb[28].mxu0 %v292_v47  ;;  %711 = vmatprep.mubr.f32.mxu1 %v297_v48  ;;  %v214_v47 = vld [vmem:[#allocation2 + $0x130] sm:$0xff]  ;;  %v219_v48 = vld [vmem:[#allocation2 + $0x158] sm:$0xff] }
  0xd7   : > { %1091 = vmatprep.mubr.f32.mxu0 %v301_v50  ;;  %2858 = vmatpush1.bf16.msra.mxu1 %v2857_v49  ;;  %v223_v49 = vld [vmem:[#allocation2 + $0x178] sm:$0xff]  ;;  %v218_v50 = vld [vmem:[#allocation2 + $0x150] sm:$0xff] }
  0xd8   : > { %2859 = vmatprep.subr.bf16.mxu1 %v3353_v0  ;;  %v320_v0 = vld [vmem:[#allocation2 + $0x480] sm:$0xff] }
  0xd9   : > { %712 = vmatmul.mubr.f32.gmra.mrb[30].mxu1 %v296_v53  ;;  %v231_v53 = vld [vmem:[#allocation2 + $0x1b8] sm:$0xff] }
  0xda   : > { %1092 = vmatmul.mubr.f32.gmra.mrb[30].mxu0 %v300_v54  ;;  %716 = vmatprep.mubr.f32.mxu1 %v305_v55  ;;  %v226_v54 = vld [vmem:[#allocation2 + $0x190] sm:$0xff] }
  0xdb   : > { %1096 = vmatprep.mubr.f32.mxu0 %v309_v57  ;;  %2861 = vmatpush1.bf16.msra.mxu1 %v2860_v56  ;;  %v230_v55 = vld [vmem:[#allocation2 + $0x1b0] sm:$0xff]  ;;  %v235_v56 = vld [vmem:[#allocation2 + $0x1d8] sm:$0xff] }
  0xdc   : > { %v239_v57 = vld [vmem:[#allocation2 + $0x1f8] sm:$0xff] }
  0xdd   : > { %717 = vmatmul.mubr.f32.gmra.mrb[32].mxu1 %v304_v58  ;;  %v234_v58 = vld [vmem:[#allocation2 + $0x1d0] sm:$0xff] }
  0xde   : > { %1097 = vmatmul.mubr.f32.gmra.mrb[32].mxu0 %v308_v59  ;;  %721 = vmatprep.mubr.f32.mxu1 %v313_v60  ;;  %v238_v59 = vld [vmem:[#allocation2 + $0x1f0] sm:$0xff]  ;;  %v243_v60 = vld [vmem:[#allocation2 + $0x218] sm:$0xff] }
  0xdf   : > { %1101 = vmatprep.mubr.f32.mxu0 %v317_v61  ;;  %v247_v61 = vld [vmem:[#allocation2 + $0x238] sm:$0xff] }
  0xe1   : > { %722 = vmatmul.mubr.f32.gmra.mrb[34].mxu1 %v312_v62  ;;  %v242_v62 = vld [vmem:[#allocation2 + $0x210] sm:$0xff] }
  0xe2   : > { %1102 = vmatmul.mubr.f32.gmra.mrb[34].mxu0 %v316_v63  ;;  %726 = vmatprep.mubr.f32.mxu1 %v321_v1  ;;  %v246_v63 = vld [vmem:[#allocation2 + $0x230] sm:$0xff]  ;;  %v251_v1 = vld [vmem:[#allocation2 + $0x258] sm:$0xff] }
  0xe3   : > { %1106 = vmatprep.mubr.f32.mxu0 %v325_v2  ;;  %v255_v2 = vld [vmem:[#allocation2 + $0x278] sm:$0xff] }
  0xe5   : > { %727 = vmatmul.mubr.f32.gmra.mrb[36].mxu1 %v320_v0  ;;  %v250_v0 = vld [vmem:[#allocation2 + $0x250] sm:$0xff] }
  0xe6   : > { %1107 = vmatmul.mubr.f32.gmra.mrb[36].mxu0 %v324_v3  ;;  %731 = vmatprep.mubr.f32.mxu1 %v329_v4  ;;  %v254_v3 = vld [vmem:[#allocation2 + $0x270] sm:$0xff]  ;;  %v259_v4 = vld [vmem:[#allocation2 + $0x298] sm:$0xff] }
  0xe7   : > { %1111 = vmatprep.mubr.f32.mxu0 %v333_v5  ;;  %v263_v5 = vld [vmem:[#allocation2 + $0x2b8] sm:$0xff] }
  0xe9   : > { %732 = vmatmul.mubr.f32.gmra.mrb[38].mxu1 %v328_v6  ;;  %v258_v6 = vld [vmem:[#allocation2 + $0x290] sm:$0xff] }
  0xea   : > { %1112 = vmatmul.mubr.f32.gmra.mrb[38].mxu0 %v332_v7  ;;  %736 = vmatprep.mubr.f32.mxu1 %v337_v8  ;;  %v262_v7 = vld [vmem:[#allocation2 + $0x2b0] sm:$0xff]  ;;  %v267_v8 = vld [vmem:[#allocation2 + $0x2d8] sm:$0xff] }
  0xeb   : > { %1116 = vmatprep.mubr.f32.mxu0 %v341_v9  ;;  %v271_v9 = vld [vmem:[#allocation2 + $0x2f8] sm:$0xff] }
  0xed   : > { %737 = vmatmul.mubr.f32.gmra.mrb[40].mxu1 %v336_v10  ;;  %v266_v10 = vld [vmem:[#allocation2 + $0x2d0] sm:$0xff] }
  0xee   : > { %1117 = vmatmul.mubr.f32.gmra.mrb[40].mxu0 %v340_v11  ;;  %741 = vmatprep.mubr.f32.mxu1 %v345_v12  ;;  %v270_v11 = vld [vmem:[#allocation2 + $0x2f0] sm:$0xff]  ;;  %v275_v12 = vld [vmem:[#allocation2 + $0x318] sm:$0xff] }
  0xef   : > { %1121 = vmatprep.mubr.f32.mxu0 %v349_v13  ;;  %v279_v13 = vld [vmem:[#allocation2 + $0x338] sm:$0xff] }
  0xf1   : > { %742 = vmatmul.mubr.f32.gmra.mrb[42].mxu1 %v344_v14  ;;  %v274_v14 = vld [vmem:[#allocation2 + $0x310] sm:$0xff] }
  0xf2   : > { %1122 = vmatmul.mubr.f32.gmra.mrb[42].mxu0 %v348_v15  ;;  %746 = vmatprep.mubr.f32.mxu1 %v353_v16  ;;  %v278_v15 = vld [vmem:[#allocation2 + $0x330] sm:$0xff]  ;;  %v283_v16 = vld [vmem:[#allocation2 + $0x358] sm:$0xff] }
  0xf3   : > { %1126 = vmatprep.mubr.f32.mxu0 %v357_v17  ;;  %v287_v17 = vld [vmem:[#allocation2 + $0x378] sm:$0xff] }
  0xf5   : > { %747 = vmatmul.mubr.f32.gmra.mrb[44].mxu1 %v352_v18  ;;  %v282_v18 = vld [vmem:[#allocation2 + $0x350] sm:$0xff] }
  0xf6   : > { %1127 = vmatmul.mubr.f32.gmra.mrb[44].mxu0 %v356_v19  ;;  %751 = vmatprep.mubr.f32.mxu1 %v361_v20  ;;  %v286_v19 = vld [vmem:[#allocation2 + $0x370] sm:$0xff]  ;;  %v291_v20 = vld [vmem:[#allocation2 + $0x398] sm:$0xff] }
  0xf7   : > { %1131 = vmatprep.mubr.f32.mxu0 %v365_v21  ;;  %v295_v21 = vld [vmem:[#allocation2 + $0x3b8] sm:$0xff] }
  0xf9   : > { %752 = vmatmul.mubr.f32.gmra.mrb[46].mxu1 %v360_v22  ;;  %v290_v22 = vld [vmem:[#allocation2 + $0x390] sm:$0xff] }
  0xfa   : > { %1132 = vmatmul.mubr.f32.gmra.mrb[46].mxu0 %v364_v23  ;;  %756 = vmatprep.mubr.f32.mxu1 %v369_v24  ;;  %v294_v23 = vld [vmem:[#allocation2 + $0x3b0] sm:$0xff]  ;;  %v299_v24 = vld [vmem:[#allocation2 + $0x3d8] sm:$0xff] }
  0xfb   : > { %1136 = vmatprep.mubr.f32.mxu0 %v373_v25  ;;  %v303_v25 = vld [vmem:[#allocation2 + $0x3f8] sm:$0xff] }
  0xfd   : > { %757 = vmatmul.mubr.f32.gmra.mrb[48].mxu1 %v368_v26  ;;  %v298_v26 = vld [vmem:[#allocation2 + $0x3d0] sm:$0xff] }
  0xfe   : > { %1137 = vmatmul.mubr.f32.gmra.mrb[48].mxu0 %v372_v27  ;;  %826 = vmatprep.mubr.f32.mxu1 %v179_v28  ;;  %v302_v27 = vld [vmem:[#allocation2 + $0x3f0] sm:$0xff]  ;;  %v307_v28 = vld [vmem:[#allocation2 + $0x418] sm:$0xff] }
  0xff   : > { %2738 = vmatprep.mubr.msk.f32.mxu0 %vm496_vm0, %v183_v29  ;;  %v311_v29 = vld [vmem:[#allocation2 + $0x438] sm:$0xff] }
 0x101   : > { %827 = vmatmul.mubr.f32.vlgmr.msra.gmra.mrb[0].mxu1 %v178_v30  ;;  %v306_v30 = vld [vmem:[#allocation2 + $0x410] sm:$0xff] }
 0x102   : > { %1207 = vmatmul.mubr.f32.vlgmr.msra.gmra.mrb[0].mxu0 %v182_v31  ;;  %831 = vmatprep.mubr.f32.mxu1 %v187_v32  ;;  %v310_v31 = vld [vmem:[#allocation2 + $0x430] sm:$0xff]  ;;  %v315_v32 = vld [vmem:[#allocation2 + $0x458] sm:$0xff] }
 0x103   : > { %2739 = vmatprep.mubr.msk.f32.mxu0 %vm496_vm0, %v191_v33  ;;  %v319_v33 = vld [vmem:[#allocation2 + $0x478] sm:$0xff] }
 0x105   : > { %832 = vmatmul.mubr.f32.gmra.mrb[2].mxu1 %v186_v34  ;;  %v314_v34 = vld [vmem:[#allocation2 + $0x450] sm:$0xff] }
 0x106   : > { %1212 = vmatmul.mubr.f32.gmra.mrb[2].mxu0 %v190_v35  ;;  %836 = vmatprep.mubr.f32.mxu1 %v195_v36  ;;  %v318_v35 = vld [vmem:[#allocation2 + $0x470] sm:$0xff]  ;;  %v323_v36 = vld [vmem:[#allocation2 + $0x498] sm:$0xff] }
 0x107   : > { %2740 = vmatprep.mubr.msk.f32.mxu0 %vm496_vm0, %v199_v37  ;;  %v327_v37 = vld [vmem:[#allocation2 + $0x4b8] sm:$0xff] }
 0x109   : > { %837 = vmatmul.mubr.f32.gmra.mrb[4].mxu1 %v194_v38  ;;  %v322_v38 = vld [vmem:[#allocation2 + $0x490] sm:$0xff] }
 0x10a   : > { %1217 = vmatmul.mubr.f32.gmra.mrb[4].mxu0 %v198_v39  ;;  %841 = vmatprep.mubr.f32.mxu1 %v203_v40  ;;  %v326_v39 = vld [vmem:[#allocation2 + $0x4b0] sm:$0xff]  ;;  %v331_v40 = vld [vmem:[#allocation2 + $0x4d8] sm:$0xff] }
 0x10b   : > { %2741 = vmatprep.mubr.msk.f32.mxu0 %vm496_vm0, %v207_v41  ;;  %v335_v41 = vld [vmem:[#allocation2 + $0x4f8] sm:$0xff] }
 0x10d   : > { %842 = vmatmul.mubr.f32.gmra.mrb[6].mxu1 %v202_v42  ;;  %v330_v42 = vld [vmem:[#allocation2 + $0x4d0] sm:$0xff] }
 0x10e   : > { %1222 = vmatmul.mubr.f32.gmra.mrb[6].mxu0 %v206_v43  ;;  %846 = vmatprep.mubr.f32.mxu1 %v211_v44  ;;  %v334_v43 = vld [vmem:[#allocation2 + $0x4f0] sm:$0xff]  ;;  %v339_v44 = vld [vmem:[#allocation2 + $0x518] sm:$0xff] }
 0x10f   : > { %2742 = vmatprep.mubr.msk.f32.mxu0 %vm496_vm0, %v215_v45  ;;  %v343_v45 = vld [vmem:[#allocation2 + $0x538] sm:$0xff] }
 0x111   : > { %847 = vmatmul.mubr.f32.gmra.mrb[8].mxu1 %v210_v46  ;;  %v338_v46 = vld [vmem:[#allocation2 + $0x510] sm:$0xff] }
 0x112   : > { %1227 = vmatmul.mubr.f32.gmra.mrb[8].mxu0 %v214_v47  ;;  %851 = vmatprep.mubr.f32.mxu1 %v219_v48  ;;  %v342_v47 = vld [vmem:[#allocation2 + $0x530] sm:$0xff]  ;;  %v347_v48 = vld [vmem:[#allocation2 + $0x558] sm:$0xff] }
 0x113   : > { %2743 = vmatprep.mubr.msk.f32.mxu0 %vm496_vm0, %v223_v49  ;;  %v351_v49 = vld [vmem:[#allocation2 + $0x578] sm:$0xff] }
 0x115   : > { %852 = vmatmul.mubr.f32.gmra.mrb[10].mxu1 %v218_v50  ;;  %v346_v50 = vld [vmem:[#allocation2 + $0x550] sm:$0xff] }
 0x116   : > { %1232 = vmatmul.mubr.f32.gmra.mrb[10].mxu0 %v222_v51  ;;  %856 = vmatprep.mubr.f32.mxu1 %v227_v52  ;;  %v350_v51 = vld [vmem:[#allocation2 + $0x570] sm:$0xff]  ;;  %v355_v52 = vld [vmem:[#allocation2 + $0x598] sm:$0xff] }
 0x117   : > { %2744 = vmatprep.mubr.msk.f32.mxu0 %vm496_vm0, %v231_v53  ;;  %v359_v53 = vld [vmem:[#allocation2 + $0x5b8] sm:$0xff] }
 0x119   : > { %857 = vmatmul.mubr.f32.gmra.mrb[12].mxu1 %v226_v54  ;;  %v354_v54 = vld [vmem:[#allocation2 + $0x590] sm:$0xff] }
 0x11a   : > { %1237 = vmatmul.mubr.f32.gmra.mrb[12].mxu0 %v230_v55  ;;  %861 = vmatprep.mubr.f32.mxu1 %v235_v56  ;;  %v358_v55 = vld [vmem:[#allocation2 + $0x5b0] sm:$0xff]  ;;  %v363_v56 = vld [vmem:[#allocation2 + $0x5d8] sm:$0xff] }
 0x11b   : > { %2745 = vmatprep.mubr.msk.f32.mxu0 %vm496_vm0, %v239_v57  ;;  %v367_v57 = vld [vmem:[#allocation2 + $0x5f8] sm:$0xff] }
 0x11d   : > { %862 = vmatmul.mubr.f32.gmra.mrb[14].mxu1 %v234_v58  ;;  %v362_v58 = vld [vmem:[#allocation2 + $0x5d0] sm:$0xff] }
 0x11e   : > { %1242 = vmatmul.mubr.f32.gmra.mrb[14].mxu0 %v238_v59  ;;  %866 = vmatprep.mubr.f32.mxu1 %v243_v60  ;;  %v366_v59 = vld [vmem:[#allocation2 + $0x5f0] sm:$0xff]  ;;  %v371_v60 = vld [vmem:[#allocation2 + $0x618] sm:$0xff] }
 0x11f   : > { %2746 = vmatprep.mubr.msk.f32.mxu0 %vm496_vm0, %v247_v61  ;;  %v375_v61 = vld [vmem:[#allocation2 + $0x638] sm:$0xff] }
 0x121   : > { %867 = vmatmul.mubr.f32.gmra.mrb[16].mxu1 %v242_v62  ;;  %v370_v62 = vld [vmem:[#allocation2 + $0x610] sm:$0xff] }
 0x122   : > { %1247 = vmatmul.mubr.f32.gmra.mrb[16].mxu0 %v246_v63  ;;  %871 = vmatprep.mubr.f32.mxu1 %v251_v1  ;;  %v374_v63 = vld [vmem:[#allocation2 + $0x630] sm:$0xff] }
 0x123   : > { %2747 = vmatprep.mubr.msk.f32.mxu0 %vm496_vm0, %v255_v2 }
 0x125   : > { %872 = vmatmul.mubr.f32.gmra.mrb[18].mxu1 %v250_v0 }
 0x126   : > { %1252 = vmatmul.mubr.f32.gmra.mrb[18].mxu0 %v254_v3  ;;  %876 = vmatprep.mubr.f32.mxu1 %v259_v4 }
 0x127   : > { %2748 = vmatprep.mubr.msk.f32.mxu0 %vm496_vm0, %v263_v5 }
 0x129   : > { %877 = vmatmul.mubr.f32.gmra.mrb[20].mxu1 %v258_v6 }
 0x12a   : > { %1257 = vmatmul.mubr.f32.gmra.mrb[20].mxu0 %v262_v7  ;;  %881 = vmatprep.mubr.f32.mxu1 %v267_v8 }
 0x12b   : > { %2749 = vmatprep.mubr.msk.f32.mxu0 %vm496_vm0, %v271_v9 }
 0x12d   : > { %882 = vmatmul.mubr.f32.gmra.mrb[22].mxu1 %v266_v10 }
 0x12e   : > { %1262 = vmatmul.mubr.f32.gmra.mrb[22].mxu0 %v270_v11  ;;  %886 = vmatprep.mubr.f32.mxu1 %v275_v12 }
 0x12f   : > { %2750 = vmatprep.mubr.msk.f32.mxu0 %vm496_vm0, %v279_v13 }
 0x131   : > { %887 = vmatmul.mubr.f32.gmra.mrb[24].mxu1 %v274_v14 }
 0x132   : > { %1267 = vmatmul.mubr.f32.gmra.mrb[24].mxu0 %v278_v15  ;;  %891 = vmatprep.mubr.f32.mxu1 %v283_v16 }
 0x133   : > { %2751 = vmatprep.mubr.msk.f32.mxu0 %vm496_vm0, %v287_v17 }
 0x135   : > { %892 = vmatmul.mubr.f32.gmra.mrb[26].mxu1 %v282_v18 }
 0x136   : > { %1272 = vmatmul.mubr.f32.gmra.mrb[26].mxu0 %v286_v19  ;;  %896 = vmatprep.mubr.f32.mxu1 %v291_v20 }
 0x137   : > { %2752 = vmatprep.mubr.msk.f32.mxu0 %vm496_vm0, %v295_v21 }
 0x139   : > { %897 = vmatmul.mubr.f32.gmra.mrb[28].mxu1 %v290_v22 }
 0x13a   : > { %1277 = vmatmul.mubr.f32.gmra.mrb[28].mxu0 %v294_v23  ;;  %901 = vmatprep.mubr.f32.mxu1 %v299_v24 }
 0x13b   : > { %2753 = vmatprep.mubr.msk.f32.mxu0 %vm496_vm0, %v303_v25 }
 0x13d   : > { %902 = vmatmul.mubr.f32.gmra.mrb[30].mxu1 %v298_v26 }
 0x13e   : > { %1282 = vmatmul.mubr.f32.gmra.mrb[30].mxu0 %v302_v27  ;;  %906 = vmatprep.mubr.f32.mxu1 %v307_v28 }
 0x13f   : > { %2754 = vmatprep.mubr.msk.f32.mxu0 %vm496_vm0, %v311_v29 }
 0x141   : > { %907 = vmatmul.mubr.f32.gmra.mrb[32].mxu1 %v306_v30 }
 0x142   : > { %1287 = vmatmul.mubr.f32.gmra.mrb[32].mxu0 %v310_v31  ;;  %911 = vmatprep.mubr.f32.mxu1 %v315_v32 }
 0x143   : > { %2755 = vmatprep.mubr.msk.f32.mxu0 %vm496_vm0, %v319_v33 }
 0x145   : > { %912 = vmatmul.mubr.f32.gmra.mrb[34].mxu1 %v314_v34 }
 0x146   : > { %1292 = vmatmul.mubr.f32.gmra.mrb[34].mxu0 %v318_v35  ;;  %916 = vmatprep.mubr.f32.mxu1 %v323_v36 }
 0x147   : > { %2756 = vmatprep.mubr.msk.f32.mxu0 %vm496_vm0, %v327_v37 }
 0x149   : > { %917 = vmatmul.mubr.f32.gmra.mrb[36].mxu1 %v322_v38 }
 0x14a   : > { %1297 = vmatmul.mubr.f32.gmra.mrb[36].mxu0 %v326_v39  ;;  %921 = vmatprep.mubr.f32.mxu1 %v331_v40 }
 0x14b   : > { %2757 = vmatprep.mubr.msk.f32.mxu0 %vm496_vm0, %v335_v41 }
 0x14d   : > { %922 = vmatmul.mubr.f32.gmra.mrb[38].mxu1 %v330_v42 }
 0x14e   : > { %1302 = vmatmul.mubr.f32.gmra.mrb[38].mxu0 %v334_v43  ;;  %926 = vmatprep.mubr.f32.mxu1 %v339_v44 }
 0x14f   : > { %2758 = vmatprep.mubr.msk.f32.mxu0 %vm496_vm0, %v343_v45 }
 0x151   : > { %927 = vmatmul.mubr.f32.gmra.mrb[40].mxu1 %v338_v46 }
 0x152   : > { %1307 = vmatmul.mubr.f32.gmra.mrb[40].mxu0 %v342_v47  ;;  %931 = vmatprep.mubr.f32.mxu1 %v347_v48 }
 0x153   : > { %2759 = vmatprep.mubr.msk.f32.mxu0 %vm496_vm0, %v351_v49 }
 0x155   : > { %932 = vmatmul.mubr.f32.gmra.mrb[42].mxu1 %v346_v50 }
 0x156   : > { %1312 = vmatmul.mubr.f32.gmra.mrb[42].mxu0 %v350_v51  ;;  %936 = vmatprep.mubr.f32.mxu1 %v355_v52 }
 0x157   : > { %2760 = vmatprep.mubr.msk.f32.mxu0 %vm496_vm0, %v359_v53 }
 0x159   : > { %937 = vmatmul.mubr.f32.gmra.mrb[44].mxu1 %v354_v54 }
 0x15a   : > { %1317 = vmatmul.mubr.f32.gmra.mrb[44].mxu0 %v358_v55  ;;  %941 = vmatprep.mubr.f32.mxu1 %v363_v56 }
 0x15b   : > { %2761 = vmatprep.mubr.msk.f32.mxu0 %vm496_vm0, %v367_v57 }
 0x15d   : > { %942 = vmatmul.mubr.f32.gmra.mrb[46].mxu1 %v362_v58 }
 0x15e   : > { %1322 = vmatmul.mubr.f32.gmra.mrb[46].mxu0 %v366_v59  ;;  %946 = vmatprep.mubr.f32.mxu1 %v371_v60 }
 0x15f   : > { %2762 = vmatprep.mubr.msk.f32.mxu0 %vm496_vm0, %v375_v61 }
 0x161   : > { %947 = vmatmul.mubr.f32.gmra.mrb[48].mxu1 %v370_v62 }
 0x162   : > { %1327 = vmatmul.mubr.f32.gmra.mrb[48].mxu0 %v374_v63 }
 0x1d4   : > { %v828_v1 = vpop.f32.mrb[0].mxu1 }
 0x1d5   : > { %v1208_v2 = vpop.f32.mrb[0].mxu0  ;;  %v830_v0 = vpop.f32.mrb[1].mxu1 }
 0x1d6   : > { %v3730_v3 = vadd.f32 %v1208_v2, %v828_v1  ;;  %v1210_v4 = vpop.f32.mrb[1].mxu0 }
 0x1d8   : > { %v833_v5 = vpop.f32.mrb[2].mxu1  ;;  %v1332_v45 = vrot.slane %v3730_v3, 4 }
 0x1d9   : > { %v1213_v6 = vpop.f32.mrb[2].mxu0  ;;  %v835_v7 = vpop.f32.mrb[3].mxu1 }
 0x1da   : > { %v3732_v8 = vadd.f32 %v1213_v6, %v833_v5  ;;  %v1215_v9 = vpop.f32.mrb[3].mxu0  ;;  %v1333_v51 = vadd.f32 %v3730_v3, %v1332_v45 }
 0x1dc   : > { %v838_v10 = vpop.f32.mrb[4].mxu1  ;;  %v1338_v46 = vrot.slane %v3732_v8, 4  ;;  %v1334_v62 = vrot.slane %v1333_v51, 2 }
 0x1dd   : > { %v1218_v11 = vpop.f32.mrb[4].mxu0  ;;  %v840_v12 = vpop.f32.mrb[5].mxu1 }
 0x1de   : > { %v3734_v13 = vadd.f32 %v1218_v11, %v838_v10  ;;  %v1220_v14 = vpop.f32.mrb[5].mxu0  ;;  %v1339_v52 = vadd.f32 %v3732_v8, %v1338_v46  ;;  %v1335_v12 = vadd.f32 %v1334_v62, %v1333_v51 }
 0x1e0   : > { %v843_v15 = vpop.f32.mrb[6].mxu1  ;;  %v1344_v54 = vrot.slane %v3734_v13, 4  ;;  %v1340_v63 = vrot.slane %v1339_v52, 2 }
 0x1e1   : > { %v1223_v16 = vpop.f32.mrb[6].mxu0  ;;  %v845_v17 = vpop.f32.mrb[7].mxu1 }
 0x1e2   : > { %v3736_v18 = vadd.f32 %v1223_v16, %v843_v15  ;;  %v1225_v19 = vpop.f32.mrb[7].mxu0  ;;  %v1345_v1 = vadd.f32 %v3734_v13, %v1344_v54  ;;  %v1341_v14 = vadd.f32 %v1340_v63, %v1339_v52 }
 0x1e4   : > { %4847 = vst [vmem:[#allocation11_spill] sm:$0xff] %v3736_v18  ;;  %v848_v20 = vpop.f32.mrb[8].mxu1  ;;  %v1350_v58 = vrot.slane %v3736_v18, 4  ;;  %v1346_v15 = vrot.slane %v1345_v1, 2 }
 0x1e5   : > { %v1228_v21 = vpop.f32.mrb[8].mxu0  ;;  %v850_v22 = vpop.f32.mrb[9].mxu1 }
 0x1e6   : > { %v1230_v23 = vpop.f32.mrb[9].mxu0  ;;  %v3738_v24 = vadd.f32 %v1228_v21, %v848_v20  ;;  %v1351_v6 = vadd.f32 %v3736_v18, %v1350_v58 }
 0x1e8   : > { %4848 = vst [vmem:[#allocation12_spill] sm:$0xff] %v3738_v24  ;;  %v853_v25 = vpop.f32.mrb[10].mxu1  ;;  %v1356_v7 = vrot.slane %v3738_v24, 4  ;;  %v1352_v21 = vrot.slane %v1351_v6, 2 }
 0x1e9   : > { %v1233_v26 = vpop.f32.mrb[10].mxu0  ;;  %v855_v27 = vpop.f32.mrb[11].mxu1 }
 0x1ea   : > { %v3740_v28 = vadd.f32 %v1233_v26, %v853_v25  ;;  %v1235_v29 = vpop.f32.mrb[11].mxu0  ;;  %v1357_v22 = vadd.f32 %v3738_v24, %v1356_v7  ;;  %v1336_v27 = vrot.slane %v1335_v12, 1 }
 0x1eb   : > { %v1342_v29 = vrot.slane %v1341_v14, 1 }
 0x1ec   : > { %v858_v30 = vpop.f32.mrb[12].mxu1  ;;  %v1362_v2 = vrot.slane %v3740_v28, 4 }
 0x1ed   : > { %v1238_v31 = vpop.f32.mrb[12].mxu0  ;;  %v860_v32 = vpop.f32.mrb[13].mxu1 }
 0x1ee   : > { %v3742_v33 = vadd.f32 %v1238_v31, %v858_v30  ;;  %v1240_v34 = vpop.f32.mrb[13].mxu0  ;;  %v1363_v16 = vadd.f32 %v3740_v28, %v1362_v2  ;;  %v1347_v31 = vadd.f32 %v1346_v15, %v1345_v1 }
 0x1f0   : > { %v863_v35 = vpop.f32.mrb[14].mxu1  ;;  %v1368_v59 = vrot.slane %v3742_v33, 4  ;;  %v1364_v32 = vrot.slane %v1363_v16, 2  ;;  %v1348_v46 = vrot.slane %v1347_v31, 1 }
 0x1f1   : > { %v1243_v36 = vpop.f32.mrb[14].mxu0  ;;  %v865_v37 = vpop.f32.mrb[15].mxu1 }
 0x1f2   : > { %v3744_v38 = vadd.f32 %v1243_v36, %v863_v35  ;;  %v1245_v39 = vpop.f32.mrb[15].mxu0  ;;  %v1369_v9 = vadd.f32 %v3742_v33, %v1368_v59  ;;  %v1353_v37 = vadd.f32 %v1352_v21, %v1351_v6  ;;  %v1349_v1 = vadd.f32 %v1348_v46, %v1347_v31 }
 0x1f3   : > { %v1358_v39 = vrot.slane %v1357_v22, 2 }
 0x1f4   : > { %4849 = vst [vmem:[#allocation13_spill] sm:$0xff] %v3744_v38  ;;  %v868_v40 = vpop.f32.mrb[16].mxu1  ;;  %v1370_v23 = vrot.slane %v1369_v9, 2  ;;  %v1374_v30 = vrot.slane %v3744_v38, 4 }
 0x1f5   : > { %v1248_v41 = vpop.f32.mrb[16].mxu0  ;;  %v870_v42 = vpop.f32.mrb[17].mxu1 }
 0x1f6   : > { %v3746_v43 = vadd.f32 %v1248_v41, %v868_v40  ;;  %v1250_v44 = vpop.f32.mrb[17].mxu0  ;;  %v1371_v40 = vadd.f32 %v1370_v23, %v1369_v9  ;;  %v1337_v42 = vadd.f32 %v1336_v27, %v1335_v12  ;;  %v1375_v45 = vadd.f32 %v3744_v38, %v1374_v30 }
 0x1f7   : > { %v1343_v44 = vadd.f32 %v1342_v29, %v1341_v14 }
 0x1f8   : > { %4850 = vst [vmem:[#allocation14_spill] sm:$0xff] %v3746_v43  ;;  %v873_v47 = vpop.f32.mrb[18].mxu1  ;;  %v1376_v62 = vrot.slane %v1375_v45, 2  ;;  %v3780_v63 = vmul.f32 0.2, %v1337_v42 }
 0x1f9   : > { %v1253_v48 = vpop.f32.mrb[18].mxu0  ;;  %v875_v49 = vpop.f32.mrb[19].mxu1 }
 0x1fa   : > { %v1255_v50 = vpop.f32.mrb[19].mxu0  ;;  %v3752_v53 = vadd.f32 %v1253_v48, %v873_v47  ;;  %v1365_v47 = vadd.f32 %v1364_v32, %v1363_v16  ;;  %v1380_v48 = vrot.slane %v3746_v43, 4  ;;  %v1507_v21 = vmul.f32 %v3780_v63, %v3780_v63 }
 0x1fc   : > { %4851 = vst [vmem:[#allocation15_spill] sm:$0xff] %v3752_v53  ;;  %v878_v55 = vpop.f32.mrb[20].mxu1  ;;  %v1366_v2 = vrot.slane %v1365_v47, 1  ;;  %v1386_v29 = vrot.slane %v3752_v53, 4 }
 0x1fd   : > { %v1258_v56 = vpop.f32.mrb[20].mxu0  ;;  %v880_v57 = vpop.f32.mrb[21].mxu1 }
 0x1fe   : > { %v3757_v60 = vadd.f32 %v1258_v56, %v878_v55  ;;  %v1260_v61 = vpop.f32.mrb[21].mxu0  ;;  %v1354_v55 = vrot.slane %v1353_v37, 1  ;;  %v1359_v56 = vadd.f32 %v1358_v39, %v1357_v22  ;;  %v1372_v57 = vrot.slane %v1371_v40, 1 }
 0x1ff   : > { %v3778_v61 = vmul.f32 0.2, %v1343_v44  ;;  %v3792_v22 = vmul.f32 0.2, %v1349_v1  ;;  %v1367_v23 = vadd.f32 %v1366_v2, %v1365_v47 }
 0x200   : > { %v883_v0 = vpop.f32.mrb[22].mxu1  ;;  %v1392_v51 = vrot.slane %v3757_v60, 4  ;;  %v1360_v12 = vrot.slane %v1359_v56, 1  ;;  %v1373_v14 = vadd.f32 %v1372_v57, %v1371_v40 }
 0x201   : > { %v1263_v4 = vpop.f32.mrb[22].mxu0  ;;  %v885_v5 = vpop.f32.mrb[23].mxu1  ;;  %v1508_v16 = vmul.f32 %v3778_v61, %v3778_v61  ;;  %v1509_v47 = vmul.f32 %v3792_v22, %v3792_v22 }
 0x202   : > { %v3764_v10 = vadd.f32 %v1263_v4, %v883_v0  ;;  %v1265_v11 = vpop.f32.mrb[23].mxu0  ;;  %v1381_v0 = vadd.f32 %v3746_v43, %v1380_v48  ;;  %v1393_v5 = vadd.f32 %v3757_v60, %v1392_v51  ;;  %v3799_v39 = vmul.f32 0.2, %v1373_v14 }
 0x203   : > { %v1355_v11 = vadd.f32 %v1354_v55, %v1353_v37  ;;  %v1361_v37 = vadd.f32 %v1360_v12, %v1359_v56  ;;  %v1532_v42 = vadd.f32 %v1508_v16, %v1507_v21  ;;  %v3807_v48 = vmul.f32 0.2, %v1367_v23 }
 0x204   : > { %4852 = vst [vmem:[#allocation16_spill] sm:$0xff] %v3764_v10  ;;  %v888_v17 = vpop.f32.mrb[24].mxu1  ;;  %v1398_v6 = vrot.slane %v3764_v10, 4  ;;  %v1394_v30 = vrot.slane %v1393_v5, 2  ;;  %v1387_v55 = vadd.f32 %v3752_v53, %v1386_v29 }
 0x205   : > { %v1268_v19 = vpop.f32.mrb[24].mxu0  ;;  %v890_v20 = vpop.f32.mrb[25].mxu1  ;;  %v3814_v2 = vmul.f32 0.2, %v1361_v37  ;;  %v1512_v14 = vmul.f32 %v3807_v48, %v3807_v48 }
 0x206   : > { %v3768_v25 = vadd.f32 %v1268_v19, %v888_v17  ;;  %v1270_v26 = vpop.f32.mrb[25].mxu0  ;;  %v1377_v17 = vadd.f32 %v1376_v62, %v1375_v45  ;;  %v1399_v31 = vadd.f32 %v3764_v10, %v1398_v6  ;;  %v1395_v56 = vadd.f32 %v1394_v30, %v1393_v5 }
 0x207   : > { %v1382_v26 = vrot.slane %v1381_v0, 2  ;;  %v1533_v5 = vadd.f32 %v1532_v42, %v1509_v47  ;;  %v1388_v23 = vrot.slane %v1387_v55, 2 }
 0x208   : > { %4853 = vst [vmem:[#allocation17_spill] sm:$0xff] %v3768_v25  ;;  %v893_v34 = vpop.f32.mrb[26].mxu1  ;;  %v1404_v19 = vrot.slane %v3768_v25, 4  ;;  %v1378_v44 = vrot.slane %v1377_v17, 1  ;;  %v1400_v57 = vrot.slane %v1399_v31, 2 }
 0x209   : > { %v1273_v35 = vpop.f32.mrb[26].mxu0  ;;  %v895_v36 = vpop.f32.mrb[27].mxu1 }
 0x20a   : > { %v1275_v41 = vpop.f32.mrb[27].mxu0  ;;  %v3773_v49 = vadd.f32 %v1273_v35, %v893_v34  ;;  %v3797_v36 = vmul.f32 0.2, %v1355_v11  ;;  %v1405_v45 = vadd.f32 %v3768_v25, %v1404_v19 }
 0x20c   : > { %4854 = vst [vmem:[#allocation18_spill] sm:$0xff] %v3773_v49  ;;  %v898_v50 = vpop.f32.mrb[28].mxu1  ;;  %v1410_v46 = vrot.slane %v3773_v49, 4  ;;  %v1510_v1 = vmul.f32 %v3797_v36, %v3797_v36  ;;  %v1406_v11 = vrot.slane %v1405_v45, 2 }
 0x20d   : > { %v1278_v52 = vpop.f32.mrb[28].mxu0  ;;  %v900_v54 = vpop.f32.mrb[29].mxu1 }
 0x20e   : > { %v3776_v58 = vadd.f32 %v1278_v52, %v898_v50  ;;  %v1280_v59 = vpop.f32.mrb[29].mxu0  ;;  %v1383_v54 = vadd.f32 %v1382_v26, %v1381_v0  ;;  %v1411_v0 = vadd.f32 %v3773_v49, %v1410_v46  ;;  %v1396_v26 = vrot.slane %v1395_v56, 1 }
 0x20f   : > { %v1407_v42 = vadd.f32 %v1406_v11, %v1405_v45 }
 0x210   : > { %4855 = vst [vmem:[#allocation19_spill] sm:$0xff] %v3776_v58  ;;  %v903_v4 = vpop.f32.mrb[30].mxu1  ;;  %v1416_v6 = vrot.slane %v3776_v58, 4  ;;  %v1384_v21 = vrot.slane %v1383_v54, 1 }
 0x211   : > { %v1283_v7 = vpop.f32.mrb[30].mxu0  ;;  %v905_v9 = vpop.f32.mrb[31].mxu1 }
 0x212   : > { %v1285_v15 = vpop.f32.mrb[31].mxu0  ;;  %v3788_v20 = vadd.f32 %v1283_v7, %v903_v4  ;;  %v1513_v4 = vmul.f32 %v3799_v39, %v3799_v39  ;;  %v1379_v9 = vadd.f32 %v1378_v44, %v1377_v17  ;;  %v3825_v17 = vadd.f32 %v1533_v5, %v1510_v1 }
 0x213   : > { %v1412_v44 = vrot.slane %v1411_v0, 2 }
 0x214   : > { %4856 = vst [vmem:[#allocation20_spill] sm:$0xff] %v3788_v20  ;;  %v908_v27 = vpop.f32.mrb[32].mxu1  ;;  %v1422_v32 = vrot.slane %v3788_v20, 4  ;;  %v3832_v37 = vadd.f32 %v1513_v4, %v1512_v14  ;;  %v1408_v14 = vrot.slane %v1407_v42, 1 }
 0x215   : > { %v1288_v34 = vpop.f32.mrb[32].mxu0  ;;  %v910_v35 = vpop.f32.mrb[33].mxu1 }
 0x216   : > { %v3801_v40 = vadd.f32 %v1288_v34, %v908_v27  ;;  %v1290_v41 = vpop.f32.mrb[33].mxu0  ;;  %v1423_v50 = vadd.f32 %v3788_v20, %v1422_v32  ;;  %v1401_v27 = vadd.f32 %v1400_v57, %v1399_v31  ;;  %v3829_v32 = vmul.f32 %v3814_v2, %v3814_v2 }
 0x217   : > { %v1417_v34 = vadd.f32 %v3776_v58, %v1416_v6  ;;  %v3834_v41 = vmul.f32 0.2, %v1379_v9  ;;  %v1385_v57 = vadd.f32 %v1384_v21, %v1383_v54 }
 0x218   : > { %4857 = vst [vmem:[#allocation21_spill] sm:$0xff] %v3801_v40  ;;  %v1428_v51 = vrot.slane %v3801_v40, 4  ;;  %v913_v52 = vpop.f32.mrb[34].mxu1  ;;  %v1424_v15 = vrot.slane %v1423_v50, 2  ;;  %v1402_v1 = vrot.slane %v1401_v27, 1 }
 0x219   : > { %v1293_v59 = vpop.f32.mrb[34].mxu0  ;;  %v915_v62 = vpop.f32.mrb[35].mxu1  ;;  %v1418_v5 = vrot.slane %v1417_v34, 2 }
 0x21a   : > { %v1295_v7 = vpop.f32.mrb[35].mxu0  ;;  %v3820_v12 = vadd.f32 %v1293_v59, %v913_v52  ;;  %v1429_v16 = vadd.f32 %v3801_v40, %v1428_v51  ;;  %v1425_v46 = vadd.f32 %v1424_v15, %v1423_v50  ;;  %v1389_v59 = vadd.f32 %v1388_v23, %v1387_v55 }
 0x21b   : > { %v1397_v62 = vadd.f32 %v1396_v26, %v1395_v56  ;;  %v1514_v50 = vmul.f32 %v3834_v41, %v3834_v41  ;;  %v1413_v15 = vadd.f32 %v1412_v44, %v1411_v0  ;;  %v3846_v26 = vmul.f32 0.2, %v1385_v57 }
 0x21c   : > { %4858 = vst [vmem:[#allocation22_spill] sm:$0xff] %v3820_v12  ;;  %v918_v19 = vpop.f32.mrb[36].mxu1  ;;  %v1430_v47 = vrot.slane %v1429_v16, 2  ;;  %v1434_v31 = vrot.slane %v3820_v12, 4  ;;  %v1426_v54 = vrot.slane %v1425_v46, 1 }
 0x21d   : > { %v1298_v29 = vpop.f32.mrb[36].mxu0  ;;  %v920_v30 = vpop.f32.mrb[37].mxu1  ;;  %v1414_v57 = vrot.slane %v1413_v15, 1 }
 0x21e   : > { %v1300_v35 = vpop.f32.mrb[37].mxu0  ;;  %v3837_v51 = vadd.f32 %v1298_v29, %v918_v19  ;;  %v1431_v4 = vadd.f32 %v1430_v47, %v1429_v16  ;;  %v1435_v9 = vadd.f32 %v3820_v12, %v1434_v31  ;;  %v1390_v16 = vrot.slane %v1389_v59, 1 }
 0x21f   : > { %v1403_v29 = vadd.f32 %v1402_v1, %v1401_v27  ;;  %v3849_v31 = vmul.f32 0.2, %v1397_v62  ;;  %v1427_v53 = vadd.f32 %v1426_v54, %v1425_v46 }
 0x220   : > { %4859 = vst [vmem:[#allocation23_spill] sm:$0xff] %v3837_v51  ;;  %v923_v52 = vpop.f32.mrb[38].mxu1  ;;  %v1440_v45 = vrot.slane %v3837_v51, 4  ;;  %v1432_v55 = vrot.slane %v1431_v4, 1  ;;  %v1436_v56 = vrot.slane %v1435_v9, 2  ;;  %v1391_v49 = vadd.f32 %v1390_v16, %v1389_v59 }
 0x221   : > { %v1303_v7 = vpop.f32.mrb[38].mxu0  ;;  %v925_v6 = vpop.f32.mrb[39].mxu1  ;;  %v3854_v43 = vmul.f32 0.2, %v1403_v29  ;;  %v3864_v16 = vmul.f32 0.2, %v1427_v53 }
 0x222   : > { %v1305_v11 = vpop.f32.mrb[39].mxu0  ;;  %v3843_v19 = vadd.f32 %v1303_v7, %v923_v52  ;;  %v1441_v21 = vadd.f32 %v3837_v51, %v1440_v45  ;;  %v1419_v6 = vadd.f32 %v1418_v5, %v1417_v34  ;;  %v1437_v0 = vadd.f32 %v1436_v56, %v1435_v9 }
 0x223   : > { %v1409_v7 = vadd.f32 %v1408_v14, %v1407_v42  ;;  %v1433_v11 = vadd.f32 %v1432_v55, %v1431_v4 }
 0x224   : > { %4860 = vst [vmem:[#allocation24_spill] sm:$0xff] %v3843_v19  ;;  %v928_v23 = vpop.f32.mrb[40].mxu1  ;;  %v1446_v30 = vrot.slane %v3843_v19, 4  ;;  %v1442_v44 = vrot.slane %v1441_v21, 2  ;;  %v1438_v24 = vrot.slane %v1437_v0, 1  ;;  %v1420_v56 = vrot.slane %v1419_v6, 1 }
 0x225   : > { %v1308_v35 = vpop.f32.mrb[40].mxu0  ;;  %v930_v47 = vpop.f32.mrb[41].mxu1  ;;  %v3861_v46 = vmul.f32 0.2, %v1433_v11  ;;  %v3872_v11 = vmul.f32 0.2, %v1391_v49 }
 0x226   : > { %v1310_v52 = vpop.f32.mrb[41].mxu0  ;;  %v1447_v58 = vadd.f32 %v3843_v19, %v1446_v30  ;;  %v3852_v45 = vadd.f32 %v1308_v35, %v928_v23  ;;  %v1443_v27 = vadd.f32 %v1442_v44, %v1441_v21  ;;  %v1439_v42 = vadd.f32 %v1438_v24, %v1437_v0 }
 0x227   : > { %v3859_v23 = vmul.f32 0.2, %v1409_v7  ;;  %v1415_v21 = vadd.f32 %v1414_v57, %v1413_v15  ;;  %v1537_v24 = vadd.f32 %v3832_v37, %v1514_v50  ;;  %4863 = vst [vmem:[#allocation27_spill] sm:$0xff] %v3872_v11  ;;  %v1421_v15 = vadd.f32 %v1420_v56, %v1419_v6 }
 0x228   : > { %4861 = vst [vmem:[#allocation25_spill] sm:$0xff] %v3852_v45  ;;  %v933_v1 = vpop.f32.mrb[42].mxu1  ;;  %v1448_v62 = vrot.slane %v1447_v58, 2  ;;  %v1452_v34 = vrot.slane %v3852_v45, 4  ;;  %v1444_v4 = vrot.slane %v1443_v27, 1  ;;  %v1523_v37 = vmul.f32 %v3861_v46, %v3861_v46 }
 0x229   : > { %v1313_v5 = vpop.f32.mrb[42].mxu0  ;;  %v935_v9 = vpop.f32.mrb[43].mxu1  ;;  %v3868_v47 = vmul.f32 0.2, %v1439_v42  ;;  %v1519_v49 = vmul.f32 %v3859_v23, %v3859_v23 }
 0x22a   : > { %v3857_v14 = vadd.f32 %v1313_v5, %v933_v1  ;;  %v1315_v55 = vpop.f32.mrb[43].mxu0  ;;  %v1449_v54 = vadd.f32 %v1448_v62, %v1447_v58  ;;  %v1453_v59 = vadd.f32 %v3852_v45, %v1452_v34  ;;  %v1445_v29 = vadd.f32 %v1444_v4, %v1443_v27 }
 0x22b   : > { %v1515_v58 = vmul.f32 %v3846_v26, %v3846_v26  ;;  %v1518_v27 = vmul.f32 %v3854_v43, %v3854_v43  ;;  %v1517_v62 = vmul.f32 %v3849_v31, %v3849_v31  ;;  %v3886_v34 = vmul.f32 0.2, %v1415_v21 }
 0x22c   : > { %4862 = vst [vmem:[#allocation26_spill] sm:$0xff] %v3857_v14  ;;  %v1458_v30 = vrot.slane %v3857_v14, 4  ;;  %v938_v35 = vpop.f32.mrb[44].mxu1  ;;  %v1450_v0 = vrot.slane %v1449_v54, 1  ;;  %v1454_v44 = vrot.slane %v1453_v59, 2  ;;  %v1522_v9 = vmul.f32 %v3864_v16, %v3864_v16 }
 0x22d   : > { %v1318_v52 = vpop.f32.mrb[44].mxu0  ;;  %v940_v7 = vpop.f32.mrb[45].mxu1  ;;  %v3880_v50 = vmul.f32 0.2, %v1445_v29  ;;  %v1524_v56 = vmul.f32 %v3868_v47, %v3868_v47  ;;  %v1535_v29 = vadd.f32 %v3825_v17, %v3829_v32  ;;  %v3897_v21 = vmul.f32 0.2, %v1421_v15 }
 0x22e   : > { %v3874_v53 = vadd.f32 %v1318_v52, %v938_v35  ;;  %v1320_v57 = vpop.f32.mrb[45].mxu0  ;;  %v1451_v1 = vadd.f32 %v1450_v0, %v1449_v54  ;;  %v1459_v6 = vadd.f32 %v3857_v14, %v1458_v30  ;;  %v1455_v4 = vadd.f32 %v1454_v44, %v1453_v59 }
 0x22f   : > { %v1538_v35 = vadd.f32 %v1537_v24, %v1515_v58  ;;  %4866 = vst [vmem:[#allocation30_spill] sm:$0xff] %v3897_v21  ;;  %v1516_v30 = vmul.f32 %v3872_v11, %v3872_v11  ;;  %v1540_v52 = vadd.f32 %v1518_v27, %v1517_v62  ;;  %v1544_v7 = vadd.f32 %v1523_v37, %v1522_v9 }
 0x230   : > { %4864 = vst [vmem:[#allocation28_spill] sm:$0xff] %v3874_v53  ;;  %v943_v5 = vpop.f32.mrb[46].mxu1  ;;  %v3893_v42 = vmul.f32 0.2, %v1451_v1  ;;  %v1525_v57 = vmul.f32 %v3880_v50, %v3880_v50  ;;  %v1520_v59 = vmul.f32 %v3886_v34, %v3886_v34  ;;  %v1460_v44 = vrot.slane %v1459_v6, 2 }
 0x231   : > { %v1323_v55 = vpop.f32.mrb[46].mxu0  ;;  %v945_v54 = vpop.f32.mrb[47].mxu1  ;;  %v1464_v1 = vrot.slane %v3874_v53, 4  ;;  %v1541_v32 = vadd.f32 %v1540_v52, %v1519_v49  ;;  %v1545_v24 = vadd.f32 %v1544_v7, %v1524_v56  ;;  %v1456_v15 = vrot.slane %v1455_v4, 1 }
 0x232   : > { %4865 = vst [vmem:[#allocation29_spill] sm:$0xff] %v3893_v42  ;;  %v1325_v0 = vpop.f32.mrb[47].mxu0  ;;  %v3906_v54 = vadd.f32 %v1323_v55, %v943_v5  ;;  %v1526_v58 = vmul.f32 %v3893_v42, %v3893_v42  ;;  %v1521_v62 = vmul.f32 %v3897_v21, %v3897_v21  ;;  %v1461_v9 = vadd.f32 %v1460_v44, %v1459_v6 }
 0x233   : > { %v1465_v0 = vadd.f32 %v3874_v53, %v1464_v1  ;;  %v1539_v5 = vadd.f32 %v1538_v35, %v1516_v30  ;;  %v1546_v55 = vadd.f32 %v1545_v24, %v1525_v57  ;;  %v1542_v49 = vadd.f32 %v1541_v32, %v1520_v59 }
 0x234   : > { %4867 = vst [vmem:[#allocation31_spill] sm:$0xff] %v3906_v54  ;;  %v948_v17 = vpop.f32.mrb[48].mxu1  ;;  %v1470_v19 = vrot.slane %v3906_v54, 4  ;;  %v1462_v56 = vrot.slane %v1461_v9, 1  ;;  %v1552_v42 = vadd.f32 1e-07, %v1535_v29  ;;  %v1457_v18 = vadd.f32 %v1456_v15, %v1455_v4 }
 0x235   : > { %v1328_v27 = vpop.f32.mrb[48].mxu0  ;;  %v950_v37 = vpop.f32.mrb[49].mxu1  ;;  %v1466_v52 = vrot.slane %v1465_v0, 2  ;;  %v1543_v6 = vadd.f32 %v1542_v49, %v1521_v62  ;;  %v1553_v35 = vadd.f32 1e-07, %v1539_v5 }
 0x236   : > { %v1330_v11 = vpop.f32.mrb[49].mxu0  ;;  %v3914_v51 = vadd.f32 %v1328_v27, %v948_v17  ;;  %v1471_v7 = vadd.f32 %v3906_v54, %v1470_v19  ;;  %v1547_v37 = vadd.f32 %v1546_v55, %v1526_v58  ;;  %v1463_v44 = vadd.f32 %v1462_v56, %v1461_v9 }
 0x237   : > { %v1467_v1 = vadd.f32 %v1466_v52, %v1465_v0  ;;  %3140 = vrsqrt.f32 %v1552_v42  ;;  %v1502_v32 = vmul.f32 0.2, %v1457_v18  ;;  %v1554_v29 = vadd.f32 1e-07, %v1543_v6 }
 0x238   : > { %4868 = vst [vmem:[#allocation32_spill] sm:$0xff] %v3914_v51  ;;  %v1476_v21 = vrot.slane %v3914_v51, 4  ;;  %v1472_v53 = vrot.slane %v1471_v7, 2  ;;  %v3919_v30 = vmul.f32 0.2, %v1463_v44  ;;  %3142 = vrsqrt.f32 %v1553_v35 }
 0x239   : > { %v1468_v57 = vrot.slane %v1467_v1, 1  ;;  %v1555_v17 = vadd.f32 1e-07, %v1547_v37 }
 0x23a   : > { %v1477_v11 = vadd.f32 %v3914_v51, %v1476_v21  ;;  %v1473_v59 = vadd.f32 %v1472_v53, %v1471_v7  ;;  %v1528_v58 = vmul.f32 %v3919_v30, %v3919_v30  ;;  %v1527_v21 = vmul.f32 %v1502_v32, %v1502_v32 }
 0x23b   : > { %v1469_v24 = vadd.f32 %v1468_v57, %v1467_v1  ;;  %3144 = vrsqrt.f32 %v1555_v17 }
 0x23c   : > { %v1478_v19 = vrot.slane %v1477_v11, 2  ;;  %v1474_v4 = vrot.slane %v1473_v59, 1  ;;  %3146 = vrsqrt.f32 %v1554_v29  ;;  %v1548_v42 = vadd.f32 %v1528_v58, %v1527_v21 }
 0x23d   : > { %v1504_v27 = vmul.f32 0.2, %v1469_v24 }
 0x23e   : > { %v1479_v15 = vadd.f32 %v1478_v19, %v1477_v11  ;;  %v1475_v62 = vadd.f32 %v1474_v4, %v1473_v59 }
 0x23f   : > { %v1529_v0 = vmul.f32 %v1504_v27, %v1504_v27 }
 0x240   : > { %v1480_v9 = vrot.slane %v1479_v15, 1  ;;  %v1505_v53 = vmul.f32 0.2, %v1475_v62 }
 0x241   : > { %v1549_v18 = vadd.f32 %v1548_v42, %v1529_v0  ;;  %v3141_v56 = vpop.eup %3140 }
 0x242   : > { %v1481_v5 = vadd.f32 %v1480_v9, %v1479_v15  ;;  %v1530_v55 = vmul.f32 %v1505_v53, %v1505_v53  ;;  %v3143_v6 = vpop.eup %3142  ;;  %v1562_v44 = vmul.f32 %v3141_v56, %v3780_v63  ;;  %v1563_v1 = vmul.f32 %v3141_v56, %v3778_v61 }
 0x243   : > { %v1567_v24 = vmul.f32 %v3143_v6, %v3807_v48  ;;  %v1568_v4 = vmul.f32 %v3143_v6, %v3799_v39  ;;  %v1564_v58 = vmul.f32 %v3141_v56, %v3792_v22  ;;  %v1565_v0 = vmul.f32 %v3141_v56, %v3797_v36 }
 0x244   : > { %v1506_v49 = vmul.f32 0.2, %v1481_v5  ;;  %v1550_v52 = vadd.f32 %v1549_v18, %v1530_v55  ;;  %v1587_v59 = vmul.f32 %v3730_v3, %v1562_v44  ;;  %v1588_v17 = vmul.f32 %v3732_v8, %v1563_v1 }
 0x245   : > { %v3145_v11 = vpop.eup %3144  ;;  %v1592_v9 = vmul.f32 %v3740_v28, %v1567_v24  ;;  %v1566_v42 = vmul.f32 %v3141_v56, %v3814_v2 }
 0x246   : > { %v1531_v7 = vmul.f32 %v1506_v49, %v1506_v49  ;;  %v3147_v57 = vpop.eup %3146  ;;  %v1577_v19 = vmul.f32 %v3145_v11, %v3864_v16  ;;  %v1578_v29 = vmul.f32 %v3145_v11, %v3861_v46  ;;  %v1612_v15 = vadd.f32 %v1588_v17, %v1587_v59 }
 0x247   : > { %v1572_v63 = vmul.f32 %v3147_v57, %v3849_v31  ;;  %v1573_v61 = vmul.f32 %v3147_v57, %v3854_v43  ;;  %v1593_v16 = vmul.f32 %v3742_v33, %v1568_v4  ;;  %v1579_v39 = vmul.f32 %v3145_v11, %v3868_v47  ;;  %v4871_v4 = vld [vmem:[#allocation23_spill] sm:$0xff] }
 0x248   : > { %v1551_v37 = vadd.f32 %v1550_v52, %v1531_v7  ;;  %v1602_v62 = vmul.f32 %v3788_v20, %v1577_v19  ;;  %v1603_v21 = vmul.f32 %v3801_v40, %v1578_v29  ;;  %v1589_v31 = vmul.f32 %v3734_v13, %v1564_v58  ;;  %v4869_v19 = vld [vmem:[#allocation11_spill] sm:$0xff] }
 0x249   : > { %v1597_v46 = vmul.f32 %v3757_v60, %v1572_v63  ;;  %v1598_v48 = vmul.f32 %v3764_v10, %v1573_v61  ;;  %v1569_v43 = vmul.f32 %v3143_v6, %v3834_v41  ;;  %v1574_v22 = vmul.f32 %v3147_v57, %v3859_v23  ;;  %v4872_v61 = vld [vmem:[#allocation28_spill] sm:$0xff] }
 0x24a   : > { %v1556_v35 = vadd.f32 1e-07, %v1551_v37  ;;  %v1624_v5 = vadd.f32 %v1603_v21, %v1602_v62  ;;  %v1613_v55 = vadd.f32 %v1612_v15, %v1589_v31  ;;  %v1616_v52 = vadd.f32 %v1593_v16, %v1592_v9  ;;  %v4873_v62 = vld [vmem:[#allocation27_spill] sm:$0xff]  ;;  %v4875_v16 = vld [vmem:[#allocation30_spill] sm:$0xff] }
 0x24b   : > { %v1620_v7 = vadd.f32 %v1598_v48, %v1597_v46  ;;  %v1580_v37 = vmul.f32 %v3145_v11, %v3880_v50  ;;  %v1604_v44 = vmul.f32 %v3820_v12, %v1579_v39  ;;  %v1570_v41 = vmul.f32 %v3143_v6, %v3846_v26  ;;  %v4876_v48 = vld [vmem:[#allocation18_spill] sm:$0xff] }
 0x24c   : > { %3148 = vrsqrt.f32 %v1556_v35  ;;  %v1594_v23 = vmul.f32 %v3744_v38, %v1569_v43  ;;  %v1575_v36 = vmul.f32 %v3147_v57, %v3886_v34  ;;  %v1599_v2 = vmul.f32 %v3768_v25, %v1574_v22 }
 0x24d   : > { %v1625_v56 = vadd.f32 %v1624_v5, %v1604_v44  ;;  %v1590_v29 = vmul.f32 %v4869_v19, %v1565_v0  ;;  %v1605_v26 = vmul.f32 %v4871_v4, %v1580_v37  ;;  %v1571_v21 = vmul.f32 %v3143_v6, %v4873_v62  ;;  %v4879_v37 = vld [vmem:[#allocation15_spill] sm:$0xff] }
 0x24e   : > { %v1621_v24 = vadd.f32 %v1620_v7, %v1599_v2  ;;  %v1576_v46 = vmul.f32 %v3147_v57, %v4875_v16  ;;  %v1600_v39 = vmul.f32 %v4876_v48, %v1575_v36 }
 0x24f   : > { %v1614_v15 = vadd.f32 %v1613_v55, %v1590_v29  ;;  %v1626_v31 = vadd.f32 %v1625_v56, %v1605_v26  ;;  %v1596_v44 = vmul.f32 %v4879_v37, %v1571_v21 }
 0x256   : > { %v3149_v18 = vpop.eup %3148 }
 0x257   : > { %v1582_v47 = vmul.f32 %v3149_v18, %v1502_v32  ;;  %v1583_v1 = vmul.f32 %v3149_v18, %v3919_v30  ;;  %v1584_v35 = vmul.f32 %v3149_v18, %v1504_v27  ;;  %v1585_v59 = vmul.f32 %v3149_v18, %v1505_v53  ;;  %v4870_v30 = vld [vmem:[#allocation29_spill] sm:$0xff]  ;;  %v4874_v53 = vld [vmem:[#allocation14_spill] sm:$0xff] }
 0x258   : > { %v1617_v32 = vadd.f32 %v1616_v52, %v1594_v23  ;;  %v1581_v27 = vmul.f32 %v3145_v11, %v4870_v30  ;;  %v1586_v63 = vmul.f32 %v3149_v18, %v1506_v49  ;;  %v1595_v9 = vmul.f32 %v4874_v53, %v1570_v41  ;;  %v4877_v11 = vld [vmem:[#allocation12_spill] sm:$0xff] }
 0x259   : > { %v1607_v17 = vmul.f32 %v3852_v45, %v1582_v47  ;;  %v1608_v50 = vmul.f32 %v3857_v14, %v1583_v1  ;;  %v1609_v58 = vmul.f32 %v4872_v61, %v1584_v35  ;;  %v1610_v43 = vmul.f32 %v3906_v54, %v1585_v59  ;;  %v4878_v18 = vld [vmem:[#allocation24_spill] sm:$0xff]  ;;  %v4880_v47 = vld [vmem:[#allocation19_spill] sm:$0xff] }
 0x25a   : > { %v1591_v0 = vmul.f32 %v4877_v11, %v1566_v42  ;;  %v1618_v5 = vadd.f32 %v1617_v32, %v1595_v9  ;;  %v1622_v49 = vadd.f32 %v1621_v24, %v1600_v39  ;;  %v1606_v52 = vmul.f32 %v4878_v18, %v1581_v27 }
 0x25b   : > { %v1628_v34 = vadd.f32 %v1608_v50, %v1607_v17  ;;  %v1611_v55 = vmul.f32 %v3914_v51, %v1586_v63  ;;  %v1601_v57 = vmul.f32 %v4880_v47, %v1576_v46 }
 0x25c   : > { %v1615_v6 = vadd.f32 %v1614_v15, %v1591_v0  ;;  %v1627_v1 = vadd.f32 %v1626_v31, %v1606_v52  ;;  %v1619_v41 = vadd.f32 %v1618_v5, %v1596_v44 }
 0x25d   : > { %v1629_v22 = vadd.f32 %v1628_v34, %v1609_v58  ;;  %v1623_v23 = vadd.f32 %v1622_v49, %v1601_v57 }
 0x25f   : > { %v1630_v7 = vadd.f32 %v1629_v22, %v1610_v43  ;;  %v1634_v2 = vmax.f32 %v1623_v23, %v1627_v1 }
 0x261   : > { %v1631_v35 = vadd.f32 %v1630_v7, %v1611_v55 }
 0x263   : > { %v1632_v36 = vmax.f32 %v1615_v6, %v1631_v35 }
 0x265   : > { %v1633_v56 = vmax.f32 %v1632_v36, %v1619_v41 }
 0x267   : > { %v1635_v42 = vmax.f32 %v1633_v56, %v1634_v2 }
 0x269   : > { %v1636_v59 = vsub.f32 %v1615_v6, %v1635_v42  ;;  %v1637_v17 = vsub.f32 %v1619_v41, %v1635_v42  ;;  %v1638_v50 = vsub.f32 %v1623_v23, %v1635_v42  ;;  %v1639_v29 = vsub.f32 %v1627_v1, %v1635_v42 }
 0x26a   : > { %v1640_v30 = vsub.f32 %v1631_v35, %v1635_v42 }
 0x26b   : > { %v1641_v32 = vmul.f32 1.442695, %v1636_v59  ;;  %v1643_v24 = vmul.f32 1.442695, %v1637_v17  ;;  %v1645_v27 = vmul.f32 1.442695, %v1638_v50 }
 0x26c   : > { %v1647_v26 = vmul.f32 1.442695, %v1639_v29  ;;  %v1649_v63 = vmul.f32 1.442695, %v1640_v30 }
 0x26d   : > { %3150 = vpow2.f32 %v1641_v32 }
 0x26e   : > { %3152 = vpow2.f32 %v1643_v24 }
 0x26f   : > { %3154 = vpow2.f32 %v1645_v27 }
 0x270   : > { %3156 = vpow2.f32 %v1647_v26 }
 0x271   : > { %3158 = vpow2.f32 %v1649_v63 }
 0x277   : > { %v3151_v58 = vpop.eup %3150 }
 0x278   : > { %v3153_v34 = vpop.eup %3152 }
 0x279   : > { %v1651_v15 = vadd.f32 %v3153_v34, %v3151_v58  ;;  %v3155_v62 = vpop.eup %3154 }
 0x27a   : > { %v3157_v9 = vpop.eup %3156 }
 0x27b   : > { %v1652_v21 = vadd.f32 %v3155_v62, %v1651_v15  ;;  %v3159_v46 = vpop.eup %3158 }
 0x27d   : > { %v1653_v16 = vadd.f32 %v3157_v9, %v1652_v21 }
 0x27f   : > { %v1654_v39 = vadd.f32 %v3159_v46, %v1653_v16 }
 0x281   : > { %3160 = vrcp.f32 %v1654_v39 }
 0x28b   : > { %v3161_v31 = vpop.eup %3160 }
 0x28c   : > { %v1656_v43 = vmul.f32 %v3161_v31, %v3151_v58  ;;  %v1657_v22 = vmul.f32 %v3161_v31, %v3153_v34  ;;  %v1658_v0 = vmul.f32 %v3161_v31, %v3155_v62  ;;  %v1659_v5 = vmul.f32 %v3161_v31, %v3157_v9 }
 0x28d   : > { %v1660_v49 = vmul.f32 %v3161_v31, %v3159_v46 }
 0x28e   : > { %v1661_v52 = vmul.f32 %v3730_v3, %v1656_v43  ;;  %v1662_v55 = vmul.f32 %v3732_v8, %v1656_v43  ;;  %v1663_v7 = vmul.f32 %v3734_v13, %v1656_v43  ;;  %v1664_v6 = vmul.f32 %v4869_v19, %v1656_v43 }
 0x28f   : > { %v1665_v44 = vmul.f32 %v4877_v11, %v1656_v43  ;;  %v1666_v57 = vmul.f32 %v3740_v28, %v1657_v22  ;;  %v1667_v1 = vmul.f32 %v3742_v33, %v1657_v22  ;;  %v1668_v35 = vmul.f32 %v3744_v38, %v1657_v22 }
 0x290   : > { %v3978_v41 = vmul.f32 %v4874_v53, %v1657_v22  ;;  %v3981_v23 = vmul.f32 %v4879_v37, %v1657_v22  ;;  %v3984_v36 = vmul.f32 %v3757_v60, %v1658_v0  ;;  %v3987_v2 = vmul.f32 %v3764_v10, %v1658_v0 }
 0x291   : > { %v3990_v56 = vmul.f32 %v3768_v25, %v1658_v0  ;;  %v3993_v42 = vmul.f32 %v4876_v48, %v1658_v0  ;;  %v3996_v59 = vmul.f32 %v4880_v47, %v1658_v0  ;;  %v3999_v17 = vmul.f32 %v3788_v20, %v1659_v5 }
 0x292   : > { %v4002_v50 = vmul.f32 %v3801_v40, %v1659_v5  ;;  %v4005_v29 = vmul.f32 %v3820_v12, %v1659_v5  ;;  %v4008_v32 = vmul.f32 %v4871_v4, %v1659_v5  ;;  %v4011_v24 = vmul.f32 %v4878_v18, %v1659_v5 }
 0x293   : > { %v1686_v30 = vrot.slane %v1661_v52, 4  ;;  %v1692_v27 = vrot.slane %v1662_v55, 4  ;;  %v1698_v26 = vrot.slane %v1663_v7, 4  ;;  %v1704_v63 = vrot.slane %v1664_v6, 4 }
 0x294   : > { %v1710_v58 = vrot.slane %v1665_v44, 4  ;;  %v1716_v34 = vrot.slane %v1666_v57, 4  ;;  %v1722_v15 = vrot.slane %v1667_v1, 4  ;;  %v1728_v16 = vrot.slane %v1668_v35, 4 }
 0x295   : > { %v1687_v62 = vadd.f32 %v1686_v30, %v1661_v52  ;;  %v1693_v21 = vadd.f32 %v1692_v27, %v1662_v55  ;;  %v1699_v9 = vadd.f32 %v1698_v26, %v1663_v7  ;;  %v1705_v46 = vadd.f32 %v1704_v63, %v1664_v6 }
 0x296   : > { %v1711_v39 = vadd.f32 %v1710_v58, %v1665_v44  ;;  %v1717_v31 = vadd.f32 %v1716_v34, %v1666_v57  ;;  %v1723_v43 = vadd.f32 %v1722_v15, %v1667_v1  ;;  %v1729_v5 = vadd.f32 %v1728_v16, %v1668_v35 }
 0x297   : > { %v1688_v22 = vrot.slane %v1687_v62, 2  ;;  %v1694_v0 = vrot.slane %v1693_v21, 2  ;;  %v1700_v37 = vrot.slane %v1699_v9, 2  ;;  %v1706_v18 = vrot.slane %v1705_v46, 2 }
 0x298   : > { %v1712_v47 = vrot.slane %v1711_v39, 2  ;;  %v1718_v4 = vrot.slane %v1717_v31, 2  ;;  %v1724_v48 = vrot.slane %v1723_v43, 2  ;;  %v1730_v38 = vrot.slane %v1729_v5, 2 }
 0x299   : > { %v1689_v12 = vadd.f32 %v1688_v22, %v1687_v62  ;;  %v1695_v25 = vadd.f32 %v1694_v0, %v1693_v21  ;;  %v1701_v53 = vadd.f32 %v1700_v37, %v1699_v9  ;;  %v1707_v52 = vadd.f32 %v1706_v18, %v1705_v46 }
 0x29a   : > { %v1713_v55 = vadd.f32 %v1712_v47, %v1711_v39  ;;  %v1719_v7 = vadd.f32 %v1718_v4, %v1717_v31  ;;  %v1725_v30 = vadd.f32 %v1724_v48, %v1723_v43  ;;  %v1731_v1 = vadd.f32 %v1730_v38, %v1729_v5 }
 0x29b   : > { %v1690_v6 = vrot.slane %v1689_v12, 1  ;;  %v1696_v44 = vrot.slane %v1695_v25, 1  ;;  %v1702_v57 = vrot.slane %v1701_v53, 1  ;;  %v4014_v27 = vmul.f32 %v3852_v45, %v1660_v49 }
 0x29c   : > { %v4017_v35 = vmul.f32 %v3857_v14, %v1660_v49  ;;  %v4020_v26 = vmul.f32 %v4872_v61, %v1660_v49  ;;  %v4023_v37 = vmul.f32 %v3906_v54, %v1660_v49  ;;  %v4026_v18 = vmul.f32 %v3914_v51, %v1660_v49 }
 0x29d   : > { %v1708_v4 = vrot.slane %v1707_v52, 1  ;;  %v1714_v48 = vrot.slane %v1713_v55, 1  ;;  %v1720_v47 = vrot.slane %v1719_v7, 1  ;;  %v4028_v63 = vadd.f32 %v1690_v6, %v1689_v12 }
 0x29e   : > { %v4030_v38 = vadd.f32 %v1696_v44, %v1695_v25  ;;  %v4032_v58 = vadd.f32 %v1702_v57, %v1701_v53  ;;  %v1726_v34 = vrot.slane %v1725_v30, 1  ;;  %v1732_v15 = vrot.slane %v1731_v1, 1 }
 0x29f   : > { %v1734_v62 = vrot.slane %v3978_v41, 4  ;;  %v1740_v21 = vrot.slane %v3981_v23, 4  ;;  %v1746_v9 = vrot.slane %v3984_v36, 4  ;;  %v1752_v49 = vrot.slane %v3987_v2, 4 }
 0x2a0   : > { %v1758_v16 = vrot.slane %v3990_v56, 4  ;;  %v1764_v46 = vrot.slane %v3993_v42, 4  ;;  %v1770_v12 = vrot.slane %v3996_v59, 4  ;;  %v1776_v31 = vrot.slane %v3999_v17, 4 }
 0x2a1   : > { %v1735_v25 = vadd.f32 %v1734_v62, %v3978_v41  ;;  %v1741_v53 = vadd.f32 %v1740_v21, %v3981_v23  ;;  %v1747_v39 = vadd.f32 %v1746_v9, %v3984_v36  ;;  %v1753_v43 = vadd.f32 %v1752_v49, %v3987_v2 }
 0x2a2   : > { %v1759_v22 = vadd.f32 %v1758_v16, %v3990_v56  ;;  %v1765_v0 = vadd.f32 %v1764_v46, %v3993_v42  ;;  %v1771_v5 = vadd.f32 %v1770_v12, %v3996_v59  ;;  %v1777_v51 = vadd.f32 %v1776_v31, %v3999_v17 }
 0x2a3   : > { %v1736_v6 = vrot.slane %v1735_v25, 2  ;;  %v1742_v44 = vrot.slane %v1741_v53, 2  ;;  %v1748_v57 = vrot.slane %v1747_v39, 2  ;;  %v1754_v41 = vrot.slane %v1753_v43, 2 }
 0x2a4   : > { %v1760_v62 = vrot.slane %v1759_v22, 2  ;;  %v1766_v23 = vrot.slane %v1765_v0, 2  ;;  %v1772_v21 = vrot.slane %v1771_v5, 2  ;;  %v1778_v61 = vrot.slane %v1777_v51, 2 }
 0x2a5   : > { %v1737_v36 = vadd.f32 %v1736_v6, %v1735_v25  ;;  %v1743_v9 = vadd.f32 %v1742_v44, %v1741_v53  ;;  %v1749_v54 = vadd.f32 %v1748_v57, %v1747_v39  ;;  %v1755_v2 = vadd.f32 %v1754_v41, %v1753_v43 }
 0x2a6   : > { %v1761_v49 = vadd.f32 %v1760_v62, %v1759_v22  ;;  %v1767_v56 = vadd.f32 %v1766_v23, %v1765_v0  ;;  %v1773_v16 = vadd.f32 %v1772_v21, %v1771_v5  ;;  %v1779_v12 = vadd.f32 %v1778_v61, %v1777_v51 }
 0x2a7   : > { %v1738_v42 = vrot.slane %v1737_v36, 1  ;;  %v1744_v46 = vrot.slane %v1743_v9, 1  ;;  %v1750_v59 = vrot.slane %v1749_v54, 1  ;;  %v4050_v14 = vadd.f32 %v1708_v4, %v1707_v52 }
 0x2a8   : > { %v4052_v45 = vadd.f32 %v1714_v48, %v1713_v55  ;;  %v4054_v17 = vadd.f32 %v1720_v47, %v1719_v7  ;;  %v4056_v31 = vadd.f32 %v1726_v34, %v1725_v30  ;;  %v4058_v25 = vadd.f32 %v1732_v15, %v1731_v1 }
 0x2a9   : > { %v1756_v53 = vrot.slane %v1755_v2, 1  ;;  %v1762_v39 = vrot.slane %v1761_v49, 1  ;;  %v1768_v43 = vrot.slane %v1767_v56, 1  ;;  %v4060_v22 = vadd.f32 %v1738_v42, %v1737_v36 }
 0x2aa   : > { %v4062_v0 = vadd.f32 %v1744_v46, %v1743_v9  ;;  %v4064_v5 = vadd.f32 %v1750_v59, %v1749_v54  ;;  %v1774_v51 = vrot.slane %v1773_v16, 1  ;;  %v1780_v61 = vrot.slane %v1779_v12, 1 }
 0x2ab   : > { %v1782_v52 = vrot.slane %v4002_v50, 4  ;;  %v1788_v55 = vrot.slane %v4005_v29, 4  ;;  %v1794_v7 = vrot.slane %v4008_v32, 4  ;;  %v1800_v30 = vrot.slane %v4011_v24, 4 }
 0x2ac   : > { %v1806_v1 = vrot.slane %v4014_v27, 4  ;;  %v1812_v4 = vrot.slane %v4017_v35, 4  ;;  %v1818_v48 = vrot.slane %v4020_v26, 4  ;;  %v1824_v15 = vrot.slane %v4023_v37, 4 }
 0x2ad   : > { %v1783_v47 = vadd.f32 %v1782_v52, %v4002_v50  ;;  %v1789_v54 = vadd.f32 %v1788_v55, %v4005_v29  ;;  %v1795_v34 = vadd.f32 %v1794_v7, %v4008_v32  ;;  %v1801_v6 = vadd.f32 %v1800_v30, %v4011_v24 }
 0x2ae   : > { %v1807_v44 = vadd.f32 %v1806_v1, %v4014_v27  ;;  %v1813_v57 = vadd.f32 %v1812_v4, %v4017_v35  ;;  %v1819_v41 = vadd.f32 %v1818_v48, %v4020_v26  ;;  %v1825_v36 = vadd.f32 %v1824_v15, %v4023_v37 }
 0x2af   : > { %v1784_v62 = vrot.slane %v1783_v47, 2  ;;  %v1790_v23 = vrot.slane %v1789_v54, 2  ;;  %v1796_v21 = vrot.slane %v1795_v34, 2  ;;  %v1802_v50 = vrot.slane %v1801_v6, 2 }
 0x2b0   : > { %v1808_v9 = vrot.slane %v1807_v44, 2  ;;  %v1814_v29 = vrot.slane %v1813_v57, 2  ;;  %v1820_v42 = vrot.slane %v1819_v41, 2  ;;  %v1826_v52 = vrot.slane %v1825_v36, 2 }
 0x2b1   : > { %v1785_v32 = vadd.f32 %v1784_v62, %v1783_v47  ;;  %v1791_v46 = vadd.f32 %v1790_v23, %v1789_v54  ;;  %v1797_v59 = vadd.f32 %v1796_v21, %v1795_v34  ;;  %v1803_v24 = vadd.f32 %v1802_v50, %v1801_v6 }
 0x2b2   : > { %v1809_v55 = vadd.f32 %v1808_v9, %v1807_v44  ;;  %v1815_v27 = vadd.f32 %v1814_v29, %v1813_v57  ;;  %v1821_v7 = vadd.f32 %v1820_v42, %v1819_v41  ;;  %v1827_v1 = vadd.f32 %v1826_v52, %v1825_v36 }
 0x2b3   : > { %v1786_v35 = vrot.slane %v1785_v32, 1  ;;  %v1792_v30 = vrot.slane %v1791_v46, 1  ;;  %v1798_v26 = vrot.slane %v1797_v59, 1  ;;  %v1804_v4 = vrot.slane %v1803_v24, 1 }
 0x2b4   : > { %v1810_v48 = vrot.slane %v1809_v55, 1  ;;  %v1816_v40 = vrot.slane %v1815_v27, 1  ;;  %v1822_v37 = vrot.slane %v1821_v7, 1  ;;  %v4082_v15 = vadd.f32 %v1756_v53, %v1755_v2 }
 0x2b5   : > { %v4084_v20 = vadd.f32 %v1762_v39, %v1761_v49  ;;  %v4086_v47 = vadd.f32 %v1768_v43, %v1767_v56  ;;  %v1828_v54 = vrot.slane %v1827_v1, 1  ;;  %v4088_v34 = vadd.f32 %v1774_v51, %v1773_v16 }
 0x2b6   : > { %v4090_v6 = vadd.f32 %v1780_v61, %v1779_v12  ;;  %v4092_v44 = vadd.f32 %v1786_v35, %v1785_v32  ;;  %v4094_v57 = vadd.f32 %v1792_v30, %v1791_v46  ;;  %v4096_v41 = vadd.f32 %v1798_v26, %v1797_v59 }
 0x2b7   : > { %v4098_v62 = vadd.f32 %v1804_v4, %v1803_v24  ;;  %v4100_v23 = vadd.f32 %v1810_v48, %v1809_v55  ;;  %v1830_v2 = vrot.slane %v4026_v18, 4  ;;  %v4103_v49 = vadd.f32 %v1816_v40, %v1815_v27 }
 0x2b8   : > { %v4105_v56 = vadd.f32 %v1822_v37, %v1821_v7  ;;  %v4107_v16 = vadd.f32 %v1828_v54, %v1827_v1  ;;  %v1836_v12 = vmul.f32 %v4028_v63, %v4028_v63  ;;  %v1837_v39 = vmul.f32 %v4030_v38, %v4030_v38 }
 0x2b9   : > { %v1831_v53 = vadd.f32 %v1830_v2, %v4026_v18  ;;  %v1838_v43 = vmul.f32 %v4032_v58, %v4032_v58  ;;  %v1839_v51 = vmul.f32 %v4050_v14, %v4050_v14  ;;  %v1841_v40 = vmul.f32 %v4054_v17, %v4054_v17 }
 0x2ba   : > { %v1842_v61 = vmul.f32 %v4056_v31, %v4056_v31  ;;  %v1846_v21 = vmul.f32 %v4064_v5, %v4064_v5  ;;  %v1847_v18 = vmul.f32 %v4082_v15, %v4082_v15  ;;  %v1840_v50 = vmul.f32 %v4052_v45, %v4052_v45 }
 0x2bb   : > { %v1832_v36 = vrot.slane %v1831_v53, 2  ;;  %v1843_v9 = vmul.f32 %v4058_v25, %v4058_v25  ;;  %v1851_v29 = vmul.f32 %v4090_v6, %v4090_v6  ;;  %v1844_v42 = vmul.f32 %v4060_v22, %v4060_v22 }
 0x2bc   : > { %v1845_v32 = vmul.f32 %v4062_v0, %v4062_v0  ;;  %v1848_v46 = vmul.f32 %v4084_v20, %v4084_v20  ;;  %v1852_v59 = vmul.f32 %v4092_v44, %v4092_v44  ;;  %v1849_v24 = vmul.f32 %v4086_v47, %v4086_v47 }
 0x2bd   : > { %v1833_v52 = vadd.f32 %v1832_v36, %v1831_v53  ;;  %v1856_v55 = vmul.f32 %v4100_v23, %v4100_v23  ;;  %v1857_v27 = vmul.f32 %v4103_v49, %v4103_v49  ;;  %v1853_v7 = vmul.f32 %v4094_v57, %v4094_v57 }
 0x2be   : > { %v1861_v35 = vadd.f32 %v1837_v39, %v1836_v12  ;;  %v1865_v30 = vadd.f32 %v1842_v61, %v1841_v40  ;;  %v1869_v26 = vadd.f32 %v1847_v18, %v1846_v21  ;;  %v1858_v4 = vmul.f32 %v4105_v56, %v4105_v56 }
 0x2bf   : > { %v1834_v1 = vrot.slane %v1833_v52, 1  ;;  %v1873_v48 = vadd.f32 %v1852_v59, %v1851_v29  ;;  %v1877_v37 = vadd.f32 %v1857_v27, %v1856_v55  ;;  %v1854_v54 = vmul.f32 %v4096_v41, %v4096_v41 }
 0x2c0   : > { %v1862_v2 = vadd.f32 %v1861_v35, %v1838_v43  ;;  %v1866_v53 = vadd.f32 %v1865_v30, %v1843_v9  ;;  %v1870_v36 = vadd.f32 %v1869_v26, %v1848_v46  ;;  %v1859_v19 = vmul.f32 %v4107_v16, %v4107_v16 }
 0x2c1   : > { %v1835_v11 = vadd.f32 %v1834_v1, %v1833_v52  ;;  %v1874_v10 = vadd.f32 %v1873_v48, %v1853_v7  ;;  %v1878_v12 = vadd.f32 %v1877_v37, %v1858_v4  ;;  %v1850_v39 = vmul.f32 %v4088_v34, %v4088_v34 }
 0x2c2   : > { %v1863_v40 = vadd.f32 %v1862_v2, %v1839_v51  ;;  %v1867_v61 = vadd.f32 %v1866_v53, %v1844_v42  ;;  %v1871_v21 = vadd.f32 %v1870_v36, %v1849_v24  ;;  %v1855_v18 = vmul.f32 %v4098_v62, %v4098_v62 }
 0x2c3   : > { %v1860_v29 = vmul.f32 %v1835_v11, %v1835_v11  ;;  %v1875_v59 = vadd.f32 %v1874_v10, %v1854_v54  ;;  %v1879_v43 = vadd.f32 %v1878_v12, %v1859_v19 }
 0x2c4   : > { %v1864_v9 = vadd.f32 %v1863_v40, %v1840_v50  ;;  %v1868_v46 = vadd.f32 %v1867_v61, %v1845_v32  ;;  %v1872_v52 = vadd.f32 %v1871_v21, %v1850_v39 }
 0x2c5   : > { %v1876_v55 = vadd.f32 %v1875_v59, %v1855_v18  ;;  %v1880_v27 = vadd.f32 %v1879_v43, %v1860_v29  ;;  %v4885_v29 = vld [vmem:[#allocation21_spill] sm:$0xff] }
 0x2c6   : > { %v1881_v35 = vadd.f32 1e-07, %v1864_v9  ;;  %v1882_v7 = vadd.f32 1e-07, %v1868_v46  ;;  %v1883_v30 = vadd.f32 1e-07, %v1872_v52 }
 0x2c7   : > { %v1884_v26 = vadd.f32 1e-07, %v1876_v55  ;;  %v1885_v1 = vadd.f32 1e-07, %v1880_v27  ;;  %v4886_v43 = vld [vmem:[#allocation13_spill] sm:$0xff]  ;;  %v4887_v46 = vld [vmem:[#allocation14_spill] sm:$0xff] }
 0x2c8   : > { %3162 = vrsqrt.f32 %v1881_v35  ;;  %v4888_v55 = vld [vmem:[#allocation25_spill] sm:$0xff]  ;;  %v4889_v27 = vld [vmem:[#allocation26_spill] sm:$0xff] }
 0x2c9   : > { %3164 = vrsqrt.f32 %v1882_v7  ;;  %v4890_v7 = vld [vmem:[#allocation17_spill] sm:$0xff] }
 0x2ca   : > { %3166 = vrsqrt.f32 %v1883_v30 }
 0x2cb   : > { %3168 = vrsqrt.f32 %v1884_v26  ;;  %v4891_v26 = vld [vmem:[#allocation22_spill] sm:$0xff] }
 0x2cc   : > { %3170 = vrsqrt.f32 %v1885_v1 }
 0x2d2   : > { %v3163_v51 = vpop.eup %3162 }
 0x2d3   : > { %v3165_v42 = vpop.eup %3164  ;;  %v1891_v19 = vmul.f32 %v3163_v51, %v4028_v63  ;;  %v1892_v50 = vmul.f32 %v3163_v51, %v4030_v38  ;;  %v1893_v32 = vmul.f32 %v3163_v51, %v4032_v58  ;;  %v1894_v4 = vmul.f32 %v3163_v51, %v4050_v14 }
 0x2d4   : > { %v3167_v24 = vpop.eup %3166  ;;  %v1895_v48 = vmul.f32 %v3163_v51, %v4052_v45  ;;  %v1896_v37 = vmul.f32 %v3165_v42, %v4054_v17  ;;  %v1897_v54 = vmul.f32 %v3165_v42, %v4056_v31  ;;  %v1898_v2 = vmul.f32 %v3165_v42, %v4058_v25 }
 0x2d5   : > { %v3169_v10 = vpop.eup %3168  ;;  %v1899_v36 = vmul.f32 %v3165_v42, %v4060_v22  ;;  %v1900_v12 = vmul.f32 %v3165_v42, %v4062_v0  ;;  %v1901_v63 = vmul.f32 %v3167_v24, %v4064_v5  ;;  %v1902_v38 = vmul.f32 %v3167_v24, %v4082_v15 }
 0x2d6   : > { %v3171_v53 = vpop.eup %3170  ;;  %v1903_v58 = vmul.f32 %v3167_v24, %v4084_v20  ;;  %v1904_v14 = vmul.f32 %v3167_v24, %v4086_v47  ;;  %v1905_v45 = vmul.f32 %v3167_v24, %v4088_v34  ;;  %v1906_v17 = vmul.f32 %v3169_v10, %v4090_v6  ;;  %v4892_v24 = vld [vmem:[#allocation28_spill] sm:$0xff] }
 0x2d7   : > { %v1907_v31 = vmul.f32 %v3169_v10, %v4092_v44  ;;  %v1908_v25 = vmul.f32 %v3169_v10, %v4094_v57  ;;  %v1909_v22 = vmul.f32 %v3169_v10, %v4096_v41  ;;  %v1910_v0 = vmul.f32 %v3169_v10, %v4098_v62 }
 0x2d8   : > { %v1911_v5 = vmul.f32 %v3171_v53, %v4100_v23  ;;  %v1912_v15 = vmul.f32 %v3171_v53, %v4103_v49  ;;  %v1913_v20 = vmul.f32 %v3171_v53, %v4105_v56  ;;  %v1914_v47 = vmul.f32 %v3171_v53, %v4107_v16  ;;  %v4881_v23 = vld [vmem:[#allocation16_spill] sm:$0xff]  ;;  %v4882_v49 = vld [vmem:[#allocation11_spill] sm:$0xff] }
 0x2d9   : > { %v1916_v34 = vmul.f32 %v3730_v3, %v1891_v19  ;;  %v1917_v6 = vmul.f32 %v3732_v8, %v1892_v50  ;;  %v1921_v44 = vmul.f32 %v3740_v28, %v1896_v37  ;;  %v1922_v57 = vmul.f32 %v3742_v33, %v1897_v54  ;;  %v4883_v56 = vld [vmem:[#allocation12_spill] sm:$0xff]  ;;  %v4894_v37 = vld [vmem:[#allocation23_spill] sm:$0xff] }
 0x2da   : > { %v1915_v39 = vmul.f32 %v3171_v53, %v1835_v11  ;;  %v1918_v41 = vmul.f32 %v3734_v13, %v1893_v32  ;;  %v1926_v62 = vmul.f32 %v3757_v60, %v1901_v63  ;;  %v1927_v40 = vmul.f32 %v4881_v23, %v1902_v38  ;;  %v4884_v16 = vld [vmem:[#allocation20_spill] sm:$0xff] }
 0x2db   : > { %v1919_v61 = vmul.f32 %v4882_v49, %v1894_v4  ;;  %v1920_v21 = vmul.f32 %v4883_v56, %v1895_v48  ;;  %v1931_v18 = vmul.f32 %v4884_v16, %v1906_v17  ;;  %v1932_v59 = vmul.f32 %v4885_v29, %v1907_v31  ;;  %v4893_v4 = vld [vmem:[#allocation18_spill] sm:$0xff]  ;;  %v4896_v31 = vld [vmem:[#allocation19_spill] sm:$0xff] }
 0x2dc   : > { %v1923_v9 = vmul.f32 %v4886_v43, %v1898_v2  ;;  %v1924_v52 = vmul.f32 %v4887_v46, %v1899_v36  ;;  %v1936_v11 = vmul.f32 %v4888_v55, %v1911_v5  ;;  %v1937_v35 = vmul.f32 %v4889_v27, %v1912_v15  ;;  %v4895_v36 = vld [vmem:[#allocation31_spill] sm:$0xff]  ;;  %v4897_v5 = vld [vmem:[#allocation24_spill] sm:$0xff] }
 0x2dd   : > { %v1928_v30 = vmul.f32 %v4890_v7, %v1903_v58  ;;  %v1933_v1 = vmul.f32 %v4891_v26, %v1908_v25  ;;  %v1941_v51 = vadd.f32 %v1917_v6, %v1916_v34  ;;  %v1945_v42 = vadd.f32 %v1922_v57, %v1921_v44  ;;  %v4898_v34 = vld [vmem:[#allocation32_spill] sm:$0xff] }
 0x2de   : > { %v1938_v10 = vmul.f32 %v4892_v24, %v1913_v20  ;;  %v1949_v19 = vadd.f32 %v1927_v40, %v1926_v62  ;;  %v1953_v50 = vadd.f32 %v1932_v59, %v1931_v18  ;;  %v1957_v32 = vadd.f32 %v1937_v35, %v1936_v11 }
 0x2df   : > { %v1929_v48 = vmul.f32 %v4893_v4, %v1904_v14  ;;  %v1934_v54 = vmul.f32 %v4894_v37, %v1909_v22  ;;  %v1942_v2 = vadd.f32 %v1941_v51, %v1918_v41  ;;  %v1946_v53 = vadd.f32 %v1945_v42, %v1923_v9  ;;  %v4899_v22 = vld [vmem:[#allocation15_spill] sm:$0xff] }
 0x2e0   : > { %v1939_v63 = vmul.f32 %v4895_v36, %v1914_v47  ;;  %v1950_v38 = vadd.f32 %v1949_v19, %v1928_v30  ;;  %v1954_v17 = vadd.f32 %v1953_v50, %v1933_v1  ;;  %v1958_v58 = vadd.f32 %v1957_v32, %v1938_v10 }
 0x2e1   : > { %v1930_v25 = vmul.f32 %v4896_v31, %v1905_v45  ;;  %v1935_v15 = vmul.f32 %v4897_v5, %v1910_v0  ;;  %v1940_v20 = vmul.f32 %v4898_v34, %v1915_v39  ;;  %v1943_v6 = vadd.f32 %v1942_v2, %v1919_v61 }
 0x2e2   : > { %v1947_v44 = vadd.f32 %v1946_v53, %v1924_v52  ;;  %v1951_v57 = vadd.f32 %v1950_v38, %v1929_v48  ;;  %v1955_v62 = vadd.f32 %v1954_v17, %v1934_v54  ;;  %v1959_v14 = vadd.f32 %v1958_v58, %v1939_v63 }
 0x2e3   : > { %v1944_v40 = vadd.f32 %v1943_v6, %v1920_v21  ;;  %v1925_v41 = vmul.f32 %v4899_v22, %v1900_v12 }
 0x2e4   : > { %v1952_v18 = vadd.f32 %v1951_v57, %v1930_v25  ;;  %v1956_v59 = vadd.f32 %v1955_v62, %v1935_v15  ;;  %v1960_v47 = vadd.f32 %v1959_v14, %v1940_v20 }
 0x2e5   : > { %v1948_v9 = vadd.f32 %v1947_v44, %v1925_v41 }
 0x2e6   : > { %v1961_v11 = vmax.f32 %v1944_v40, %v1960_v47  ;;  %v1963_v30 = vmax.f32 %v1952_v18, %v1956_v59 }
 0x2e8   : > { %v1962_v35 = vmax.f32 %v1961_v11, %v1948_v9 }
 0x2ea   : > { %v1964_v45 = vmax.f32 %v1962_v35, %v1963_v30 }
 0x2ec   : > { %v1965_v1 = vsub.f32 %v1944_v40, %v1964_v45  ;;  %v1966_v0 = vsub.f32 %v1948_v9, %v1964_v45  ;;  %v1967_v51 = vsub.f32 %v1952_v18, %v1964_v45  ;;  %v1968_v39 = vsub.f32 %v1956_v59, %v1964_v45 }
 0x2ed   : > { %v1969_v42 = vsub.f32 %v1960_v47, %v1964_v45 }
 0x2ee   : > { %v1970_v61 = vmul.f32 1.442695, %v1965_v1  ;;  %v1972_v52 = vmul.f32 1.442695, %v1966_v0  ;;  %v1974_v10 = vmul.f32 1.442695, %v1967_v51 }
 0x2ef   : > { %v1976_v21 = vmul.f32 1.442695, %v1968_v39  ;;  %v1978_v12 = vmul.f32 1.442695, %v1969_v42 }
 0x2f0   : > { %3172 = vpow2.f32 %v1970_v61 }
 0x2f1   : > { %3174 = vpow2.f32 %v1972_v52 }
 0x2f2   : > { %3176 = vpow2.f32 %v1974_v10 }
 0x2f3   : > { %3178 = vpow2.f32 %v1976_v21 }
 0x2f4   : > { %3180 = vpow2.f32 %v1978_v12 }
 0x2fa   : > { %v3173_v19 = vpop.eup %3172 }
 0x2fb   : > { %v3175_v50 = vpop.eup %3174 }
 0x2fc   : > { %v1980_v32 = vadd.f32 %v3175_v50, %v3173_v19  ;;  %v3177_v48 = vpop.eup %3176 }
 0x2fd   : > { %v3179_v2 = vpop.eup %3178 }
 0x2fe   : > { %v1981_v54 = vadd.f32 %v3177_v48, %v1980_v32  ;;  %v3181_v63 = vpop.eup %3180 }
 0x300   : > { %v1982_v53 = vadd.f32 %v3179_v2, %v1981_v54 }
 0x302   : > { %v1983_v38 = vadd.f32 %v3181_v63, %v1982_v53 }
 0x304   : > { %3182 = vrcp.f32 %v1983_v38 }
 0x30e   : > { %v3183_v17 = vpop.eup %3182 }
 0x30f   : > { %v1985_v58 = vmul.f32 %v3183_v17, %v3173_v19  ;;  %v1986_v25 = vmul.f32 %v3183_v17, %v3175_v50  ;;  %v1987_v15 = vmul.f32 %v3183_v17, %v3177_v48  ;;  %v1988_v20 = vmul.f32 %v3183_v17, %v3179_v2 }
 0x310   : > { %v1989_v6 = vmul.f32 %v3183_v17, %v3181_v63 }
 0x311   : > { %v1990_v44 = vmul.f32 %v3730_v3, %v1985_v58  ;;  %v1991_v57 = vmul.f32 %v3732_v8, %v1985_v58  ;;  %v1992_v62 = vmul.f32 %v3734_v13, %v1985_v58  ;;  %v1993_v14 = vmul.f32 %v4882_v49, %v1985_v58 }
 0x312   : > { %v1994_v40 = vmul.f32 %v4883_v56, %v1985_v58  ;;  %v1995_v41 = vmul.f32 %v3740_v28, %v1986_v25  ;;  %v1996_v18 = vmul.f32 %v3742_v33, %v1986_v25  ;;  %v1997_v59 = vmul.f32 %v4886_v43, %v1986_v25 }
 0x313   : > { %v4216_v47 = vmul.f32 %v4887_v46, %v1986_v25  ;;  %v4219_v9 = vmul.f32 %v4899_v22, %v1986_v25  ;;  %v4222_v11 = vmul.f32 %v3757_v60, %v1987_v15  ;;  %v4225_v35 = vmul.f32 %v4881_v23, %v1987_v15 }
 0x314   : > { %v4228_v30 = vmul.f32 %v4890_v7, %v1987_v15  ;;  %v4231_v45 = vmul.f32 %v4893_v4, %v1987_v15  ;;  %v4234_v1 = vmul.f32 %v4896_v31, %v1987_v15  ;;  %v4237_v0 = vmul.f32 %v4884_v16, %v1988_v20 }
 0x315   : > { %v4240_v51 = vmul.f32 %v4885_v29, %v1988_v20  ;;  %v4243_v39 = vmul.f32 %v4891_v26, %v1988_v20  ;;  %v4246_v61 = vmul.f32 %v4894_v37, %v1988_v20  ;;  %v4249_v52 = vmul.f32 %v4897_v5, %v1988_v20 }
 0x316   : > { %v2015_v42 = vrot.slane %v1990_v44, 4  ;;  %v2021_v10 = vrot.slane %v1991_v57, 4  ;;  %v2027_v21 = vrot.slane %v1992_v62, 4  ;;  %v2033_v12 = vrot.slane %v1993_v14, 4 }
 0x317   : > { %v2039_v19 = vrot.slane %v1994_v40, 4  ;;  %v2045_v50 = vrot.slane %v1995_v41, 4  ;;  %v2051_v32 = vrot.slane %v1996_v18, 4  ;;  %v2057_v53 = vrot.slane %v1997_v59, 4 }
 0x318   : > { %v2016_v48 = vadd.f32 %v2015_v42, %v1990_v44  ;;  %v2022_v54 = vadd.f32 %v2021_v10, %v1991_v57  ;;  %v2028_v2 = vadd.f32 %v2027_v21, %v1992_v62  ;;  %v2034_v63 = vadd.f32 %v2033_v12, %v1993_v14 }
 0x319   : > { %v2040_v38 = vadd.f32 %v2039_v19, %v1994_v40  ;;  %v2046_v17 = vadd.f32 %v2045_v50, %v1995_v41  ;;  %v2052_v58 = vadd.f32 %v2051_v32, %v1996_v18  ;;  %v2058_v20 = vadd.f32 %v2057_v53, %v1997_v59 }
 0x31a   : > { %v2017_v25 = vrot.slane %v2016_v48, 2  ;;  %v2023_v15 = vrot.slane %v2022_v54, 2  ;;  %v2029_v22 = vrot.slane %v2028_v2, 2  ;;  %v2035_v5 = vrot.slane %v2034_v63, 2 }
 0x31b   : > { %v2041_v31 = vrot.slane %v2040_v38, 2  ;;  %v2047_v37 = vrot.slane %v2046_v17, 2  ;;  %v2053_v4 = vrot.slane %v2052_v58, 2  ;;  %v2059_v43 = vrot.slane %v2058_v20, 2 }
 0x31c   : > { %v2018_v26 = vadd.f32 %v2017_v25, %v2016_v48  ;;  %v2024_v7 = vadd.f32 %v2023_v15, %v2022_v54  ;;  %v2030_v46 = vadd.f32 %v2029_v22, %v2028_v2  ;;  %v2036_v44 = vadd.f32 %v2035_v5, %v2034_v63 }
 0x31d   : > { %v2042_v57 = vadd.f32 %v2041_v31, %v2040_v38  ;;  %v2048_v62 = vadd.f32 %v2047_v37, %v2046_v17  ;;  %v2054_v42 = vadd.f32 %v2053_v4, %v2052_v58  ;;  %v2060_v18 = vadd.f32 %v2059_v43, %v2058_v20 }
 0x31e   : > { %v2019_v14 = vrot.slane %v2018_v26, 1  ;;  %v2025_v40 = vrot.slane %v2024_v7, 1  ;;  %v2031_v41 = vrot.slane %v2030_v46, 1  ;;  %v4252_v10 = vmul.f32 %v4888_v55, %v1989_v6 }
 0x31f   : > { %v4255_v59 = vmul.f32 %v4889_v27, %v1989_v6  ;;  %v4258_v21 = vmul.f32 %v4892_v24, %v1989_v6  ;;  %v4261_v22 = vmul.f32 %v4895_v36, %v1989_v6  ;;  %v4264_v31 = vmul.f32 %v4898_v34, %v1989_v6 }
 0x320   : > { %v2037_v4 = vrot.slane %v2036_v44, 1  ;;  %v2043_v37 = vrot.slane %v2042_v57, 1  ;;  %v2049_v5 = vrot.slane %v2048_v62, 1  ;;  %v4266_v12 = vadd.f32 %v2019_v14, %v2018_v26 }
 0x321   : > { %v4268_v43 = vadd.f32 %v2025_v40, %v2024_v7  ;;  %v4270_v19 = vadd.f32 %v2031_v41, %v2030_v46  ;;  %v2055_v50 = vrot.slane %v2054_v42, 1  ;;  %v2061_v32 = vrot.slane %v2060_v18, 1 }
 0x322   : > { %v2063_v48 = vrot.slane %v4216_v47, 4  ;;  %v2069_v54 = vrot.slane %v4219_v9, 4  ;;  %v2075_v2 = vrot.slane %v4222_v11, 4  ;;  %v2081_v6 = vrot.slane %v4225_v35, 4 }
 0x323   : > { %v2087_v53 = vrot.slane %v4228_v30, 4  ;;  %v2093_v63 = vrot.slane %v4231_v45, 4  ;;  %v2099_v26 = vrot.slane %v4234_v1, 4  ;;  %v2105_v17 = vrot.slane %v4237_v0, 4 }
 0x324   : > { %v2064_v7 = vadd.f32 %v2063_v48, %v4216_v47  ;;  %v2070_v46 = vadd.f32 %v2069_v54, %v4219_v9  ;;  %v2076_v38 = vadd.f32 %v2075_v2, %v4222_v11  ;;  %v2082_v58 = vadd.f32 %v2081_v6, %v4225_v35 }
 0x325   : > { %v2088_v25 = vadd.f32 %v2087_v53, %v4228_v30  ;;  %v2094_v15 = vadd.f32 %v2093_v63, %v4231_v45  ;;  %v2100_v20 = vadd.f32 %v2099_v26, %v4234_v1  ;;  %v2106_v34 = vadd.f32 %v2105_v17, %v4237_v0 }
 0x326   : > { %v2065_v14 = vrot.slane %v2064_v7, 2  ;;  %v2071_v40 = vrot.slane %v2070_v46, 2  ;;  %v2077_v41 = vrot.slane %v2076_v38, 2  ;;  %v2083_v47 = vrot.slane %v2082_v58, 2 }
 0x327   : > { %v2089_v48 = vrot.slane %v2088_v25, 2  ;;  %v2095_v9 = vrot.slane %v2094_v15, 2  ;;  %v2101_v54 = vrot.slane %v2100_v20, 2  ;;  %v2107_v24 = vrot.slane %v2106_v34, 2 }
 0x328   : > { %v2066_v11 = vadd.f32 %v2065_v14, %v2064_v7  ;;  %v2072_v2 = vadd.f32 %v2071_v40, %v2070_v46  ;;  %v2078_v36 = vadd.f32 %v2077_v41, %v2076_v38  ;;  %v2084_v35 = vadd.f32 %v2083_v47, %v2082_v58 }
 0x329   : > { %v2090_v6 = vadd.f32 %v2089_v48, %v2088_v25  ;;  %v2096_v30 = vadd.f32 %v2095_v9, %v2094_v15  ;;  %v2102_v53 = vadd.f32 %v2101_v54, %v2100_v20  ;;  %v2108_v26 = vadd.f32 %v2107_v24, %v2106_v34 }
 0x32a   : > { %v2067_v45 = vrot.slane %v2066_v11, 1  ;;  %v2073_v63 = vrot.slane %v2072_v2, 1  ;;  %v2079_v1 = vrot.slane %v2078_v36, 1  ;;  %v4288_v27 = vadd.f32 %v2037_v4, %v2036_v44 }
 0x32b   : > { %v4290_v55 = vadd.f32 %v2043_v37, %v2042_v57  ;;  %v4292_v0 = vadd.f32 %v2049_v5, %v2048_v62  ;;  %v4294_v17 = vadd.f32 %v2055_v50, %v2054_v42  ;;  %v4296_v7 = vadd.f32 %v2061_v32, %v2060_v18 }
 0x32c   : > { %v2085_v46 = vrot.slane %v2084_v35, 1  ;;  %v2091_v38 = vrot.slane %v2090_v6, 1  ;;  %v2097_v58 = vrot.slane %v2096_v30, 1  ;;  %v4298_v25 = vadd.f32 %v2067_v45, %v2066_v11 }
 0x32d   : > { %v4300_v15 = vadd.f32 %v2073_v63, %v2072_v2  ;;  %v4302_v20 = vadd.f32 %v2079_v1, %v2078_v36  ;;  %v2103_v24 = vrot.slane %v2102_v53, 1  ;;  %v2109_v34 = vrot.slane %v2108_v26, 1 }
 0x32e   : > { %v2111_v44 = vrot.slane %v4240_v51, 4  ;;  %v2117_v57 = vrot.slane %v4243_v39, 4  ;;  %v2123_v62 = vrot.slane %v4246_v61, 4  ;;  %v2129_v42 = vrot.slane %v4249_v52, 4 }
 0x32f   : > { %v2135_v18 = vrot.slane %v4252_v10, 4  ;;  %v2141_v4 = vrot.slane %v4255_v59, 4  ;;  %v2147_v37 = vrot.slane %v4258_v21, 4  ;;  %v2153_v32 = vrot.slane %v4261_v22, 4 }
 0x330   : > { %v2112_v5 = vadd.f32 %v2111_v44, %v4240_v51  ;;  %v2118_v36 = vadd.f32 %v2117_v57, %v4243_v39  ;;  %v2124_v50 = vadd.f32 %v2123_v62, %v4246_v61  ;;  %v2130_v14 = vadd.f32 %v2129_v42, %v4249_v52 }
 0x331   : > { %v2136_v40 = vadd.f32 %v2135_v18, %v4252_v10  ;;  %v2142_v41 = vadd.f32 %v2141_v4, %v4255_v59  ;;  %v2148_v47 = vadd.f32 %v2147_v37, %v4258_v21  ;;  %v2154_v11 = vadd.f32 %v2153_v32, %v4261_v22 }
 0x332   : > { %v2113_v48 = vrot.slane %v2112_v5, 2  ;;  %v2119_v9 = vrot.slane %v2118_v36, 2  ;;  %v2125_v54 = vrot.slane %v2124_v50, 2  ;;  %v2131_v51 = vrot.slane %v2130_v14, 2 }
 0x333   : > { %v2137_v2 = vrot.slane %v2136_v40, 2  ;;  %v2143_v39 = vrot.slane %v2142_v41, 2  ;;  %v2149_v45 = vrot.slane %v2148_v47, 2  ;;  %v2155_v44 = vrot.slane %v2154_v11, 2 }
 0x334   : > { %v2114_v61 = vadd.f32 %v2113_v48, %v2112_v5  ;;  %v2120_v63 = vadd.f32 %v2119_v9, %v2118_v36  ;;  %v2126_v1 = vadd.f32 %v2125_v54, %v2124_v50  ;;  %v2132_v52 = vadd.f32 %v2131_v51, %v2130_v14 }
 0x335   : > { %v2138_v57 = vadd.f32 %v2137_v2, %v2136_v40  ;;  %v2144_v10 = vadd.f32 %v2143_v39, %v2142_v41  ;;  %v2150_v62 = vadd.f32 %v2149_v45, %v2148_v47  ;;  %v2156_v18 = vadd.f32 %v2155_v44, %v2154_v11 }
 0x336   : > { %v2115_v59 = vrot.slane %v2114_v61, 1  ;;  %v2121_v42 = vrot.slane %v2120_v63, 1  ;;  %v2127_v21 = vrot.slane %v2126_v1, 1  ;;  %v2133_v4 = vrot.slane %v2132_v52, 1 }
 0x337   : > { %v2139_v37 = vrot.slane %v2138_v57, 1  ;;  %v2145_v29 = vrot.slane %v2144_v10, 1  ;;  %v2151_v22 = vrot.slane %v2150_v62, 1  ;;  %v4320_v32 = vadd.f32 %v2085_v46, %v2084_v35 }
 0x338   : > { %v4322_v16 = vadd.f32 %v2091_v38, %v2090_v6  ;;  %v4324_v5 = vadd.f32 %v2097_v58, %v2096_v30  ;;  %v2157_v36 = vrot.slane %v2156_v18, 1  ;;  %v4326_v50 = vadd.f32 %v2103_v24, %v2102_v53 }
 0x339   : > { %v4328_v14 = vadd.f32 %v2109_v34, %v2108_v26  ;;  %v4330_v40 = vadd.f32 %v2115_v59, %v2114_v61  ;;  %v4332_v41 = vadd.f32 %v2121_v42, %v2120_v63  ;;  %v4334_v47 = vadd.f32 %v2127_v21, %v2126_v1 }
 0x33a   : > { %v4336_v48 = vadd.f32 %v2133_v4, %v2132_v52  ;;  %v4338_v9 = vadd.f32 %v2139_v37, %v2138_v57  ;;  %v2159_v35 = vrot.slane %v4264_v31, 4  ;;  %v4341_v6 = vadd.f32 %v2145_v29, %v2144_v10 }
 0x33b   : > { %v4343_v30 = vadd.f32 %v2151_v22, %v2150_v62  ;;  %v4345_v53 = vadd.f32 %v2157_v36, %v2156_v18  ;;  %v2165_v26 = vmul.f32 %v4266_v12, %v4266_v12  ;;  %v2166_v38 = vmul.f32 %v4268_v43, %v4268_v43 }
 0x33c   : > { %v2160_v46 = vadd.f32 %v2159_v35, %v4264_v31  ;;  %v2167_v58 = vmul.f32 %v4270_v19, %v4270_v19  ;;  %v2168_v24 = vmul.f32 %v4288_v27, %v4288_v27  ;;  %v2170_v29 = vmul.f32 %v4292_v0, %v4292_v0 }
 0x33d   : > { %v2171_v34 = vmul.f32 %v4294_v17, %v4294_v17  ;;  %v2175_v54 = vmul.f32 %v4302_v20, %v4302_v20  ;;  %v2176_v31 = vmul.f32 %v4320_v32, %v4320_v32  ;;  %v2169_v51 = vmul.f32 %v4290_v55, %v4290_v55 }
 0x33e   : > { %v2161_v11 = vrot.slane %v2160_v46, 2  ;;  %v2172_v2 = vmul.f32 %v4296_v7, %v4296_v7  ;;  %v2180_v39 = vmul.f32 %v4328_v14, %v4328_v14  ;;  %v2173_v45 = vmul.f32 %v4298_v25, %v4298_v25 }
 0x33f   : > { %v2174_v61 = vmul.f32 %v4300_v15, %v4300_v15  ;;  %v2177_v63 = vmul.f32 %v4322_v16, %v4322_v16  ;;  %v2181_v1 = vmul.f32 %v4330_v40, %v4330_v40  ;;  %v2178_v52 = vmul.f32 %v4324_v5, %v4324_v5 }
 0x340   : > { %v2162_v44 = vadd.f32 %v2161_v11, %v2160_v46  ;;  %v2185_v57 = vmul.f32 %v4338_v9, %v4338_v9  ;;  %v2186_v10 = vmul.f32 %v4341_v6, %v4341_v6  ;;  %v2182_v62 = vmul.f32 %v4332_v41, %v4332_v41 }
 0x341   : > { %v2190_v59 = vadd.f32 %v2166_v38, %v2165_v26  ;;  %v2194_v42 = vadd.f32 %v2171_v34, %v2170_v29  ;;  %v2198_v21 = vadd.f32 %v2176_v31, %v2175_v54  ;;  %v2187_v4 = vmul.f32 %v4343_v30, %v4343_v30 }
 0x342   : > { %v2163_v18 = vrot.slane %v2162_v44, 1  ;;  %v2202_v37 = vadd.f32 %v2181_v1, %v2180_v39  ;;  %v2206_v22 = vadd.f32 %v2186_v10, %v2185_v57  ;;  %v2183_v36 = vmul.f32 %v4334_v47, %v4334_v47 }
 0x343   : > { %v2191_v35 = vadd.f32 %v2190_v59, %v2167_v58  ;;  %v2195_v46 = vadd.f32 %v2194_v42, %v2172_v2  ;;  %v2199_v11 = vadd.f32 %v2198_v21, %v2177_v63  ;;  %v2188_v49 = vmul.f32 %v4345_v53, %v4345_v53 }
 0x344   : > { %v2164_v56 = vadd.f32 %v2163_v18, %v2162_v44  ;;  %v2203_v23 = vadd.f32 %v2202_v37, %v2182_v62  ;;  %v2207_v26 = vadd.f32 %v2206_v22, %v2187_v4  ;;  %v2179_v38 = vmul.f32 %v4326_v50, %v4326_v50 }
 0x345   : > { %v2192_v29 = vadd.f32 %v2191_v35, %v2168_v24  ;;  %v2196_v34 = vadd.f32 %v2195_v46, %v2173_v45  ;;  %v2200_v54 = vadd.f32 %v2199_v11, %v2178_v52  ;;  %v2184_v31 = vmul.f32 %v4336_v48, %v4336_v48 }
 0x346   : > { %v2189_v39 = vmul.f32 %v2164_v56, %v2164_v56  ;;  %v2204_v1 = vadd.f32 %v2203_v23, %v2183_v36  ;;  %v2208_v58 = vadd.f32 %v2207_v26, %v2188_v49 }
 0x347   : > { %v2193_v2 = vadd.f32 %v2192_v29, %v2169_v51  ;;  %v2197_v63 = vadd.f32 %v2196_v34, %v2174_v61  ;;  %v2201_v44 = vadd.f32 %v2200_v54, %v2179_v38 }
 0x348   : > { %v2205_v57 = vadd.f32 %v2204_v1, %v2184_v31  ;;  %v2209_v10 = vadd.f32 %v2208_v58, %v2189_v39  ;;  %v4904_v39 = vld [vmem:[#allocation21_spill] sm:$0xff] }
 0x349   : > { %v2210_v59 = vadd.f32 1e-07, %v2193_v2  ;;  %v2211_v62 = vadd.f32 1e-07, %v2197_v63  ;;  %v2212_v42 = vadd.f32 1e-07, %v2201_v44 }
 0x34a   : > { %v2213_v21 = vadd.f32 1e-07, %v2205_v57  ;;  %v2214_v18 = vadd.f32 1e-07, %v2209_v10  ;;  %v4905_v58 = vld [vmem:[#allocation13_spill] sm:$0xff]  ;;  %v4906_v63 = vld [vmem:[#allocation14_spill] sm:$0xff] }
 0x34b   : > { %3184 = vrsqrt.f32 %v2210_v59  ;;  %v4907_v57 = vld [vmem:[#allocation25_spill] sm:$0xff]  ;;  %v4908_v10 = vld [vmem:[#allocation26_spill] sm:$0xff] }
 0x34c   : > { %3186 = vrsqrt.f32 %v2211_v62  ;;  %v4909_v62 = vld [vmem:[#allocation17_spill] sm:$0xff] }
 0x34d   : > { %3188 = vrsqrt.f32 %v2212_v42 }
 0x34e   : > { %3190 = vrsqrt.f32 %v2213_v21  ;;  %v4910_v21 = vld [vmem:[#allocation22_spill] sm:$0xff] }
 0x34f   : > { %3192 = vrsqrt.f32 %v2214_v18 }
 0x355   : > { %v3185_v24 = vpop.eup %3184 }
 0x356   : > { %v3187_v45 = vpop.eup %3186  ;;  %v2220_v49 = vmul.f32 %v3185_v24, %v4266_v12  ;;  %v2221_v51 = vmul.f32 %v3185_v24, %v4268_v43  ;;  %v2222_v61 = vmul.f32 %v3185_v24, %v4270_v19  ;;  %v2223_v4 = vmul.f32 %v3185_v24, %v4288_v27 }
 0x357   : > { %v3189_v52 = vpop.eup %3188  ;;  %v2224_v37 = vmul.f32 %v3185_v24, %v4290_v55  ;;  %v2225_v22 = vmul.f32 %v3187_v45, %v4292_v0  ;;  %v2226_v36 = vmul.f32 %v3187_v45, %v4294_v17  ;;  %v2227_v35 = vmul.f32 %v3187_v45, %v4296_v7 }
 0x358   : > { %v3191_v23 = vpop.eup %3190  ;;  %v2228_v11 = vmul.f32 %v3187_v45, %v4298_v25  ;;  %v2229_v26 = vmul.f32 %v3187_v45, %v4300_v15  ;;  %v2230_v12 = vmul.f32 %v3189_v52, %v4302_v20  ;;  %v2231_v43 = vmul.f32 %v3189_v52, %v4320_v32 }
 0x359   : > { %v3193_v46 = vpop.eup %3192  ;;  %v2232_v19 = vmul.f32 %v3189_v52, %v4322_v16  ;;  %v2233_v27 = vmul.f32 %v3189_v52, %v4324_v5  ;;  %v2234_v55 = vmul.f32 %v3189_v52, %v4326_v50  ;;  %v2235_v0 = vmul.f32 %v3191_v23, %v4328_v14  ;;  %v4911_v52 = vld [vmem:[#allocation28_spill] sm:$0xff] }
 0x35a   : > { %v2236_v17 = vmul.f32 %v3191_v23, %v4330_v40  ;;  %v2237_v7 = vmul.f32 %v3191_v23, %v4332_v41  ;;  %v2238_v25 = vmul.f32 %v3191_v23, %v4334_v47  ;;  %v2239_v15 = vmul.f32 %v3191_v23, %v4336_v48 }
 0x35b   : > { %v2240_v20 = vmul.f32 %v3193_v46, %v4338_v9  ;;  %v2241_v32 = vmul.f32 %v3193_v46, %v4341_v6  ;;  %v2242_v16 = vmul.f32 %v3193_v46, %v4343_v30  ;;  %v2243_v5 = vmul.f32 %v3193_v46, %v4345_v53  ;;  %v4900_v9 = vld [vmem:[#allocation16_spill] sm:$0xff]  ;;  %v4901_v6 = vld [vmem:[#allocation11_spill] sm:$0xff] }
 0x35c   : > { %v2245_v50 = vmul.f32 %v3730_v3, %v2220_v49  ;;  %v2246_v14 = vmul.f32 %v3732_v8, %v2221_v51  ;;  %v2250_v40 = vmul.f32 %v3740_v28, %v2225_v22  ;;  %v2251_v41 = vmul.f32 %v3742_v33, %v2226_v36  ;;  %v4902_v30 = vld [vmem:[#allocation12_spill] sm:$0xff]  ;;  %v4913_v22 = vld [vmem:[#allocation23_spill] sm:$0xff] }
 0x35d   : > { %v2244_v38 = vmul.f32 %v3193_v46, %v2164_v56  ;;  %v2247_v47 = vmul.f32 %v3734_v13, %v2222_v61  ;;  %v2255_v48 = vmul.f32 %v3757_v60, %v2230_v12  ;;  %v2256_v29 = vmul.f32 %v4900_v9, %v2231_v43  ;;  %v4903_v53 = vld [vmem:[#allocation20_spill] sm:$0xff] }
 0x35e   : > { %v2248_v34 = vmul.f32 %v4901_v6, %v2223_v4  ;;  %v2249_v54 = vmul.f32 %v4902_v30, %v2224_v37  ;;  %v2260_v31 = vmul.f32 %v4903_v53, %v2235_v0  ;;  %v2261_v1 = vmul.f32 %v4904_v39, %v2236_v17  ;;  %v4912_v4 = vld [vmem:[#allocation18_spill] sm:$0xff]  ;;  %v4915_v17 = vld [vmem:[#allocation19_spill] sm:$0xff] }
 0x35f   : > { %v2252_v2 = vmul.f32 %v4905_v58, %v2227_v35  ;;  %v2253_v44 = vmul.f32 %v4906_v63, %v2228_v11  ;;  %v2265_v56 = vmul.f32 %v4907_v57, %v2240_v20  ;;  %v2266_v59 = vmul.f32 %v4908_v10, %v2241_v32  ;;  %v4914_v11 = vld [vmem:[#allocation31_spill] sm:$0xff]  ;;  %v4916_v20 = vld [vmem:[#allocation24_spill] sm:$0xff] }
 0x360   : > { %v2257_v42 = vmul.f32 %v4909_v62, %v2232_v19  ;;  %v2262_v18 = vmul.f32 %v4910_v21, %v2237_v7  ;;  %v2270_v24 = vadd.f32 %v2246_v14, %v2245_v50  ;;  %v2274_v45 = vadd.f32 %v2251_v41, %v2250_v40  ;;  %v4917_v50 = vld [vmem:[#allocation32_spill] sm:$0xff] }
 0x361   : > { %v2267_v23 = vmul.f32 %v4911_v52, %v2242_v16  ;;  %v2278_v49 = vadd.f32 %v2256_v29, %v2255_v48  ;;  %v2282_v51 = vadd.f32 %v2261_v1, %v2260_v31  ;;  %v2286_v61 = vadd.f32 %v2266_v59, %v2265_v56 }
 0x362   : > { %v2258_v37 = vmul.f32 %v4912_v4, %v2233_v27  ;;  %v2263_v36 = vmul.f32 %v4913_v22, %v2238_v25  ;;  %v2271_v35 = vadd.f32 %v2270_v24, %v2247_v47  ;;  %v2275_v46 = vadd.f32 %v2274_v45, %v2252_v2  ;;  %v4918_v25 = vld [vmem:[#allocation15_spill] sm:$0xff] }
 0x363   : > { %v2268_v12 = vmul.f32 %v4914_v11, %v2243_v5  ;;  %v2279_v43 = vadd.f32 %v2278_v49, %v2257_v42  ;;  %v2283_v0 = vadd.f32 %v2282_v51, %v2262_v18  ;;  %v2287_v19 = vadd.f32 %v2286_v61, %v2267_v23 }
 0x364   : > { %v2259_v7 = vmul.f32 %v4915_v17, %v2234_v55  ;;  %v2264_v32 = vmul.f32 %v4916_v20, %v2239_v15  ;;  %v2269_v16 = vmul.f32 %v4917_v50, %v2244_v38  ;;  %v2272_v14 = vadd.f32 %v2271_v35, %v2248_v34 }
 0x365   : > { %v2276_v40 = vadd.f32 %v2275_v46, %v2253_v44  ;;  %v2280_v41 = vadd.f32 %v2279_v43, %v2258_v37  ;;  %v2284_v48 = vadd.f32 %v2283_v0, %v2263_v36  ;;  %v2288_v27 = vadd.f32 %v2287_v19, %v2268_v12 }
 0x366   : > { %v2273_v29 = vadd.f32 %v2272_v14, %v2249_v54  ;;  %v2254_v47 = vmul.f32 %v4918_v25, %v2229_v26 }
 0x367   : > { %v2281_v31 = vadd.f32 %v2280_v41, %v2259_v7  ;;  %v2285_v1 = vadd.f32 %v2284_v48, %v2264_v32  ;;  %v2289_v5 = vadd.f32 %v2288_v27, %v2269_v16 }
 0x368   : > { %v2277_v2 = vadd.f32 %v2276_v40, %v2254_v47 }
 0x369   : > { %v2290_v56 = vmax.f32 %v2273_v29, %v2289_v5  ;;  %v2292_v42 = vmax.f32 %v2281_v31, %v2285_v1 }
 0x36b   : > { %v2291_v59 = vmax.f32 %v2290_v56, %v2277_v2 }
 0x36d   : > { %v2293_v55 = vmax.f32 %v2291_v59, %v2292_v42 }
 0x36f   : > { %v2294_v18 = vsub.f32 %v2273_v29, %v2293_v55  ;;  %v2295_v15 = vsub.f32 %v2277_v2, %v2293_v55  ;;  %v2296_v24 = vsub.f32 %v2281_v31, %v2293_v55  ;;  %v2297_v38 = vsub.f32 %v2285_v1, %v2293_v55 }
 0x370   : > { %v2298_v45 = vsub.f32 %v2289_v5, %v2293_v55 }
 0x371   : > { %v2299_v34 = vmul.f32 1.442695, %v2294_v18  ;;  %v2301_v44 = vmul.f32 1.442695, %v2295_v15  ;;  %v2303_v23 = vmul.f32 1.442695, %v2296_v24 }
 0x372   : > { %v2305_v54 = vmul.f32 1.442695, %v2297_v38  ;;  %v2307_v26 = vmul.f32 1.442695, %v2298_v45 }
 0x373   : > { %3194 = vpow2.f32 %v2299_v34 }
 0x374   : > { %3196 = vpow2.f32 %v2301_v44 }
 0x375   : > { %3198 = vpow2.f32 %v2303_v23 }
 0x376   : > { %3200 = vpow2.f32 %v2305_v54 }
 0x377   : > { %3202 = vpow2.f32 %v2307_v26 }
 0x37d   : > { %v3195_v49 = vpop.eup %3194 }
 0x37e   : > { %v3197_v51 = vpop.eup %3196 }
 0x37f   : > { %v2309_v61 = vadd.f32 %v3197_v51, %v3195_v49  ;;  %v3199_v37 = vpop.eup %3198 }
 0x380   : > { %v3201_v35 = vpop.eup %3200 }
 0x381   : > { %v2310_v36 = vadd.f32 %v3199_v37, %v2309_v61  ;;  %v3203_v12 = vpop.eup %3202 }
 0x383   : > { %v2311_v46 = vadd.f32 %v3201_v35, %v2310_v36 }
 0x385   : > { %v2312_v43 = vadd.f32 %v3203_v12, %v2311_v46 }
 0x387   : > { %3204 = vrcp.f32 %v2312_v43 }
 0x391   : > { %v3205_v0 = vpop.eup %3204 }
 0x392   : > { %v2314_v19 = vmul.f32 %v3205_v0, %v3195_v49  ;;  %v2315_v7 = vmul.f32 %v3205_v0, %v3197_v51  ;;  %v2316_v32 = vmul.f32 %v3205_v0, %v3199_v37  ;;  %v2318_v16 = vmul.f32 %v3205_v0, %v3203_v12 }
 0x393   : > { %v4445_v14 = vmul.f32 %v3205_v0, %v3201_v35 }
 0x394   : > { %v2319_v40 = vmul.f32 %v3730_v3, %v2314_v19  ;;  %v2320_v41 = vmul.f32 %v3732_v8, %v2314_v19  ;;  %v4450_v48 = vmul.f32 %v3734_v13, %v2314_v19  ;;  %v2339_v27 = vmul.f32 %v4907_v57, %v2318_v16 }
 0x395   : > { %v2340_v29 = vmul.f32 %v4908_v10, %v2318_v16  ;;  %v2341_v47 = vmul.f32 %v4911_v52, %v2318_v16  ;;  %v2342_v31 = vmul.f32 %v4914_v11, %v2318_v16  ;;  %v2343_v1 = vmul.f32 %v4917_v50, %v2318_v16 }
 0x396   : > { %v4458_v5 = vmul.f32 %v4901_v6, %v2314_v19  ;;  %v4461_v3 = vmul.f32 %v4902_v30, %v2314_v19  ;;  %v4464_v8 = vmul.f32 %v3740_v28, %v2315_v7  ;;  %v2464_v13 = vrot.slane %v2339_v27, 4 }
 0x397   : > { %v2470_v2 = vrot.slane %v2340_v29, 4  ;;  %v2476_v57 = vrot.slane %v2341_v47, 4  ;;  %v2482_v56 = vrot.slane %v2342_v31, 4  ;;  %v2488_v10 = vrot.slane %v2343_v1, 4 }
 0x398   : > { %v4467_v52 = vmul.f32 %v3742_v33, %v2315_v7  ;;  %v4470_v11 = vmul.f32 %v4905_v58, %v2315_v7  ;;  %v4473_v6 = vmul.f32 %v4906_v63, %v2315_v7  ;;  %v2465_v50 = vadd.f32 %v2464_v13, %v2339_v27 }
 0x399   : > { %v2471_v30 = vadd.f32 %v2470_v2, %v2340_v29  ;;  %v2477_v59 = vadd.f32 %v2476_v57, %v2341_v47  ;;  %v2483_v42 = vadd.f32 %v2482_v56, %v2342_v31  ;;  %v2489_v28 = vadd.f32 %v2488_v10, %v2343_v1 }
 0x39a   : > { %v4476_v55 = vmul.f32 %v4918_v25, %v2315_v7  ;;  %v4479_v18 = vmul.f32 %v3757_v60, %v2316_v32  ;;  %v4482_v33 = vmul.f32 %v4900_v9, %v2316_v32  ;;  %v2466_v15 = vrot.slane %v2465_v50, 2 }
 0x39b   : > { %v2472_v58 = vrot.slane %v2471_v30, 2  ;;  %v2478_v24 = vrot.slane %v2477_v59, 2  ;;  %v2484_v38 = vrot.slane %v2483_v42, 2  ;;  %v2490_v63 = vrot.slane %v2489_v28, 2 }
 0x39c   : > { %v4485_v34 = vmul.f32 %v4909_v62, %v2316_v32  ;;  %v4488_v44 = vmul.f32 %v4912_v4, %v2316_v32  ;;  %v4491_v25 = vmul.f32 %v4915_v17, %v2316_v32  ;;  %v2467_v45 = vadd.f32 %v2466_v15, %v2465_v50 }
 0x39d   : > { %v2473_v60 = vadd.f32 %v2472_v58, %v2471_v30  ;;  %v2479_v23 = vadd.f32 %v2478_v24, %v2477_v59  ;;  %v2485_v54 = vadd.f32 %v2484_v38, %v2483_v42  ;;  %v2491_v9 = vadd.f32 %v2490_v63, %v2489_v28 }
 0x39e   : > { %v4495_v26 = vmul.f32 %v4903_v53, %v4445_v14  ;;  %v4499_v49 = vmul.f32 %v4904_v39, %v4445_v14  ;;  %v4503_v62 = vmul.f32 %v4910_v21, %v4445_v14  ;;  %v2468_v4 = vrot.slane %v2467_v45, 1 }
 0x39f   : > { %v2474_v17 = vrot.slane %v2473_v60, 1  ;;  %v2480_v51 = vrot.slane %v2479_v23, 1  ;;  %v2486_v61 = vrot.slane %v2485_v54, 1  ;;  %v2492_v37 = vrot.slane %v2491_v9, 1 }
 0x3a0   : > { %v4507_v36 = vmul.f32 %v4913_v22, %v4445_v14  ;;  %v2344_v35 = vrot.slane %v2319_v40, 4  ;;  %v2350_v53 = vrot.slane %v2320_v41, 4  ;;  %v4509_v46 = vadd.f32 %v2468_v4, %v2467_v45 }
 0x3a1   : > { %v4511_v12 = vadd.f32 %v2474_v17, %v2473_v60  ;;  %v4513_v39 = vadd.f32 %v2480_v51, %v2479_v23  ;;  %v4515_v43 = vadd.f32 %v2486_v61, %v2485_v54  ;;  %v4517_v21 = vadd.f32 %v2492_v37, %v2491_v9 }
 0x3a2   : > { %v2345_v0 = vadd.f32 %v2344_v35, %v2319_v40  ;;  %v2351_v19 = vadd.f32 %v2350_v53, %v2320_v41  ;;  %v2356_v7 = vrot.slane %v4450_v48, 4  ;;  %v2514_v22 = vmul.f32 %v4509_v46, %v4509_v46 }
 0x3a3   : > { %v2515_v32 = vmul.f32 %v4511_v12, %v4511_v12  ;;  %v2516_v16 = vmul.f32 %v4513_v39, %v4513_v39  ;;  %v2517_v27 = vmul.f32 %v4515_v43, %v4515_v43  ;;  %v2518_v29 = vmul.f32 %v4517_v21, %v4517_v21 }
 0x3a4   : > { %v2346_v47 = vrot.slane %v2345_v0, 2  ;;  %v2352_v40 = vrot.slane %v2351_v19, 2  ;;  %v2357_v41 = vadd.f32 %v2356_v7, %v4450_v48  ;;  %v2362_v1 = vrot.slane %v4458_v5, 4 }
 0x3a5   : > { %v2535_v31 = vadd.f32 %v2515_v32, %v2514_v22  ;;  %v2368_v13 = vrot.slane %v4461_v3, 4  ;;  %v2374_v2 = vrot.slane %v4464_v8, 4  ;;  %v2380_v50 = vrot.slane %v4467_v52, 4 }
 0x3a6   : > { %v2347_v57 = vadd.f32 %v2346_v47, %v2345_v0  ;;  %v2353_v56 = vadd.f32 %v2352_v40, %v2351_v19  ;;  %v2358_v10 = vrot.slane %v2357_v41, 2  ;;  %v2363_v59 = vadd.f32 %v2362_v1, %v4458_v5 }
 0x3a7   : > { %v2536_v30 = vadd.f32 %v2535_v31, %v2516_v16  ;;  %v2369_v42 = vadd.f32 %v2368_v13, %v4461_v3  ;;  %v2375_v28 = vadd.f32 %v2374_v2, %v4464_v8  ;;  %v2381_v24 = vadd.f32 %v2380_v50, %v4467_v52 }
 0x3a8   : > { %v2348_v48 = vrot.slane %v2347_v57, 1  ;;  %v2354_v15 = vrot.slane %v2353_v56, 1  ;;  %v2359_v58 = vadd.f32 %v2358_v10, %v2357_v41  ;;  %v2364_v63 = vrot.slane %v2363_v59, 2 }
 0x3a9   : > { %v2537_v38 = vadd.f32 %v2536_v30, %v2517_v27  ;;  %v2370_v45 = vrot.slane %v2369_v42, 2  ;;  %v2376_v60 = vrot.slane %v2375_v28, 2  ;;  %v4541_v23 = vmul.f32 %v4916_v20, %v4445_v14 }
 0x3aa   : > { %v4543_v54 = vadd.f32 %v2348_v48, %v2347_v57  ;;  %v2360_v5 = vrot.slane %v2359_v58, 1  ;;  %v2382_v9 = vrot.slane %v2381_v24, 2  ;;  %v2365_v4 = vadd.f32 %v2364_v63, %v2363_v59 }
 0x3ab   : > { %v2538_v3 = vadd.f32 %v2537_v38, %v2518_v29  ;;  %v2371_v8 = vadd.f32 %v2370_v45, %v2369_v42  ;;  %v2377_v17 = vadd.f32 %v2376_v60, %v2375_v28  ;;  %v4545_v51 = vadd.f32 %v2354_v15, %v2353_v56 }
 0x3ac   : > { %v2383_v61 = vadd.f32 %v2382_v9, %v2381_v24  ;;  %v2386_v52 = vrot.slane %v4470_v11, 4  ;;  %v2392_v37 = vrot.slane %v4473_v6, 4  ;;  %v2366_v53 = vrot.slane %v2365_v4, 1 }
 0x3ad   : > { %v2543_v35 = vadd.f32 1e-07, %v2538_v3  ;;  %v2372_v0 = vrot.slane %v2371_v8, 1  ;;  %v2378_v20 = vrot.slane %v2377_v17, 1  ;;  %v4549_v14 = vadd.f32 %v2360_v5, %v2359_v58 }
 0x3ae   : > { %v2387_v19 = vadd.f32 %v2386_v52, %v4470_v11  ;;  %v2393_v7 = vadd.f32 %v2392_v37, %v4473_v6  ;;  %v2398_v22 = vrot.slane %v4476_v55, 4  ;;  %v4554_v32 = vadd.f32 %v2366_v53, %v2365_v4 }
 0x3af   : > { %3206 = vrsqrt.f32 %v2543_v35  ;;  %v4556_v16 = vadd.f32 %v2372_v0, %v2371_v8  ;;  %v2384_v27 = vrot.slane %v2383_v61, 1  ;;  %v4558_v29 = vadd.f32 %v2378_v20, %v2377_v17 }
 0x3b0   : > { %v2388_v47 = vrot.slane %v2387_v19, 2  ;;  %v2394_v40 = vrot.slane %v2393_v7, 2  ;;  %v2399_v41 = vadd.f32 %v2398_v22, %v4476_v55  ;;  %v2404_v31 = vrot.slane %v4479_v18, 4 }
 0x3b1   : > { %v2410_v11 = vrot.slane %v4482_v33, 4  ;;  %v2416_v6 = vrot.slane %v4485_v34, 4  ;;  %v2422_v1 = vrot.slane %v4488_v44, 4  ;;  %v2428_v56 = vrot.slane %v4491_v25, 4 }
 0x3b2   : > { %v2389_v13 = vadd.f32 %v2388_v47, %v2387_v19  ;;  %v2395_v2 = vadd.f32 %v2394_v40, %v2393_v7  ;;  %v2400_v57 = vrot.slane %v2399_v41, 2  ;;  %v2405_v10 = vadd.f32 %v2404_v31, %v4479_v18 }
 0x3b3   : > { %v2411_v50 = vadd.f32 %v2410_v11, %v4482_v33  ;;  %v2417_v30 = vadd.f32 %v2416_v6, %v4485_v34  ;;  %v2423_v55 = vadd.f32 %v2422_v1, %v4488_v44  ;;  %v2429_v48 = vadd.f32 %v2428_v56, %v4491_v25 }
 0x3b4   : > { %v2390_v59 = vrot.slane %v2389_v13, 1  ;;  %v2396_v42 = vrot.slane %v2395_v2, 1  ;;  %v2401_v28 = vadd.f32 %v2400_v57, %v2399_v41  ;;  %v2406_v15 = vrot.slane %v2405_v10, 2 }
 0x3b5   : > { %v2412_v58 = vrot.slane %v2411_v50, 2  ;;  %v2418_v24 = vrot.slane %v2417_v30, 2  ;;  %v2424_v38 = vrot.slane %v2423_v55, 2  ;;  %v4571_v63 = vadd.f32 %v2384_v27, %v2383_v61 }
 0x3b6   : > { %v4573_v45 = vadd.f32 %v2390_v59, %v2389_v13  ;;  %v2402_v18 = vrot.slane %v2401_v28, 1  ;;  %v2430_v60 = vrot.slane %v2429_v48, 2  ;;  %v2407_v33 = vadd.f32 %v2406_v15, %v2405_v10 }
 0x3b7   : > { %v2413_v5 = vadd.f32 %v2412_v58, %v2411_v50  ;;  %v2419_v34 = vadd.f32 %v2418_v24, %v2417_v30  ;;  %v2425_v9 = vadd.f32 %v2424_v38, %v2423_v55  ;;  %v4575_v44 = vadd.f32 %v2396_v42, %v2395_v2 }
 0x3b8   : > { %v2431_v3 = vadd.f32 %v2430_v60, %v2429_v48  ;;  %v2434_v4 = vrot.slane %v4495_v26, 4  ;;  %v2440_v25 = vrot.slane %v4499_v49, 4  ;;  %v2408_v17 = vrot.slane %v2407_v33, 1 }
 0x3b9   : > { %v4579_v8 = vpop.eup %3206  ;;  %v2414_v61 = vrot.slane %v2413_v5, 1  ;;  %v2420_v52 = vrot.slane %v2419_v34, 1  ;;  %v2426_v37 = vrot.slane %v2425_v9, 1  ;;  %v4581_v35 = vadd.f32 %v2402_v18, %v2401_v28 }
 0x3ba   : > { %v2432_v53 = vrot.slane %v2431_v3, 1  ;;  %v2435_v0 = vadd.f32 %v2434_v4, %v4495_v26  ;;  %v2441_v20 = vadd.f32 %v2440_v25, %v4499_v49  ;;  %v4587_v19 = vmul.f32 %v4579_v8, %v4517_v21 }
 0x3bb   : > { %v4589_v7 = vadd.f32 %v2408_v17, %v2407_v33  ;;  %v4591_v22 = vadd.f32 %v2414_v61, %v2413_v5  ;;  %v4593_v27 = vadd.f32 %v2420_v52, %v2419_v34  ;;  %v4595_v47 = vadd.f32 %v2426_v37, %v2425_v9 }
 0x3bc   : > { %v2436_v40 = vrot.slane %v2435_v0, 2  ;;  %v2442_v41 = vrot.slane %v2441_v20, 2  ;;  %v2446_v31 = vrot.slane %v4503_v62, 4  ;;  %v4598_v11 = vadd.f32 %v2432_v53, %v2431_v3 }
 0x3bd   : > { %v2452_v26 = vrot.slane %v4507_v36, 4  ;;  %v2458_v49 = vrot.slane %v4541_v23, 4  ;;  %v2494_v21 = vmul.f32 %v4543_v54, %v4543_v54  ;;  %v2495_v2 = vmul.f32 %v4545_v51, %v4545_v51 }
 0x3be   : > { %v2437_v6 = vadd.f32 %v2436_v40, %v2435_v0  ;;  %v2443_v1 = vadd.f32 %v2442_v41, %v2441_v20  ;;  %v2447_v13 = vadd.f32 %v2446_v31, %v4503_v62  ;;  %v2496_v10 = vmul.f32 %v4549_v14, %v4549_v14 }
 0x3bf   : > { %v2453_v57 = vadd.f32 %v2452_v26, %v4507_v36  ;;  %v2459_v56 = vadd.f32 %v2458_v49, %v4541_v23  ;;  %v2497_v50 = vmul.f32 %v4554_v32, %v4554_v32  ;;  %v2498_v42 = vmul.f32 %v4556_v16, %v4556_v16 }
 0x3c0   : > { %v2438_v30 = vrot.slane %v2437_v6, 1  ;;  %v2444_v55 = vrot.slane %v2443_v1, 1  ;;  %v2448_v59 = vrot.slane %v2447_v13, 2  ;;  %v2499_v36 = vmul.f32 %v4558_v29, %v4558_v29 }
 0x3c1   : > { %v2454_v62 = vrot.slane %v2453_v57, 2  ;;  %v2460_v28 = vrot.slane %v2459_v56, 2  ;;  %v2500_v23 = vmul.f32 %v4571_v63, %v4571_v63  ;;  %v2501_v24 = vmul.f32 %v4573_v45, %v4573_v45 }
 0x3c2   : > { %v4619_v48 = vadd.f32 %v2438_v30, %v2437_v6  ;;  %v4621_v15 = vadd.f32 %v2444_v55, %v2443_v1  ;;  %v2449_v58 = vadd.f32 %v2448_v59, %v2447_v13  ;;  %v2502_v60 = vmul.f32 %v4575_v44, %v4575_v44 }
 0x3c3   : > { %v2455_v38 = vadd.f32 %v2454_v62, %v2453_v57  ;;  %v2461_v18 = vadd.f32 %v2460_v28, %v2459_v56  ;;  %v2504_v33 = vmul.f32 %v4589_v7, %v4589_v7  ;;  %v2503_v34 = vmul.f32 %v4581_v35, %v4581_v35 }
 0x3c4   : > { %v2450_v5 = vrot.slane %v2449_v58, 1  ;;  %v2505_v9 = vmul.f32 %v4591_v22, %v4591_v22  ;;  %v2506_v3 = vmul.f32 %v4593_v27, %v4593_v27  ;;  %v2507_v17 = vmul.f32 %v4595_v47, %v4595_v47 }
 0x3c5   : > { %v2456_v4 = vrot.slane %v2455_v38, 1  ;;  %v2462_v25 = vrot.slane %v2461_v18, 1  ;;  %v2509_v61 = vmul.f32 %v4619_v48, %v4619_v48  ;;  %v2510_v37 = vmul.f32 %v4621_v15, %v4621_v15 }
 0x3c6   : > { %v4639_v52 = vadd.f32 %v2450_v5, %v2449_v58  ;;  %v2519_v53 = vadd.f32 %v2495_v2, %v2494_v21  ;;  %v2523_v0 = vadd.f32 %v2500_v23, %v2499_v36  ;;  %v2527_v41 = vadd.f32 %v2505_v9, %v2504_v33 }
 0x3c7   : > { %v2457_v20 = vadd.f32 %v2456_v4, %v2455_v38  ;;  %v4643_v40 = vadd.f32 %v2462_v25, %v2461_v18  ;;  %v2569_v31 = vmul.f32 %v4579_v8, %v4509_v46  ;;  %v2531_v1 = vadd.f32 %v2510_v37, %v2509_v61 }
 0x3c8   : > { %v2511_v26 = vmul.f32 %v4639_v52, %v4639_v52  ;;  %v2520_v49 = vadd.f32 %v2519_v53, %v2496_v10  ;;  %v2524_v6 = vadd.f32 %v2523_v0, %v2501_v24  ;;  %v2508_v13 = vmul.f32 %v4598_v11, %v4598_v11 }
 0x3c9   : > { %v2512_v57 = vmul.f32 %v2457_v20, %v2457_v20  ;;  %v2528_v21 = vadd.f32 %v2527_v41, %v2506_v3  ;;  %v2570_v2 = vmul.f32 %v4579_v8, %v4511_v12  ;;  %v2571_v46 = vmul.f32 %v4579_v8, %v4513_v39 }
 0x3ca   : > { %v2521_v56 = vadd.f32 %v2520_v49, %v2497_v50  ;;  %v2525_v30 = vadd.f32 %v2524_v6, %v2502_v60  ;;  %v2532_v55 = vadd.f32 %v2531_v1, %v2511_v26  ;;  %v2513_v59 = vmul.f32 %v4643_v40, %v4643_v40 }
 0x3cb   : > { %v2529_v10 = vadd.f32 %v2528_v21, %v2507_v17  ;;  %v2572_v62 = vmul.f32 %v4579_v8, %v4515_v43  ;;  %v2619_v28 = vsel %vm2599_vm1, %v2570_v2, %v2569_v31 }
 0x3cc   : > { %v2522_v36 = vadd.f32 %v2521_v56, %v2498_v42  ;;  %v2526_v23 = vadd.f32 %v2525_v30, %v2503_v34  ;;  %v2533_v58 = vadd.f32 %v2532_v55, %v2512_v57  ;;  %v2620_v12 = vsel %vm2601_vm2, %v2571_v46, %v2619_v28 }
 0x3cd   : > { %v2530_v50 = vadd.f32 %v2529_v10, %v2508_v13  ;;  %v2621_v24 = vsel %vm2603_vm3, %v2572_v62, %v2620_v12 }
 0x3ce   : > { %v2534_v38 = vadd.f32 %v2533_v58, %v2513_v59  ;;  %v2539_v18 = vadd.f32 1e-07, %v2522_v36  ;;  %v2540_v39 = vadd.f32 1e-07, %v2526_v23  ;;  %v2622_v60 = vsel %vm2605_vm4, %v4587_v19, %v2621_v24 }
 0x3cf   : > { %v2541_v33 = vadd.f32 1e-07, %v2530_v50  ;;  %2632 = vst [vmem:[%s4665_s23 + $0x20] sm:$0x1f] %v2622_v60 }
 0x3d0   : > { %v2542_v43 = vadd.f32 1e-07, %v2534_v38  ;;  %3208 = vrsqrt.f32 %v2539_v18 }
 0x3d1   : > { %3210 = vrsqrt.f32 %v2540_v39 }
 0x3d2   : > { %3212 = vrsqrt.f32 %v2541_v33 }
 0x3d3   : > { %3214 = vrsqrt.f32 %v2542_v43 }
 0x3da   : > { %v3209_v8 = vpop.eup %3208 }
 0x3db   : > { %v3211_v42 = vpop.eup %3210  ;;  %v2549_v5 = vmul.f32 %v3209_v8, %v4543_v54  ;;  %v2550_v34 = vmul.f32 %v3209_v8, %v4545_v51  ;;  %v2551_v9 = vmul.f32 %v3209_v8, %v4549_v14  ;;  %v2552_v3 = vmul.f32 %v3209_v8, %v4554_v32 }
 0x3dc   : > { %v3213_v19 = vpop.eup %3212  ;;  %v2553_v4 = vmul.f32 %v3209_v8, %v4556_v16  ;;  %v2554_v25 = vmul.f32 %v3211_v42, %v4558_v29  ;;  %v2555_v17 = vmul.f32 %v3211_v42, %v4571_v63  ;;  %v2556_v37 = vmul.f32 %v3211_v42, %v4573_v45 }
 0x3dd   : > { %v3215_v61 = vpop.eup %3214  ;;  %v2557_v54 = vmul.f32 %v3211_v42, %v4575_v44  ;;  %v2559_v51 = vmul.f32 %v3213_v19, %v4589_v7  ;;  %v2560_v53 = vmul.f32 %v3213_v19, %v4591_v22  ;;  %v2558_v14 = vmul.f32 %v3211_v42, %v4581_v35 }
 0x3de   : > { %v2561_v32 = vmul.f32 %v3213_v19, %v4593_v27  ;;  %v2562_v16 = vmul.f32 %v3213_v19, %v4595_v47  ;;  %v2564_v29 = vmul.f32 %v3215_v61, %v4619_v48  ;;  %v2563_v63 = vmul.f32 %v3213_v19, %v4598_v11 }
 0x3df   : > { %v2565_v0 = vmul.f32 %v3215_v61, %v4621_v15  ;;  %v2566_v45 = vmul.f32 %v3215_v61, %v4639_v52  ;;  %v2567_v44 = vmul.f32 %v3215_v61, %v2457_v20  ;;  %v2568_v7 = vmul.f32 %v3215_v61, %v4643_v40 }
 0x3e0   : > { %v2600_v22 = vsel %vm2599_vm1, %v2550_v34, %v2549_v5  ;;  %v2607_v35 = vsel %vm2599_vm1, %v2555_v17, %v2554_v25  ;;  %v2611_v27 = vsel %vm2599_vm1, %v2560_v53, %v2559_v51 }
 0x3e1   : > { %v2602_v47 = vsel %vm2601_vm2, %v2551_v9, %v2600_v22  ;;  %v2608_v11 = vsel %vm2601_vm2, %v2556_v37, %v2607_v35  ;;  %v2612_v48 = vsel %vm2601_vm2, %v2561_v32, %v2611_v27  ;;  %v2615_v15 = vsel %vm2599_vm1, %v2565_v0, %v2564_v29 }
 0x3e2   : > { %v2604_v52 = vsel %vm2603_vm3, %v2552_v3, %v2602_v47  ;;  %v2609_v20 = vsel %vm2603_vm3, %v2557_v54, %v2608_v11  ;;  %v2613_v40 = vsel %vm2603_vm3, %v2562_v16, %v2612_v48  ;;  %v2616_v41 = vsel %vm2601_vm2, %v2566_v45, %v2615_v15 }
 0x3e3   : > { %v2606_v31 = vsel %vm2605_vm4, %v2553_v4, %v2604_v52  ;;  %v2610_v26 = vsel %vm2605_vm4, %v2558_v14, %v2609_v20  ;;  %v2614_v49 = vsel %vm2605_vm4, %v2563_v63, %v2613_v40  ;;  %v2617_v6 = vsel %vm2603_vm3, %v2567_v44, %v2616_v41 }
 0x3e4   : > { %v2618_v1 = vsel %vm2605_vm4, %v2568_v7, %v2617_v6  ;;  %2628 = vst [vmem:[%s4665_s23] sm:$0x1f] %v2606_v31  ;;  %2629 = vst [vmem:[%s4665_s23 + $0x8] sm:$0x1f] %v2610_v26 }
 0x3e5   : > { %2630 = vst [vmem:[%s4665_s23 + $0x10] sm:$0x1f] %v2614_v49  ;;  %2631 = vst [vmem:[%s4665_s23 + $0x18] sm:$0x1f] %v2618_v1 }
 0x3e6   : > { %3287 = shalt.err (!%p3284_p11)
}
 0x3e7   : > { %s3288_s29 = scalar_lea.hbm %s4699_s26, 640  ;;  %s3292_s25 = scalar_lea.hbm %s4760_s2, 1280 }
 0x3e8   : > { %p3289_p13 = scmp.ne.s32.totalorder %s4699_s26, %s3288_s29  ;;  %p3293_p12 = scmp.lt.u32.totalorder %s4699_s26, %s4760_s2 }
 0x3e9   : > { %p3294_p3 = scmp.lt.u32.totalorder %s3292_s25, %s3288_s29  ;;  %p3296_p8 = scmp.lt.u32.totalorder %s3288_s29, %s4699_s26 }
 0x3ea   : > { %p3290_p2 = pnand %p3289_p13, %p4919_p9 }
 0x3eb   : > { %p3295_p0 = por %p3294_p3, %p3293_p12 }
 0x3ec   : > { %p3291_p6 = pneg %p3290_p2 }
 0x3ed   : > { %p3297_p10 = por %p3296_p8, %p3295_p0 }
 0x3ef   : > { %p3298_p1 = pnand %p3297_p10, %p3291_p6 }
 0x3f1   : > { %3301 = shalt.err (!%p3298_p1)
}
 0x3f2   : > { %s3355_s8 = smov 128   ;;  %s3356_s20 = smov 256  }
 0x3f3   : > { %s3357_s23 = smov 8  }
 0x3f4   : > { %3080 = dma.vmem_to_hbm [thread:$0]  (%p4919_p9), %s4705_s4, 640, %s4699_s26, %s2634_s14, %s3355_s8, %s3356_s20, %s3357_s23  }
 0x3f5 PF: > { %s2661_s24 = sand.u32 1, %s3332_s9   ;;  %p4920_p4 = scmp.ne.s32.totalorder %s4837_s22, 0 }
 0x3f6   : > { %p4921_p7 = scmp.ge.s32.totalorder %s3344_s12, 2  ;;  %s2662_s13 = scalar_lea.sflag [#allocation4], %s2661_s24 }
 0x3f8   : > { %p3091_p5 = pnand %p4921_p7, %p4920_p4 }
 0x3fa   : > { %3327 = dma.done.wait (!%p3091_p5), %s2662_s13, 640  }
 0x3fb   : > { %3329 = vsyncadd (!%p3091_p5), %s2662_s13, 4294966656  ;;  %p16_p11 = scmp.ge.s32.totalorder %s3398_s15, 4   ;;  %s4922_s9 = smov %s3336_s10 }
 0x3fc   : > { %s4923_s10 = smov %s3340_s11  ;;  %s4924_s11 = smov %s3410_s18 }
 0x3fd   : > { %s4925_s12 = smov %s3398_s15  ;;  %18 = sbr.rel (!%p16_p11) target bundleno = 6 (0x6), region = 78 }
 0x404   :  { %2667 = vsyncpa [#allocation3], 1 }
 0x405   :  { %2669 = vsyncpa [#allocation3 + $0x1], 1 }
 0x406   :  { %2670 = vsyncpa [#allocation6], 1 }
 0x407   :  { %2672 = vsyncpa [#allocation6 + $0x1], 1 }
 0x408   :  { %2673 = vsyncpa [#allocation4], 1 }
 0x409   :  { %2675 = vsyncpa [#allocation4 + $0x1], 1 }

</bundles_post_ra>
